<compile_context>
chip_gen: v6e
topology: v6e:2x2x1
jax: 0.10.0
libtpu: 0.0.40
codegen_flags: <defaults>
</compile_context>

<pallas_src>
import math

import jax
import jax.numpy as jnp
from jax.experimental import pallas as pl
from jax.experimental.pallas import tpu as pltpu

# ---- small config, consistent with the module structure ----
B = 2            # batch
S = 16           # sequence_length
BS = B * S       # batch folded into sublanes
D = 128          # d_model (divisible by 4 and by nhead)
H = 4            # nhead
DH = D // H      # head dim
FF = 4 * D       # dim_feedforward
NUM_LAYERS = 2   # num transformer layers
VOCAB = 9
MAX_QUBITS = 127
FEAT = 33        # feature_dim
OUT = 3          # output_dim
OUT_PAD = 128    # lane-dense padded output width
EPS = 1e-5       # PyTorch LayerNorm default eps


def _bf16(x):
    return x.astype(jnp.bfloat16)


def _layer_norm(x, g, b):
    mu = jnp.mean(x, axis=-1, keepdims=True)
    var = jnp.mean((x - mu) ** 2, axis=-1, keepdims=True)
    return (x - mu) * jax.lax.rsqrt(var + EPS) * g + b


# ---------------- single fused Pallas kernel (whole forward, one grid step) ----------------

def fused_forward_kernel(
    seq_ref, kbias_ref, pool_ref, feat_ref,
    seqw_ref, posb_ref,
    wqkv_ref, bqkv_ref, wo_ref, bo_ref,
    w1_ref, b1_ref, w2_ref, b2_ref,
    g1_ref, be1_ref, g2_ref, be2_ref,
    fnw1_ref, fnb1_ref, fnw2_ref, fnb2_ref,
    phw1a_ref, phw1b_ref, phb1_ref, phw2_ref, phb2_ref, phw3_ref, phb3_ref,
    out_ref,
    ctx_ref,                       # (BS, D) f32 VMEM scratch: per-head context slab
):
    kbias = kbias_ref[...]                     # (BS, BS): 0 valid same-batch key, else -1e30

    # --- sequence_projection + positional encoding (+ bias folded into posb) ---
    x = (jnp.dot(_bf16(seq_ref[...]), seqw_ref[...], preferred_element_type=jnp.float32)
         + posb_ref[...])                                                 # (BS, D) f32

    # --- post-norm TransformerEncoder layers, statically unrolled ---
    for l in range(NUM_LAYERS):
        # fused QKV projection; 1/sqrt(DH) already folded into the Q columns.
        qkv = (jnp.dot(_bf16(x), wqkv_ref[l], preferred_element_type=jnp.float32)
               + bqkv_ref[l])                                             # (BS, 3D)
        qkv_b = _bf16(qkv)                                                # one cast for q/k/v

        # Per-head attention; contexts written into ctx_ref lane slots so the output
        # projection is ONE K=128 matmul per layer.
        for h in range(H):
            sl = slice(h * DH, (h + 1) * DH)
            qh = qkv_b[:, sl]
            kh = qkv_b[:, D + h * DH:D + (h + 1) * DH]
            vh = qkv_b[:, 2 * D + h * DH:2 * D + (h + 1) * DH]
            s = jnp.dot(qh, kh.T, preferred_element_type=jnp.float32) + kbias   # (BS, BS)
            m = jnp.max(s, axis=-1, keepdims=True)
            e = jnp.exp(s - m)
            denom = jnp.sum(e, axis=-1, keepdims=True)
            ctx = jnp.dot(_bf16(e), vh, preferred_element_type=jnp.float32)      # (BS, DH)
            # normalize after PV (EUP reciprocal, small (BS,DH) result)
            ctx_ref[:, sl] = ctx * pl.reciprocal(denom, approx=True)

        attn = (jnp.dot(_bf16(ctx_ref[...]), wo_ref[l], preferred_element_type=jnp.float32)
                + bo_ref[l])                                              # (BS, D)

        x1 = _layer_norm(x + attn, g1_ref[l], be1_ref[l])

        hdd = jnp.maximum(
            jnp.dot(_bf16(x1), w1_ref[l], preferred_element_type=jnp.float32)
            + b1_ref[l], 0.0)                                             # (BS, FF)
        ff = (jnp.dot(_bf16(hdd), w2_ref[l], preferred_element_type=jnp.float32)
              + b2_ref[l])                                                # (BS, D)
        x = _layer_norm(x1 + ff, g2_ref[l], be2_ref[l])

    # --- masked mean pool via pooling matrix: (B, BS) @ (BS, D) ---
    seq_repr = jnp.dot(pool_ref[...], x, preferred_element_type=jnp.float32)   # (B, D)

    # --- feature network: Linear+ReLU, Linear+ReLU ---
    f = feat_ref[...]                                                     # (B, FEAT)
    f = jnp.maximum(jnp.dot(f, fnw1_ref[...], preferred_element_type=jnp.float32)
                    + fnb1_ref[...], 0.0)
    f = jnp.maximum(jnp.dot(f, fnw2_ref[...], preferred_element_type=jnp.float32)
                    + fnb2_ref[...], 0.0)                                 # (B, D)

    # --- prediction head (ph_w1 split: no lane-concat; output padded to 128 lanes) ---
    hh = jnp.maximum(
        jnp.dot(seq_repr, phw1a_ref[...], preferred_element_type=jnp.float32)
        + jnp.dot(f, phw1b_ref[...], preferred_element_type=jnp.float32)
        + phb1_ref[...], 0.0)                                             # (B, D)
    hh = jnp.maximum(jnp.dot(hh, phw2_ref[...], preferred_element_type=jnp.float32)
                     + phb2_ref[...], 0.0)                                # (B, D//2)
    out_ref[...] = (jnp.dot(hh, phw3_ref[...], preferred_element_type=jnp.float32)
                    + phb3_ref[...])                                      # (B, 128)


# ---------------- wrapper ----------------

def _const_spec(shape):
    n = len(shape)
    return pl.BlockSpec(shape, lambda i, _n=n: (0,) * _n)


def quantum_transformer_forward(params, seq_emb, maskf, features):
    """seq_emb: (B, S, D) f32; maskf: (B, S) f32 (1=valid, 0=pad); features: (B, FEAT)."""
    L = NUM_LAYERS

    seq_flat = seq_emb.reshape(BS, D)
    posb = jnp.tile(params['pos'], (B, 1)) + params['seq_b']              # (BS, D)

    # block-diagonal key-padding bias: 0 for (same batch, valid key), -1e30 otherwise
    same_batch = jnp.kron(jnp.eye(B, dtype=jnp.float32), jnp.ones((S, S), jnp.float32))
    key_valid = jnp.broadcast_to(maskf.reshape(1, BS), (BS, BS))
    kbias = (same_batch * key_valid - 1.0) * 1e30                         # (BS, BS)

    # masked-mean pooling matrix: pool[b, b*S + s] = valid(b,s) / count(b)
    counts = jnp.sum(maskf, axis=1, keepdims=True)                        # (B, 1)
    pool = ((maskf / counts)[None, :, :]
            * jnp.eye(B, dtype=jnp.float32)[:, :, None]).reshape(B, BS)

    args = [
        (seq_flat,          (BS, D)),
        (kbias,             (BS, BS)),
        (pool,              (B, BS)),
        (features,          (B, FEAT)),
        (params['seq_w'],   (D, D)),
        (posb,              (BS, D)),
        (params['wqkv'],    (L, D, 3 * D)),
        (params['bqkv'],    (L, 1, 3 * D)),
        (params['wo'],      (L, D, D)),
        (params['bo'],      (L, 1, D)),
        (params['w1'],      (L, D, FF)),
        (params['b1'],      (L, 1, FF)),
        (params['w2'],      (L, FF, D)),
        (params['b2'],      (L, 1, D)),
        (params['g1'],      (L, 1, D)),
        (params['be1'],     (L, 1, D)),
        (params['g2'],      (L, 1, D)),
        (params['be2'],     (L, 1, D)),
        (params['fn_w1'],   (FEAT, D)),
        (params['fn_b1'],   (1, D)),
        (params['fn_w2'],   (D, D)),
        (params['fn_b2'],   (1, D)),
        (params['ph_w1a'],  (D, D)),
        (params['ph_w1b'],  (D, D)),
        (params['ph_b1'],   (1, D)),
        (params['ph_w2'],   (D, D // 2)),
        (params['ph_b2'],   (1, D // 2)),
        (params['ph_w3p'],  (D // 2, OUT_PAD)),
        (params['ph_b3p'],  (1, OUT_PAD)),
    ]

    out = pl.pallas_call(
        fused_forward_kernel,
        out_shape=jax.ShapeDtypeStruct((B, OUT_PAD), jnp.float32),
        grid=(1,),                                   # single step: batch folded into sublanes
        in_specs=[_const_spec(shape) for _, shape in args],
        out_specs=pl.BlockSpec((B, OUT_PAD), lambda i: (0, 0)),
        scratch_shapes=[pltpu.VMEM((BS, D), jnp.float32)],
        compiler_params=pltpu.CompilerParams(
            dimension_semantics=("arbitrary",),
            vmem_limit_bytes=8 * 1024 * 1024,        # footprint ~2-3 MiB; fits v5e/v6e/v7x
        ),
    )(*[a for a, _ in args])
    return out[:, :OUT]


# ---------------- params & forward ----------------

def init_params(key):
    keys = jax.random.split(key, 64)
    ki = iter(keys)

    def lin(fan_in, fan_out):
        w = jax.random.normal(next(ki), (fan_in, fan_out), jnp.float32) * 0.05
        b = jax.random.normal(next(ki), (1, fan_out), jnp.float32) * 0.05
        return w, b

    d4 = D // 4
    p = {}
    p['gate_emb'] = jax.random.normal(next(ki), (VOCAB, d4), jnp.float32) * 0.05
    p['qubit_emb'] = jax.random.normal(next(ki), (MAX_QUBITS + 2, d4), jnp.float32) * 0.05
    p['gtype_emb'] = jax.random.normal(next(ki), (3, d4), jnp.float32) * 0.05
    p['param_w'], p['param_b'] = lin(1, d4)
    w, b = lin(D, D)
    p['seq_w'] = w.astype(jnp.bfloat16)
    p['seq_b'] = b
    p['pos'] = jax.random.normal(next(ki), (S, D), jnp.float32) * 0.05

    scale = 1.0 / math.sqrt(DH)
    wqkv, bqkv, wo_l, bo_l, w1_l, b1_l, w2_l, b2_l = ([] for _ in range(8))
    for _ in range(NUM_LAYERS):
        wq, bq = lin(D, D)
        wk, bk = lin(D, D)
        wv, bv = lin(D, D)
        # fold the 1/sqrt(head_dim) attention scale into the Q projection (weights + bias)
        wqkv.append(jnp.concatenate([wq * scale, wk, wv], axis=1).astype(jnp.bfloat16))
        bqkv.append(jnp.concatenate([bq * scale, bk, bv], axis=1))        # f32
        w, b = lin(D, D);  wo_l.append(w.astype(jnp.bfloat16)); bo_l.append(b)
        w, b = lin(D, FF); w1_l.append(w.astype(jnp.bfloat16)); b1_l.append(b)
        w, b = lin(FF, D); w2_l.append(w.astype(jnp.bfloat16)); b2_l.append(b)

    p['wqkv'] = jnp.stack(wqkv); p['bqkv'] = jnp.stack(bqkv)
    p['wo'] = jnp.stack(wo_l);   p['bo'] = jnp.stack(bo_l)
    p['w1'] = jnp.stack(w1_l);   p['b1'] = jnp.stack(b1_l)
    p['w2'] = jnp.stack(w2_l);   p['b2'] = jnp.stack(b2_l)
    p['g1'] = jnp.ones((NUM_LAYERS, 1, D), jnp.float32)
    p['be1'] = jnp.zeros((NUM_LAYERS, 1, D), jnp.float32)
    p['g2'] = jnp.ones((NUM_LAYERS, 1, D), jnp.float32)
    p['be2'] = jnp.zeros((NUM_LAYERS, 1, D), jnp.float32)

    p['fn_w1'], p['fn_b1'] = lin(FEAT, D)
    p['fn_w2'], p['fn_b2'] = lin(D, D)
    w1h, b1h = lin(2 * D, D)
    p['ph_w1a'] = w1h[:D]          # acts on the pooled sequence representation
    p['ph_w1b'] = w1h[D:]          # acts on the feature-network output
    p['ph_b1'] = b1h
    p['ph_w2'], p['ph_b2'] = lin(D, D // 2)
    w3, b3 = lin(D // 2, OUT)
    # lane-dense padded head output (zeros beyond OUT); wrapper slices [:, :OUT]
    p['ph_w3p'] = jnp.concatenate([w3, jnp.zeros((D // 2, OUT_PAD - OUT), jnp.float32)], axis=1)
    p['ph_b3p'] = jnp.concatenate([b3, jnp.zeros((1, OUT_PAD - OUT), jnp.float32)], axis=1)
    return p


def forward(params, gate_seq, qubit_seq, param_seq, gate_type_seq, features):
    # TODO(synk): embedding-table gathers / concat stay in plain JAX (tiny glue feeding
    # the single fused kernel); dropout layers are identity (inference-mode forward).
    qubit_proc = jnp.where(qubit_seq < 0, MAX_QUBITS + 1, qubit_seq)
    gate_emb = params['gate_emb'][gate_seq]
    qubit_emb = params['qubit_emb'][qubit_proc]
    gtype_emb = params['gtype_emb'][gate_type_seq]
    # param_projection: Linear(1, d_model//4) == outer product + bias
    param_emb = (param_seq[..., None] * params['param_w'][0][None, None, :]
                 + params['param_b'][0])
    seq_emb = jnp.concatenate([gate_emb, qubit_emb, gtype_emb, param_emb],
                              axis=-1).astype(jnp.float32)                 # (B, S, D)

    maskf = (gate_seq != 0).astype(jnp.float32)                            # (B, S) 1=valid
    return quantum_transformer_forward(params, seq_emb, maskf,
                                       features.astype(jnp.float32))       # (B, OUT)


if __name__ == "__main__":
    key = jax.random.PRNGKey(0)
    kp, k1, k2, k3, k4, k5 = jax.random.split(key, 6)
    params = init_params(kp)

    gate_seq = jax.random.randint(k1, (B, S), 0, VOCAB, dtype=jnp.int32)
    gate_seq = gate_seq.at[:, 0].set(1)   # guarantee >=1 non-padded token per row
    qubit_seq = jax.random.randint(k2, (B, S), -1, MAX_QUBITS, dtype=jnp.int32)  # includes -1
    param_seq = jax.random.normal(k3, (B, S), jnp.float32)
    gate_type_seq = jax.random.randint(k4, (B, S), 0, 3, dtype=jnp.int32)
    features = jax.random.normal(k5, (B, FEAT), jnp.float32)

    fwd = jax.jit(forward)
    out = fwd(params, gate_seq, qubit_seq, param_seq, gate_type_seq, features)
    out = jax.block_until_ready(out)
    assert out.shape == (B, OUT) and out.dtype == jnp.float32
    print("KERNEL_OK")
</pallas_src>

<mosaic_0001>
module attributes {stable_mosaic.version = 11 : i64} {
  func.func @fused_forward_kernel(%arg0: i32, %arg1: memref<32x128xf32, #tpu.memory_space<vmem>>, %arg2: memref<32x32xf32, #tpu.memory_space<vmem>>, %arg3: memref<2x32xf32, #tpu.memory_space<vmem>>, %arg4: memref<2x33xf32, #tpu.memory_space<vmem>>, %arg5: memref<128x128xbf16, #tpu.memory_space<vmem>>, %arg6: memref<32x128xf32, #tpu.memory_space<vmem>>, %arg7: memref<2x128x384xbf16, #tpu.memory_space<vmem>>, %arg8: memref<2x1x384xf32, #tpu.memory_space<vmem>>, %arg9: memref<2x128x128xbf16, #tpu.memory_space<vmem>>, %arg10: memref<2x1x128xf32, #tpu.memory_space<vmem>>, %arg11: memref<2x128x512xbf16, #tpu.memory_space<vmem>>, %arg12: memref<2x1x512xf32, #tpu.memory_space<vmem>>, %arg13: memref<2x512x128xbf16, #tpu.memory_space<vmem>>, %arg14: memref<2x1x128xf32, #tpu.memory_space<vmem>>, %arg15: memref<2x1x128xf32, #tpu.memory_space<vmem>>, %arg16: memref<2x1x128xf32, #tpu.memory_space<vmem>>, %arg17: memref<2x1x128xf32, #tpu.memory_space<vmem>>, %arg18: memref<2x1x128xf32, #tpu.memory_space<vmem>>, %arg19: memref<33x128xf32, #tpu.memory_space<vmem>>, %arg20: memref<1x128xf32, #tpu.memory_space<vmem>>, %arg21: memref<128x128xf32, #tpu.memory_space<vmem>>, %arg22: memref<1x128xf32, #tpu.memory_space<vmem>>, %arg23: memref<128x128xf32, #tpu.memory_space<vmem>>, %arg24: memref<128x128xf32, #tpu.memory_space<vmem>>, %arg25: memref<1x128xf32, #tpu.memory_space<vmem>>, %arg26: memref<128x64xf32, #tpu.memory_space<vmem>>, %arg27: memref<1x64xf32, #tpu.memory_space<vmem>>, %arg28: memref<64x128xf32, #tpu.memory_space<vmem>>, %arg29: memref<1x128xf32, #tpu.memory_space<vmem>>, %arg30: memref<2x128xf32, #tpu.memory_space<vmem>>, %arg31: memref<32x128xf32, #tpu.memory_space<vmem>>) attributes {dimension_semantics = [#tpu.dimension_semantics<arbitrary>], iteration_bounds = array<i64: 1>, scalar_prefetch = 0 : i64, scratch_operands = 1 : i64, tpu.core_type = #tpu.core_type<tc>, window_params = [{pipeline_mode = #tpu.pipeline_mode<synchronous>, transform_indices = @transform_0, window_bounds = array<i64: 32, 128>}, {pipeline_mode = #tpu.pipeline_mode<synchronous>, transform_indices = @transform_1, window_bounds = array<i64: 32, 32>}, {pipeline_mode = #tpu.pipeline_mode<synchronous>, transform_indices = @transform_2, window_bounds = array<i64: 2, 32>}, {pipeline_mode = #tpu.pipeline_mode<synchronous>, transform_indices = @transform_3, window_bounds = array<i64: 2, 33>}, {pipeline_mode = #tpu.pipeline_mode<synchronous>, transform_indices = @transform_4, window_bounds = array<i64: 128, 128>}, {pipeline_mode = #tpu.pipeline_mode<synchronous>, transform_indices = @transform_5, window_bounds = array<i64: 32, 128>}, {pipeline_mode = #tpu.pipeline_mode<synchronous>, transform_indices = @transform_6, window_bounds = array<i64: 2, 128, 384>}, {pipeline_mode = #tpu.pipeline_mode<synchronous>, transform_indices = @transform_7, window_bounds = array<i64: 2, 1, 384>}, {pipeline_mode = #tpu.pipeline_mode<synchronous>, transform_indices = @transform_8, window_bounds = array<i64: 2, 128, 128>}, {pipeline_mode = #tpu.pipeline_mode<synchronous>, transform_indices = @transform_9, window_bounds = array<i64: 2, 1, 128>}, {pipeline_mode = #tpu.pipeline_mode<synchronous>, transform_indices = @transform_10, window_bounds = array<i64: 2, 128, 512>}, {pipeline_mode = #tpu.pipeline_mode<synchronous>, transform_indices = @transform_11, window_bounds = array<i64: 2, 1, 512>}, {pipeline_mode = #tpu.pipeline_mode<synchronous>, transform_indices = @transform_12, window_bounds = array<i64: 2, 512, 128>}, {pipeline_mode = #tpu.pipeline_mode<synchronous>, transform_indices = @transform_13, window_bounds = array<i64: 2, 1, 128>}, {pipeline_mode = #tpu.pipeline_mode<synchronous>, transform_indices = @transform_14, window_bounds = array<i64: 2, 1, 128>}, {pipeline_mode = #tpu.pipeline_mode<synchronous>, transform_indices = @transform_15, window_bounds = array<i64: 2, 1, 128>}, {pipeline_mode = #tpu.pipeline_mode<synchronous>, transform_indices = @transform_16, window_bounds = array<i64: 2, 1, 128>}, {pipeline_mode = #tpu.pipeline_mode<synchronous>, transform_indices = @transform_17, window_bounds = array<i64: 2, 1, 128>}, {pipeline_mode = #tpu.pipeline_mode<synchronous>, transform_indices = @transform_18, window_bounds = array<i64: 33, 128>}, {pipeline_mode = #tpu.pipeline_mode<synchronous>, transform_indices = @transform_19, window_bounds = array<i64: 1, 128>}, {pipeline_mode = #tpu.pipeline_mode<synchronous>, transform_indices = @transform_20, window_bounds = array<i64: 128, 128>}, {pipeline_mode = #tpu.pipeline_mode<synchronous>, transform_indices = @transform_21, window_bounds = array<i64: 1, 128>}, {pipeline_mode = #tpu.pipeline_mode<synchronous>, transform_indices = @transform_22, window_bounds = array<i64: 128, 128>}, {pipeline_mode = #tpu.pipeline_mode<synchronous>, transform_indices = @transform_23, window_bounds = array<i64: 128, 128>}, {pipeline_mode = #tpu.pipeline_mode<synchronous>, transform_indices = @transform_24, window_bounds = array<i64: 1, 128>}, {pipeline_mode = #tpu.pipeline_mode<synchronous>, transform_indices = @transform_25, window_bounds = array<i64: 128, 64>}, {pipeline_mode = #tpu.pipeline_mode<synchronous>, transform_indices = @transform_26, window_bounds = array<i64: 1, 64>}, {pipeline_mode = #tpu.pipeline_mode<synchronous>, transform_indices = @transform_27, window_bounds = array<i64: 64, 128>}, {pipeline_mode = #tpu.pipeline_mode<synchronous>, transform_indices = @transform_28, window_bounds = array<i64: 1, 128>}, {pipeline_mode = #tpu.pipeline_mode<synchronous>, transform_indices = @transform_29, window_bounds = array<i64: 2, 128>}]} {
    %c0 = arith.constant 0 : index
    %c0_0 = arith.constant 0 : index
    %0 = vector.load %arg2[%c0, %c0_0] : memref<32x32xf32, #tpu.memory_space<vmem>>, vector<32x32xf32>
    %c0_1 = arith.constant 0 : index
    %c0_2 = arith.constant 0 : index
    %1 = vector.load %arg1[%c0_1, %c0_2] : memref<32x128xf32, #tpu.memory_space<vmem>>, vector<32x128xf32>
    %2 = arith.truncf %1 : vector<32x128xf32> to vector<32x128xbf16>
    %c0_3 = arith.constant 0 : index
    %c0_4 = arith.constant 0 : index
    %3 = vector.load %arg5[%c0_3, %c0_4] : memref<128x128xbf16, #tpu.memory_space<vmem>>, vector<128x128xbf16>
    %cst = arith.constant dense<0.000000e+00> : vector<32x128xf32>
    %4 = tpu.matmul %2, %3, %cst {dimension_numbers = #tpu.dot_dimension_numbers<[1], [0], [0], [1], [0, 0, 1, 1], [], []>} : vector<32x128xbf16>, vector<128x128xbf16>, vector<32x128xf32> -> vector<32x128xf32>
    %c0_5 = arith.constant 0 : index
    %c0_6 = arith.constant 0 : index
    %5 = vector.load %arg6[%c0_5, %c0_6] : memref<32x128xf32, #tpu.memory_space<vmem>>, vector<32x128xf32>
    %6 = arith.addf %4, %5 : vector<32x128xf32>
    %7 = arith.truncf %6 : vector<32x128xf32> to vector<32x128xbf16>
    %c0_7 = arith.constant 0 : index
    %c0_8 = arith.constant 0 : index
    %c0_9 = arith.constant 0 : index
    %8 = vector.load %arg7[%c0_7, %c0_8, %c0_9] : memref<2x128x384xbf16, #tpu.memory_space<vmem>>, vector<1x128x384xbf16>
    %9 = vector.shape_cast %8 : vector<1x128x384xbf16> to vector<128x384xbf16>
    %cst_10 = arith.constant dense<0.000000e+00> : vector<32x384xf32>
    %10 = tpu.matmul %7, %9, %cst_10 {dimension_numbers = #tpu.dot_dimension_numbers<[1], [0], [0], [1], [0, 0, 1, 1], [], []>} : vector<32x128xbf16>, vector<128x384xbf16>, vector<32x384xf32> -> vector<32x384xf32>
    %c0_11 = arith.constant 0 : index
    %c0_12 = arith.constant 0 : index
    %c0_13 = arith.constant 0 : index
    %11 = vector.load %arg8[%c0_11, %c0_12, %c0_13] : memref<2x1x384xf32, #tpu.memory_space<vmem>>, vector<1x1x384xf32>
    %12 = vector.shape_cast %11 : vector<1x1x384xf32> to vector<1x384xf32>
    %13 = vector.broadcast %12 : vector<1x384xf32> to vector<32x384xf32>
    %14 = arith.addf %10, %13 : vector<32x384xf32>
    %15 = arith.truncf %14 : vector<32x384xf32> to vector<32x384xbf16>
    %16 = vector.extract_strided_slice %15 {offsets = [0, 0], sizes = [32, 32], strides = [1, 1]} : vector<32x384xbf16> to vector<32x32xbf16>
    %17 = vector.extract_strided_slice %15 {offsets = [0, 128], sizes = [32, 32], strides = [1, 1]} : vector<32x384xbf16> to vector<32x32xbf16>
    %18 = vector.extract_strided_slice %15 {offsets = [0, 256], sizes = [32, 32], strides = [1, 1]} : vector<32x384xbf16> to vector<32x32xbf16>
    %19 = tpu.transpose %17, [1, 0] : vector<32x32xbf16> -> vector<32x32xbf16>
    %cst_14 = arith.constant dense<0.000000e+00> : vector<32x32xf32>
    %20 = tpu.matmul %16, %19, %cst_14 {dimension_numbers = #tpu.dot_dimension_numbers<[1], [0], [0], [1], [0, 0, 1, 1], [], []>} : vector<32x32xbf16>, vector<32x32xbf16>, vector<32x32xf32> -> vector<32x32xf32>
    %21 = arith.addf %20, %0 : vector<32x32xf32>
    %cst_15 = arith.constant dense<0xFF800000> : vector<32xf32>
    %22 = vector.multi_reduction <maximumf>, %21, %cst_15 [1] : vector<32x32xf32> to vector<32xf32>
    %23 = vector.shape_cast %22 : vector<32xf32> to vector<32x1xf32>
    %24 = vector.broadcast %23 : vector<32x1xf32> to vector<32x32xf32>
    %25 = arith.subf %21, %24 : vector<32x32xf32>
    %26 = math.exp %25 : vector<32x32xf32>
    %cst_16 = arith.constant dense<0.000000e+00> : vector<32xf32>
    %27 = vector.multi_reduction <add>, %26, %cst_16 [1] : vector<32x32xf32> to vector<32xf32>
    %28 = vector.shape_cast %27 : vector<32xf32> to vector<32x1xf32>
    %29 = arith.truncf %26 : vector<32x32xf32> to vector<32x32xbf16>
    %cst_17 = arith.constant dense<0.000000e+00> : vector<32x32xf32>
    %30 = tpu.matmul %29, %18, %cst_17 {dimension_numbers = #tpu.dot_dimension_numbers<[1], [0], [0], [1], [0, 0, 1, 1], [], []>} : vector<32x32xbf16>, vector<32x32xbf16>, vector<32x32xf32> -> vector<32x32xf32>
    %31 = tpu.reciprocal %28 {approx = true} : vector<32x1xf32> -> vector<32x1xf32>
    %32 = vector.broadcast %31 : vector<32x1xf32> to vector<32x32xf32>
    %33 = arith.mulf %30, %32 : vector<32x32xf32>
    %c0_18 = arith.constant 0 : index
    %c0_19 = arith.constant 0 : index
    %34 = vector.load %arg31[%c0_18, %c0_19] : memref<32x128xf32, #tpu.memory_space<vmem>>, vector<32x32xf32>
    tpu.vector_store %arg31[%c0_18, %c0_19], %33 {strides = array<i32>} : memref<32x128xf32, #tpu.memory_space<vmem>>, vector<32x32xf32>,
    %35 = vector.extract_strided_slice %15 {offsets = [0, 32], sizes = [32, 32], strides = [1, 1]} : vector<32x384xbf16> to vector<32x32xbf16>
    %36 = vector.extract_strided_slice %15 {offsets = [0, 160], sizes = [32, 32], strides = [1, 1]} : vector<32x384xbf16> to vector<32x32xbf16>
    %37 = vector.extract_strided_slice %15 {offsets = [0, 288], sizes = [32, 32], strides = [1, 1]} : vector<32x384xbf16> to vector<32x32xbf16>
    %38 = tpu.transpose %36, [1, 0] : vector<32x32xbf16> -> vector<32x32xbf16>
    %cst_20 = arith.constant dense<0.000000e+00> : vector<32x32xf32>
    %39 = tpu.matmul %35, %38, %cst_20 {dimension_numbers = #tpu.dot_dimension_numbers<[1], [0], [0], [1], [0, 0, 1, 1], [], []>} : vector<32x32xbf16>, vector<32x32xbf16>, vector<32x32xf32> -> vector<32x32xf32>
    %40 = arith.addf %39, %0 : vector<32x32xf32>
    %cst_21 = arith.constant dense<0xFF800000> : vector<32xf32>
    %41 = vector.multi_reduction <maximumf>, %40, %cst_21 [1] : vector<32x32xf32> to vector<32xf32>
    %42 = vector.shape_cast %41 : vector<32xf32> to vector<32x1xf32>
    %43 = vector.broadcast %42 : vector<32x1xf32> to vector<32x32xf32>
    %44 = arith.subf %40, %43 : vector<32x32xf32>
    %45 = math.exp %44 : vector<32x32xf32>
    %cst_22 = arith.constant dense<0.000000e+00> : vector<32xf32>
    %46 = vector.multi_reduction <add>, %45, %cst_22 [1] : vector<32x32xf32> to vector<32xf32>
    %47 = vector.shape_cast %46 : vector<32xf32> to vector<32x1xf32>
    %48 = arith.truncf %45 : vector<32x32xf32> to vector<32x32xbf16>
    %cst_23 = arith.constant dense<0.000000e+00> : vector<32x32xf32>
    %49 = tpu.matmul %48, %37, %cst_23 {dimension_numbers = #tpu.dot_dimension_numbers<[1], [0], [0], [1], [0, 0, 1, 1], [], []>} : vector<32x32xbf16>, vector<32x32xbf16>, vector<32x32xf32> -> vector<32x32xf32>
    %50 = tpu.reciprocal %47 {approx = true} : vector<32x1xf32> -> vector<32x1xf32>
    %51 = vector.broadcast %50 : vector<32x1xf32> to vector<32x32xf32>
    %52 = arith.mulf %49, %51 : vector<32x32xf32>
    %c0_24 = arith.constant 0 : index
    %c32 = arith.constant 32 : index
    %53 = vector.load %arg31[%c0_24, %c32] : memref<32x128xf32, #tpu.memory_space<vmem>>, vector<32x32xf32>
    tpu.vector_store %arg31[%c0_24, %c32], %52 {strides = array<i32>} : memref<32x128xf32, #tpu.memory_space<vmem>>, vector<32x32xf32>,
    %54 = vector.extract_strided_slice %15 {offsets = [0, 64], sizes = [32, 32], strides = [1, 1]} : vector<32x384xbf16> to vector<32x32xbf16>
    %55 = vector.extract_strided_slice %15 {offsets = [0, 192], sizes = [32, 32], strides = [1, 1]} : vector<32x384xbf16> to vector<32x32xbf16>
    %56 = vector.extract_strided_slice %15 {offsets = [0, 320], sizes = [32, 32], strides = [1, 1]} : vector<32x384xbf16> to vector<32x32xbf16>
    %57 = tpu.transpose %55, [1, 0] : vector<32x32xbf16> -> vector<32x32xbf16>
    %cst_25 = arith.constant dense<0.000000e+00> : vector<32x32xf32>
    %58 = tpu.matmul %54, %57, %cst_25 {dimension_numbers = #tpu.dot_dimension_numbers<[1], [0], [0], [1], [0, 0, 1, 1], [], []>} : vector<32x32xbf16>, vector<32x32xbf16>, vector<32x32xf32> -> vector<32x32xf32>
    %59 = arith.addf %58, %0 : vector<32x32xf32>
    %cst_26 = arith.constant dense<0xFF800000> : vector<32xf32>
    %60 = vector.multi_reduction <maximumf>, %59, %cst_26 [1] : vector<32x32xf32> to vector<32xf32>
    %61 = vector.shape_cast %60 : vector<32xf32> to vector<32x1xf32>
    %62 = vector.broadcast %61 : vector<32x1xf32> to vector<32x32xf32>
    %63 = arith.subf %59, %62 : vector<32x32xf32>
    %64 = math.exp %63 : vector<32x32xf32>
    %cst_27 = arith.constant dense<0.000000e+00> : vector<32xf32>
    %65 = vector.multi_reduction <add>, %64, %cst_27 [1] : vector<32x32xf32> to vector<32xf32>
    %66 = vector.shape_cast %65 : vector<32xf32> to vector<32x1xf32>
    %67 = arith.truncf %64 : vector<32x32xf32> to vector<32x32xbf16>
    %cst_28 = arith.constant dense<0.000000e+00> : vector<32x32xf32>
    %68 = tpu.matmul %67, %56, %cst_28 {dimension_numbers = #tpu.dot_dimension_numbers<[1], [0], [0], [1], [0, 0, 1, 1], [], []>} : vector<32x32xbf16>, vector<32x32xbf16>, vector<32x32xf32> -> vector<32x32xf32>
    %69 = tpu.reciprocal %66 {approx = true} : vector<32x1xf32> -> vector<32x1xf32>
    %70 = vector.broadcast %69 : vector<32x1xf32> to vector<32x32xf32>
    %71 = arith.mulf %68, %70 : vector<32x32xf32>
    %c0_29 = arith.constant 0 : index
    %c64 = arith.constant 64 : index
    %72 = vector.load %arg31[%c0_29, %c64] : memref<32x128xf32, #tpu.memory_space<vmem>>, vector<32x32xf32>
    tpu.vector_store %arg31[%c0_29, %c64], %71 {strides = array<i32>} : memref<32x128xf32, #tpu.memory_space<vmem>>, vector<32x32xf32>,
    %73 = vector.extract_strided_slice %15 {offsets = [0, 96], sizes = [32, 32], strides = [1, 1]} : vector<32x384xbf16> to vector<32x32xbf16>
    %74 = vector.extract_strided_slice %15 {offsets = [0, 224], sizes = [32, 32], strides = [1, 1]} : vector<32x384xbf16> to vector<32x32xbf16>
    %75 = vector.extract_strided_slice %15 {offsets = [0, 352], sizes = [32, 32], strides = [1, 1]} : vector<32x384xbf16> to vector<32x32xbf16>
    %76 = tpu.transpose %74, [1, 0] : vector<32x32xbf16> -> vector<32x32xbf16>
    %cst_30 = arith.constant dense<0.000000e+00> : vector<32x32xf32>
    %77 = tpu.matmul %73, %76, %cst_30 {dimension_numbers = #tpu.dot_dimension_numbers<[1], [0], [0], [1], [0, 0, 1, 1], [], []>} : vector<32x32xbf16>, vector<32x32xbf16>, vector<32x32xf32> -> vector<32x32xf32>
    %78 = arith.addf %77, %0 : vector<32x32xf32>
    %cst_31 = arith.constant dense<0xFF800000> : vector<32xf32>
    %79 = vector.multi_reduction <maximumf>, %78, %cst_31 [1] : vector<32x32xf32> to vector<32xf32>
    %80 = vector.shape_cast %79 : vector<32xf32> to vector<32x1xf32>
    %81 = vector.broadcast %80 : vector<32x1xf32> to vector<32x32xf32>
    %82 = arith.subf %78, %81 : vector<32x32xf32>
    %83 = math.exp %82 : vector<32x32xf32>
    %cst_32 = arith.constant dense<0.000000e+00> : vector<32xf32>
    %84 = vector.multi_reduction <add>, %83, %cst_32 [1] : vector<32x32xf32> to vector<32xf32>
    %85 = vector.shape_cast %84 : vector<32xf32> to vector<32x1xf32>
    %86 = arith.truncf %83 : vector<32x32xf32> to vector<32x32xbf16>
    %cst_33 = arith.constant dense<0.000000e+00> : vector<32x32xf32>
    %87 = tpu.matmul %86, %75, %cst_33 {dimension_numbers = #tpu.dot_dimension_numbers<[1], [0], [0], [1], [0, 0, 1, 1], [], []>} : vector<32x32xbf16>, vector<32x32xbf16>, vector<32x32xf32> -> vector<32x32xf32>
    %88 = tpu.reciprocal %85 {approx = true} : vector<32x1xf32> -> vector<32x1xf32>
    %89 = vector.broadcast %88 : vector<32x1xf32> to vector<32x32xf32>
    %90 = arith.mulf %87, %89 : vector<32x32xf32>
    %c0_34 = arith.constant 0 : index
    %c96 = arith.constant 96 : index
    %91 = vector.load %arg31[%c0_34, %c96] : memref<32x128xf32, #tpu.memory_space<vmem>>, vector<32x32xf32>
    tpu.vector_store %arg31[%c0_34, %c96], %90 {strides = array<i32>} : memref<32x128xf32, #tpu.memory_space<vmem>>, vector<32x32xf32>,
    %c0_35 = arith.constant 0 : index
    %c0_36 = arith.constant 0 : index
    %92 = vector.load %arg31[%c0_35, %c0_36] : memref<32x128xf32, #tpu.memory_space<vmem>>, vector<32x128xf32>
    %93 = arith.truncf %92 : vector<32x128xf32> to vector<32x128xbf16>
    %c0_37 = arith.constant 0 : index
    %c0_38 = arith.constant 0 : index
    %c0_39 = arith.constant 0 : index
    %94 = vector.load %arg9[%c0_37, %c0_38, %c0_39] : memref<2x128x128xbf16, #tpu.memory_space<vmem>>, vector<1x128x128xbf16>
    %95 = vector.shape_cast %94 : vector<1x128x128xbf16> to vector<128x128xbf16>
    %cst_40 = arith.constant dense<0.000000e+00> : vector<32x128xf32>
    %96 = tpu.matmul %93, %95, %cst_40 {dimension_numbers = #tpu.dot_dimension_numbers<[1], [0], [0], [1], [0, 0, 1, 1], [], []>} : vector<32x128xbf16>, vector<128x128xbf16>, vector<32x128xf32> -> vector<32x128xf32>
    %c0_41 = arith.constant 0 : index
    %c0_42 = arith.constant 0 : index
    %c0_43 = arith.constant 0 : index
    %97 = vector.load %arg10[%c0_41, %c0_42, %c0_43] : memref<2x1x128xf32, #tpu.memory_space<vmem>>, vector<1x1x128xf32>
    %98 = vector.shape_cast %97 : vector<1x1x128xf32> to vector<1x128xf32>
    %99 = vector.broadcast %98 : vector<1x128xf32> to vector<32x128xf32>
    %100 = arith.addf %96, %99 : vector<32x128xf32>
    %101 = arith.addf %6, %100 : vector<32x128xf32>
    %c0_44 = arith.constant 0 : index
    %c0_45 = arith.constant 0 : index
    %c0_46 = arith.constant 0 : index
    %102 = vector.load %arg15[%c0_44, %c0_45, %c0_46] : memref<2x1x128xf32, #tpu.memory_space<vmem>>, vector<1x1x128xf32>
    %103 = vector.shape_cast %102 : vector<1x1x128xf32> to vector<1x128xf32>
    %c0_47 = arith.constant 0 : index
    %c0_48 = arith.constant 0 : index
    %c0_49 = arith.constant 0 : index
    %104 = vector.load %arg16[%c0_47, %c0_48, %c0_49] : memref<2x1x128xf32, #tpu.memory_space<vmem>>, vector<1x1x128xf32>
    %105 = vector.shape_cast %104 : vector<1x1x128xf32> to vector<1x128xf32>
    %cst_50 = arith.constant dense<0.000000e+00> : vector<32xf32>
    %106 = vector.multi_reduction <add>, %101, %cst_50 [1] : vector<32x128xf32> to vector<32xf32>
    %107 = vector.shape_cast %106 : vector<32xf32> to vector<32x1xf32>
    %cst_51 = arith.constant 1.280000e+02 : f32
    %108 = vector.broadcast %cst_51 : f32 to vector<32x1xf32>
    %109 = arith.divf %107, %108 : vector<32x1xf32>
    %110 = vector.broadcast %109 : vector<32x1xf32> to vector<32x128xf32>
    %111 = arith.subf %101, %110 : vector<32x128xf32>
    %112 = arith.mulf %111, %111 : vector<32x128xf32>
    %cst_52 = arith.constant dense<0.000000e+00> : vector<32xf32>
    %113 = vector.multi_reduction <add>, %112, %cst_52 [1] : vector<32x128xf32> to vector<32xf32>
    %114 = vector.shape_cast %113 : vector<32xf32> to vector<32x1xf32>
    %cst_53 = arith.constant 1.280000e+02 : f32
    %115 = vector.broadcast %cst_53 : f32 to vector<32x1xf32>
    %116 = arith.divf %114, %115 : vector<32x1xf32>
    %117 = vector.broadcast %109 : vector<32x1xf32> to vector<32x128xf32>
    %118 = arith.subf %101, %117 : vector<32x128xf32>
    %cst_54 = arith.constant 9.99999974E-6 : f32
    %119 = vector.broadcast %cst_54 : f32 to vector<32x1xf32>
    %120 = arith.addf %116, %119 : vector<32x1xf32>
    %121 = math.rsqrt %120 : vector<32x1xf32>
    %122 = vector.broadcast %121 : vector<32x1xf32> to vector<32x128xf32>
    %123 = arith.mulf %118, %122 : vector<32x128xf32>
    %124 = vector.broadcast %103 : vector<1x128xf32> to vector<32x128xf32>
    %125 = arith.mulf %123, %124 : vector<32x128xf32>
    %126 = vector.broadcast %105 : vector<1x128xf32> to vector<32x128xf32>
    %127 = arith.addf %125, %126 : vector<32x128xf32>
    %128 = arith.truncf %127 : vector<32x128xf32> to vector<32x128xbf16>
    %c0_55 = arith.constant 0 : index
    %c0_56 = arith.constant 0 : index
    %c0_57 = arith.constant 0 : index
    %129 = vector.load %arg11[%c0_55, %c0_56, %c0_57] : memref<2x128x512xbf16, #tpu.memory_space<vmem>>, vector<1x128x512xbf16>
    %130 = vector.shape_cast %129 : vector<1x128x512xbf16> to vector<128x512xbf16>
    %cst_58 = arith.constant dense<0.000000e+00> : vector<32x512xf32>
    %131 = tpu.matmul %128, %130, %cst_58 {dimension_numbers = #tpu.dot_dimension_numbers<[1], [0], [0], [1], [0, 0, 1, 1], [], []>} : vector<32x128xbf16>, vector<128x512xbf16>, vector<32x512xf32> -> vector<32x512xf32>
    %c0_59 = arith.constant 0 : index
    %c0_60 = arith.constant 0 : index
    %c0_61 = arith.constant 0 : index
    %132 = vector.load %arg12[%c0_59, %c0_60, %c0_61] : memref<2x1x512xf32, #tpu.memory_space<vmem>>, vector<1x1x512xf32>
    %133 = vector.shape_cast %132 : vector<1x1x512xf32> to vector<1x512xf32>
    %134 = vector.broadcast %133 : vector<1x512xf32> to vector<32x512xf32>
    %135 = arith.addf %131, %134 : vector<32x512xf32>
    %cst_62 = arith.constant 0.000000e+00 : f32
    %136 = vector.broadcast %cst_62 : f32 to vector<32x512xf32>
    %137 = arith.maximumf %135, %136 : vector<32x512xf32>
    %138 = arith.truncf %137 : vector<32x512xf32> to vector<32x512xbf16>
    %c0_63 = arith.constant 0 : index
    %c0_64 = arith.constant 0 : index
    %c0_65 = arith.constant 0 : index
    %139 = vector.load %arg13[%c0_63, %c0_64, %c0_65] : memref<2x512x128xbf16, #tpu.memory_space<vmem>>, vector<1x512x128xbf16>
    %140 = vector.shape_cast %139 : vector<1x512x128xbf16> to vector<512x128xbf16>
    %cst_66 = arith.constant dense<0.000000e+00> : vector<32x128xf32>
    %141 = tpu.matmul %138, %140, %cst_66 {dimension_numbers = #tpu.dot_dimension_numbers<[1], [0], [0], [1], [0, 0, 1, 1], [], []>} : vector<32x512xbf16>, vector<512x128xbf16>, vector<32x128xf32> -> vector<32x128xf32>
    %c0_67 = arith.constant 0 : index
    %c0_68 = arith.constant 0 : index
    %c0_69 = arith.constant 0 : index
    %142 = vector.load %arg14[%c0_67, %c0_68, %c0_69] : memref<2x1x128xf32, #tpu.memory_space<vmem>>, vector<1x1x128xf32>
    %143 = vector.shape_cast %142 : vector<1x1x128xf32> to vector<1x128xf32>
    %144 = vector.broadcast %143 : vector<1x128xf32> to vector<32x128xf32>
    %145 = arith.addf %141, %144 : vector<32x128xf32>
    %146 = arith.addf %127, %145 : vector<32x128xf32>
    %c0_70 = arith.constant 0 : index
    %c0_71 = arith.constant 0 : index
    %c0_72 = arith.constant 0 : index
    %147 = vector.load %arg17[%c0_70, %c0_71, %c0_72] : memref<2x1x128xf32, #tpu.memory_space<vmem>>, vector<1x1x128xf32>
    %148 = vector.shape_cast %147 : vector<1x1x128xf32> to vector<1x128xf32>
    %c0_73 = arith.constant 0 : index
    %c0_74 = arith.constant 0 : index
    %c0_75 = arith.constant 0 : index
    %149 = vector.load %arg18[%c0_73, %c0_74, %c0_75] : memref<2x1x128xf32, #tpu.memory_space<vmem>>, vector<1x1x128xf32>
    %150 = vector.shape_cast %149 : vector<1x1x128xf32> to vector<1x128xf32>
    %cst_76 = arith.constant dense<0.000000e+00> : vector<32xf32>
    %151 = vector.multi_reduction <add>, %146, %cst_76 [1] : vector<32x128xf32> to vector<32xf32>
    %152 = vector.shape_cast %151 : vector<32xf32> to vector<32x1xf32>
    %cst_77 = arith.constant 1.280000e+02 : f32
    %153 = vector.broadcast %cst_77 : f32 to vector<32x1xf32>
    %154 = arith.divf %152, %153 : vector<32x1xf32>
    %155 = vector.broadcast %154 : vector<32x1xf32> to vector<32x128xf32>
    %156 = arith.subf %146, %155 : vector<32x128xf32>
    %157 = arith.mulf %156, %156 : vector<32x128xf32>
    %cst_78 = arith.constant dense<0.000000e+00> : vector<32xf32>
    %158 = vector.multi_reduction <add>, %157, %cst_78 [1] : vector<32x128xf32> to vector<32xf32>
    %159 = vector.shape_cast %158 : vector<32xf32> to vector<32x1xf32>
    %cst_79 = arith.constant 1.280000e+02 : f32
    %160 = vector.broadcast %cst_79 : f32 to vector<32x1xf32>
    %161 = arith.divf %159, %160 : vector<32x1xf32>
    %162 = vector.broadcast %154 : vector<32x1xf32> to vector<32x128xf32>
    %163 = arith.subf %146, %162 : vector<32x128xf32>
    %cst_80 = arith.constant 9.99999974E-6 : f32
    %164 = vector.broadcast %cst_80 : f32 to vector<32x1xf32>
    %165 = arith.addf %161, %164 : vector<32x1xf32>
    %166 = math.rsqrt %165 : vector<32x1xf32>
    %167 = vector.broadcast %166 : vector<32x1xf32> to vector<32x128xf32>
    %168 = arith.mulf %163, %167 : vector<32x128xf32>
    %169 = vector.broadcast %148 : vector<1x128xf32> to vector<32x128xf32>
    %170 = arith.mulf %168, %169 : vector<32x128xf32>
    %171 = vector.broadcast %150 : vector<1x128xf32> to vector<32x128xf32>
    %172 = arith.addf %170, %171 : vector<32x128xf32>
    %173 = arith.truncf %172 : vector<32x128xf32> to vector<32x128xbf16>
    %c1 = arith.constant 1 : index
    %c0_81 = arith.constant 0 : index
    %c0_82 = arith.constant 0 : index
    %174 = vector.load %arg7[%c1, %c0_81, %c0_82] : memref<2x128x384xbf16, #tpu.memory_space<vmem>>, vector<1x128x384xbf16>
    %175 = vector.shape_cast %174 : vector<1x128x384xbf16> to vector<128x384xbf16>
    %cst_83 = arith.constant dense<0.000000e+00> : vector<32x384xf32>
    %176 = tpu.matmul %173, %175, %cst_83 {dimension_numbers = #tpu.dot_dimension_numbers<[1], [0], [0], [1], [0, 0, 1, 1], [], []>} : vector<32x128xbf16>, vector<128x384xbf16>, vector<32x384xf32> -> vector<32x384xf32>
    %c1_84 = arith.constant 1 : index
    %c0_85 = arith.constant 0 : index
    %c0_86 = arith.constant 0 : index
    %177 = vector.load %arg8[%c1_84, %c0_85, %c0_86] : memref<2x1x384xf32, #tpu.memory_space<vmem>>, vector<1x1x384xf32>
    %178 = vector.shape_cast %177 : vector<1x1x384xf32> to vector<1x384xf32>
    %179 = vector.broadcast %178 : vector<1x384xf32> to vector<32x384xf32>
    %180 = arith.addf %176, %179 : vector<32x384xf32>
    %181 = arith.truncf %180 : vector<32x384xf32> to vector<32x384xbf16>
    %182 = vector.extract_strided_slice %181 {offsets = [0, 0], sizes = [32, 32], strides = [1, 1]} : vector<32x384xbf16> to vector<32x32xbf16>
    %183 = vector.extract_strided_slice %181 {offsets = [0, 128], sizes = [32, 32], strides = [1, 1]} : vector<32x384xbf16> to vector<32x32xbf16>
    %184 = vector.extract_strided_slice %181 {offsets = [0, 256], sizes = [32, 32], strides = [1, 1]} : vector<32x384xbf16> to vector<32x32xbf16>
    %185 = tpu.transpose %183, [1, 0] : vector<32x32xbf16> -> vector<32x32xbf16>
    %cst_87 = arith.constant dense<0.000000e+00> : vector<32x32xf32>
    %186 = tpu.matmul %182, %185, %cst_87 {dimension_numbers = #tpu.dot_dimension_numbers<[1], [0], [0], [1], [0, 0, 1, 1], [], []>} : vector<32x32xbf16>, vector<32x32xbf16>, vector<32x32xf32> -> vector<32x32xf32>
    %187 = arith.addf %186, %0 : vector<32x32xf32>
    %cst_88 = arith.constant dense<0xFF800000> : vector<32xf32>
    %188 = vector.multi_reduction <maximumf>, %187, %cst_88 [1] : vector<32x32xf32> to vector<32xf32>
    %189 = vector.shape_cast %188 : vector<32xf32> to vector<32x1xf32>
    %190 = vector.broadcast %189 : vector<32x1xf32> to vector<32x32xf32>
    %191 = arith.subf %187, %190 : vector<32x32xf32>
    %192 = math.exp %191 : vector<32x32xf32>
    %cst_89 = arith.constant dense<0.000000e+00> : vector<32xf32>
    %193 = vector.multi_reduction <add>, %192, %cst_89 [1] : vector<32x32xf32> to vector<32xf32>
    %194 = vector.shape_cast %193 : vector<32xf32> to vector<32x1xf32>
    %195 = arith.truncf %192 : vector<32x32xf32> to vector<32x32xbf16>
    %cst_90 = arith.constant dense<0.000000e+00> : vector<32x32xf32>
    %196 = tpu.matmul %195, %184, %cst_90 {dimension_numbers = #tpu.dot_dimension_numbers<[1], [0], [0], [1], [0, 0, 1, 1], [], []>} : vector<32x32xbf16>, vector<32x32xbf16>, vector<32x32xf32> -> vector<32x32xf32>
    %197 = tpu.reciprocal %194 {approx = true} : vector<32x1xf32> -> vector<32x1xf32>
    %198 = vector.broadcast %197 : vector<32x1xf32> to vector<32x32xf32>
    %199 = arith.mulf %196, %198 : vector<32x32xf32>
    %c0_91 = arith.constant 0 : index
    %c0_92 = arith.constant 0 : index
    %200 = vector.load %arg31[%c0_91, %c0_92] : memref<32x128xf32, #tpu.memory_space<vmem>>, vector<32x32xf32>
    tpu.vector_store %arg31[%c0_91, %c0_92], %199 {strides = array<i32>} : memref<32x128xf32, #tpu.memory_space<vmem>>, vector<32x32xf32>,
    %201 = vector.extract_strided_slice %181 {offsets = [0, 32], sizes = [32, 32], strides = [1, 1]} : vector<32x384xbf16> to vector<32x32xbf16>
    %202 = vector.extract_strided_slice %181 {offsets = [0, 160], sizes = [32, 32], strides = [1, 1]} : vector<32x384xbf16> to vector<32x32xbf16>
    %203 = vector.extract_strided_slice %181 {offsets = [0, 288], sizes = [32, 32], strides = [1, 1]} : vector<32x384xbf16> to vector<32x32xbf16>
    %204 = tpu.transpose %202, [1, 0] : vector<32x32xbf16> -> vector<32x32xbf16>
    %cst_93 = arith.constant dense<0.000000e+00> : vector<32x32xf32>
    %205 = tpu.matmul %201, %204, %cst_93 {dimension_numbers = #tpu.dot_dimension_numbers<[1], [0], [0], [1], [0, 0, 1, 1], [], []>} : vector<32x32xbf16>, vector<32x32xbf16>, vector<32x32xf32> -> vector<32x32xf32>
    %206 = arith.addf %205, %0 : vector<32x32xf32>
    %cst_94 = arith.constant dense<0xFF800000> : vector<32xf32>
    %207 = vector.multi_reduction <maximumf>, %206, %cst_94 [1] : vector<32x32xf32> to vector<32xf32>
    %208 = vector.shape_cast %207 : vector<32xf32> to vector<32x1xf32>
    %209 = vector.broadcast %208 : vector<32x1xf32> to vector<32x32xf32>
    %210 = arith.subf %206, %209 : vector<32x32xf32>
    %211 = math.exp %210 : vector<32x32xf32>
    %cst_95 = arith.constant dense<0.000000e+00> : vector<32xf32>
    %212 = vector.multi_reduction <add>, %211, %cst_95 [1] : vector<32x32xf32> to vector<32xf32>
    %213 = vector.shape_cast %212 : vector<32xf32> to vector<32x1xf32>
    %214 = arith.truncf %211 : vector<32x32xf32> to vector<32x32xbf16>
    %cst_96 = arith.constant dense<0.000000e+00> : vector<32x32xf32>
    %215 = tpu.matmul %214, %203, %cst_96 {dimension_numbers = #tpu.dot_dimension_numbers<[1], [0], [0], [1], [0, 0, 1, 1], [], []>} : vector<32x32xbf16>, vector<32x32xbf16>, vector<32x32xf32> -> vector<32x32xf32>
    %216 = tpu.reciprocal %213 {approx = true} : vector<32x1xf32> -> vector<32x1xf32>
    %217 = vector.broadcast %216 : vector<32x1xf32> to vector<32x32xf32>
    %218 = arith.mulf %215, %217 : vector<32x32xf32>
    %c0_97 = arith.constant 0 : index
    %c32_98 = arith.constant 32 : index
    %219 = vector.load %arg31[%c0_97, %c32_98] : memref<32x128xf32, #tpu.memory_space<vmem>>, vector<32x32xf32>
    tpu.vector_store %arg31[%c0_97, %c32_98], %218 {strides = array<i32>} : memref<32x128xf32, #tpu.memory_space<vmem>>, vector<32x32xf32>,
    %220 = vector.extract_strided_slice %181 {offsets = [0, 64], sizes = [32, 32], strides = [1, 1]} : vector<32x384xbf16> to vector<32x32xbf16>
    %221 = vector.extract_strided_slice %181 {offsets = [0, 192], sizes = [32, 32], strides = [1, 1]} : vector<32x384xbf16> to vector<32x32xbf16>
    %222 = vector.extract_strided_slice %181 {offsets = [0, 320], sizes = [32, 32], strides = [1, 1]} : vector<32x384xbf16> to vector<32x32xbf16>
    %223 = tpu.transpose %221, [1, 0] : vector<32x32xbf16> -> vector<32x32xbf16>
    %cst_99 = arith.constant dense<0.000000e+00> : vector<32x32xf32>
    %224 = tpu.matmul %220, %223, %cst_99 {dimension_numbers = #tpu.dot_dimension_numbers<[1], [0], [0], [1], [0, 0, 1, 1], [], []>} : vector<32x32xbf16>, vector<32x32xbf16>, vector<32x32xf32> -> vector<32x32xf32>
    %225 = arith.addf %224, %0 : vector<32x32xf32>
    %cst_100 = arith.constant dense<0xFF800000> : vector<32xf32>
    %226 = vector.multi_reduction <maximumf>, %225, %cst_100 [1] : vector<32x32xf32> to vector<32xf32>
    %227 = vector.shape_cast %226 : vector<32xf32> to vector<32x1xf32>
    %228 = vector.broadcast %227 : vector<32x1xf32> to vector<32x32xf32>
    %229 = arith.subf %225, %228 : vector<32x32xf32>
    %230 = math.exp %229 : vector<32x32xf32>
    %cst_101 = arith.constant dense<0.000000e+00> : vector<32xf32>
    %231 = vector.multi_reduction <add>, %230, %cst_101 [1] : vector<32x32xf32> to vector<32xf32>
    %232 = vector.shape_cast %231 : vector<32xf32> to vector<32x1xf32>
    %233 = arith.truncf %230 : vector<32x32xf32> to vector<32x32xbf16>
    %cst_102 = arith.constant dense<0.000000e+00> : vector<32x32xf32>
    %234 = tpu.matmul %233, %222, %cst_102 {dimension_numbers = #tpu.dot_dimension_numbers<[1], [0], [0], [1], [0, 0, 1, 1], [], []>} : vector<32x32xbf16>, vector<32x32xbf16>, vector<32x32xf32> -> vector<32x32xf32>
    %235 = tpu.reciprocal %232 {approx = true} : vector<32x1xf32> -> vector<32x1xf32>
    %236 = vector.broadcast %235 : vector<32x1xf32> to vector<32x32xf32>
    %237 = arith.mulf %234, %236 : vector<32x32xf32>
    %c0_103 = arith.constant 0 : index
    %c64_104 = arith.constant 64 : index
    %238 = vector.load %arg31[%c0_103, %c64_104] : memref<32x128xf32, #tpu.memory_space<vmem>>, vector<32x32xf32>
    tpu.vector_store %arg31[%c0_103, %c64_104], %237 {strides = array<i32>} : memref<32x128xf32, #tpu.memory_space<vmem>>, vector<32x32xf32>,
    %239 = vector.extract_strided_slice %181 {offsets = [0, 96], sizes = [32, 32], strides = [1, 1]} : vector<32x384xbf16> to vector<32x32xbf16>
    %240 = vector.extract_strided_slice %181 {offsets = [0, 224], sizes = [32, 32], strides = [1, 1]} : vector<32x384xbf16> to vector<32x32xbf16>
    %241 = vector.extract_strided_slice %181 {offsets = [0, 352], sizes = [32, 32], strides = [1, 1]} : vector<32x384xbf16> to vector<32x32xbf16>
    %242 = tpu.transpose %240, [1, 0] : vector<32x32xbf16> -> vector<32x32xbf16>
    %cst_105 = arith.constant dense<0.000000e+00> : vector<32x32xf32>
    %243 = tpu.matmul %239, %242, %cst_105 {dimension_numbers = #tpu.dot_dimension_numbers<[1], [0], [0], [1], [0, 0, 1, 1], [], []>} : vector<32x32xbf16>, vector<32x32xbf16>, vector<32x32xf32> -> vector<32x32xf32>
    %244 = arith.addf %243, %0 : vector<32x32xf32>
    %cst_106 = arith.constant dense<0xFF800000> : vector<32xf32>
    %245 = vector.multi_reduction <maximumf>, %244, %cst_106 [1] : vector<32x32xf32> to vector<32xf32>
    %246 = vector.shape_cast %245 : vector<32xf32> to vector<32x1xf32>
    %247 = vector.broadcast %246 : vector<32x1xf32> to vector<32x32xf32>
    %248 = arith.subf %244, %247 : vector<32x32xf32>
    %249 = math.exp %248 : vector<32x32xf32>
    %cst_107 = arith.constant dense<0.000000e+00> : vector<32xf32>
    %250 = vector.multi_reduction <add>, %249, %cst_107 [1] : vector<32x32xf32> to vector<32xf32>
    %251 = vector.shape_cast %250 : vector<32xf32> to vector<32x1xf32>
    %252 = arith.truncf %249 : vector<32x32xf32> to vector<32x32xbf16>
    %cst_108 = arith.constant dense<0.000000e+00> : vector<32x32xf32>
    %253 = tpu.matmul %252, %241, %cst_108 {dimension_numbers = #tpu.dot_dimension_numbers<[1], [0], [0], [1], [0, 0, 1, 1], [], []>} : vector<32x32xbf16>, vector<32x32xbf16>, vector<32x32xf32> -> vector<32x32xf32>
    %254 = tpu.reciprocal %251 {approx = true} : vector<32x1xf32> -> vector<32x1xf32>
    %255 = vector.broadcast %254 : vector<32x1xf32> to vector<32x32xf32>
    %256 = arith.mulf %253, %255 : vector<32x32xf32>
    %c0_109 = arith.constant 0 : index
    %c96_110 = arith.constant 96 : index
    %257 = vector.load %arg31[%c0_109, %c96_110] : memref<32x128xf32, #tpu.memory_space<vmem>>, vector<32x32xf32>
    tpu.vector_store %arg31[%c0_109, %c96_110], %256 {strides = array<i32>} : memref<32x128xf32, #tpu.memory_space<vmem>>, vector<32x32xf32>,
    %c0_111 = arith.constant 0 : index
    %c0_112 = arith.constant 0 : index
    %258 = vector.load %arg31[%c0_111, %c0_112] : memref<32x128xf32, #tpu.memory_space<vmem>>, vector<32x128xf32>
    %259 = arith.truncf %258 : vector<32x128xf32> to vector<32x128xbf16>
    %c1_113 = arith.constant 1 : index
    %c0_114 = arith.constant 0 : index
    %c0_115 = arith.constant 0 : index
    %260 = vector.load %arg9[%c1_113, %c0_114, %c0_115] : memref<2x128x128xbf16, #tpu.memory_space<vmem>>, vector<1x128x128xbf16>
    %261 = vector.shape_cast %260 : vector<1x128x128xbf16> to vector<128x128xbf16>
    %cst_116 = arith.constant dense<0.000000e+00> : vector<32x128xf32>
    %262 = tpu.matmul %259, %261, %cst_116 {dimension_numbers = #tpu.dot_dimension_numbers<[1], [0], [0], [1], [0, 0, 1, 1], [], []>} : vector<32x128xbf16>, vector<128x128xbf16>, vector<32x128xf32> -> vector<32x128xf32>
    %c1_117 = arith.constant 1 : index
    %c0_118 = arith.constant 0 : index
    %c0_119 = arith.constant 0 : index
    %263 = vector.load %arg10[%c1_117, %c0_118, %c0_119] : memref<2x1x128xf32, #tpu.memory_space<vmem>>, vector<1x1x128xf32>
    %264 = vector.shape_cast %263 : vector<1x1x128xf32> to vector<1x128xf32>
    %265 = vector.broadcast %264 : vector<1x128xf32> to vector<32x128xf32>
    %266 = arith.addf %262, %265 : vector<32x128xf32>
    %267 = arith.addf %172, %266 : vector<32x128xf32>
    %c1_120 = arith.constant 1 : index
    %c0_121 = arith.constant 0 : index
    %c0_122 = arith.constant 0 : index
    %268 = vector.load %arg15[%c1_120, %c0_121, %c0_122] : memref<2x1x128xf32, #tpu.memory_space<vmem>>, vector<1x1x128xf32>
    %269 = vector.shape_cast %268 : vector<1x1x128xf32> to vector<1x128xf32>
    %c1_123 = arith.constant 1 : index
    %c0_124 = arith.constant 0 : index
    %c0_125 = arith.constant 0 : index
    %270 = vector.load %arg16[%c1_123, %c0_124, %c0_125] : memref<2x1x128xf32, #tpu.memory_space<vmem>>, vector<1x1x128xf32>
    %271 = vector.shape_cast %270 : vector<1x1x128xf32> to vector<1x128xf32>
    %cst_126 = arith.constant dense<0.000000e+00> : vector<32xf32>
    %272 = vector.multi_reduction <add>, %267, %cst_126 [1] : vector<32x128xf32> to vector<32xf32>
    %273 = vector.shape_cast %272 : vector<32xf32> to vector<32x1xf32>
    %cst_127 = arith.constant 1.280000e+02 : f32
    %274 = vector.broadcast %cst_127 : f32 to vector<32x1xf32>
    %275 = arith.divf %273, %274 : vector<32x1xf32>
    %276 = vector.broadcast %275 : vector<32x1xf32> to vector<32x128xf32>
    %277 = arith.subf %267, %276 : vector<32x128xf32>
    %278 = arith.mulf %277, %277 : vector<32x128xf32>
    %cst_128 = arith.constant dense<0.000000e+00> : vector<32xf32>
    %279 = vector.multi_reduction <add>, %278, %cst_128 [1] : vector<32x128xf32> to vector<32xf32>
    %280 = vector.shape_cast %279 : vector<32xf32> to vector<32x1xf32>
    %cst_129 = arith.constant 1.280000e+02 : f32
    %281 = vector.broadcast %cst_129 : f32 to vector<32x1xf32>
    %282 = arith.divf %280, %281 : vector<32x1xf32>
    %283 = vector.broadcast %275 : vector<32x1xf32> to vector<32x128xf32>
    %284 = arith.subf %267, %283 : vector<32x128xf32>
    %cst_130 = arith.constant 9.99999974E-6 : f32
    %285 = vector.broadcast %cst_130 : f32 to vector<32x1xf32>
    %286 = arith.addf %282, %285 : vector<32x1xf32>
    %287 = math.rsqrt %286 : vector<32x1xf32>
    %288 = vector.broadcast %287 : vector<32x1xf32> to vector<32x128xf32>
    %289 = arith.mulf %284, %288 : vector<32x128xf32>
    %290 = vector.broadcast %269 : vector<1x128xf32> to vector<32x128xf32>
    %291 = arith.mulf %289, %290 : vector<32x128xf32>
    %292 = vector.broadcast %271 : vector<1x128xf32> to vector<32x128xf32>
    %293 = arith.addf %291, %292 : vector<32x128xf32>
    %294 = arith.truncf %293 : vector<32x128xf32> to vector<32x128xbf16>
    %c1_131 = arith.constant 1 : index
    %c0_132 = arith.constant 0 : index
    %c0_133 = arith.constant 0 : index
    %295 = vector.load %arg11[%c1_131, %c0_132, %c0_133] : memref<2x128x512xbf16, #tpu.memory_space<vmem>>, vector<1x128x512xbf16>
    %296 = vector.shape_cast %295 : vector<1x128x512xbf16> to vector<128x512xbf16>
    %cst_134 = arith.constant dense<0.000000e+00> : vector<32x512xf32>
    %297 = tpu.matmul %294, %296, %cst_134 {dimension_numbers = #tpu.dot_dimension_numbers<[1], [0], [0], [1], [0, 0, 1, 1], [], []>} : vector<32x128xbf16>, vector<128x512xbf16>, vector<32x512xf32> -> vector<32x512xf32>
    %c1_135 = arith.constant 1 : index
    %c0_136 = arith.constant 0 : index
    %c0_137 = arith.constant 0 : index
    %298 = vector.load %arg12[%c1_135, %c0_136, %c0_137] : memref<2x1x512xf32, #tpu.memory_space<vmem>>, vector<1x1x512xf32>
    %299 = vector.shape_cast %298 : vector<1x1x512xf32> to vector<1x512xf32>
    %300 = vector.broadcast %299 : vector<1x512xf32> to vector<32x512xf32>
    %301 = arith.addf %297, %300 : vector<32x512xf32>
    %cst_138 = arith.constant 0.000000e+00 : f32
    %302 = vector.broadcast %cst_138 : f32 to vector<32x512xf32>
    %303 = arith.maximumf %301, %302 : vector<32x512xf32>
    %304 = arith.truncf %303 : vector<32x512xf32> to vector<32x512xbf16>
    %c1_139 = arith.constant 1 : index
    %c0_140 = arith.constant 0 : index
    %c0_141 = arith.constant 0 : index
    %305 = vector.load %arg13[%c1_139, %c0_140, %c0_141] : memref<2x512x128xbf16, #tpu.memory_space<vmem>>, vector<1x512x128xbf16>
    %306 = vector.shape_cast %305 : vector<1x512x128xbf16> to vector<512x128xbf16>
    %cst_142 = arith.constant dense<0.000000e+00> : vector<32x128xf32>
    %307 = tpu.matmul %304, %306, %cst_142 {dimension_numbers = #tpu.dot_dimension_numbers<[1], [0], [0], [1], [0, 0, 1, 1], [], []>} : vector<32x512xbf16>, vector<512x128xbf16>, vector<32x128xf32> -> vector<32x128xf32>
    %c1_143 = arith.constant 1 : index
    %c0_144 = arith.constant 0 : index
    %c0_145 = arith.constant 0 : index
    %308 = vector.load %arg14[%c1_143, %c0_144, %c0_145] : memref<2x1x128xf32, #tpu.memory_space<vmem>>, vector<1x1x128xf32>
    %309 = vector.shape_cast %308 : vector<1x1x128xf32> to vector<1x128xf32>
    %310 = vector.broadcast %309 : vector<1x128xf32> to vector<32x128xf32>
    %311 = arith.addf %307, %310 : vector<32x128xf32>
    %312 = arith.addf %293, %311 : vector<32x128xf32>
    %c1_146 = arith.constant 1 : index
    %c0_147 = arith.constant 0 : index
    %c0_148 = arith.constant 0 : index
    %313 = vector.load %arg17[%c1_146, %c0_147, %c0_148] : memref<2x1x128xf32, #tpu.memory_space<vmem>>, vector<1x1x128xf32>
    %314 = vector.shape_cast %313 : vector<1x1x128xf32> to vector<1x128xf32>
    %c1_149 = arith.constant 1 : index
    %c0_150 = arith.constant 0 : index
    %c0_151 = arith.constant 0 : index
    %315 = vector.load %arg18[%c1_149, %c0_150, %c0_151] : memref<2x1x128xf32, #tpu.memory_space<vmem>>, vector<1x1x128xf32>
    %316 = vector.shape_cast %315 : vector<1x1x128xf32> to vector<1x128xf32>
    %cst_152 = arith.constant dense<0.000000e+00> : vector<32xf32>
    %317 = vector.multi_reduction <add>, %312, %cst_152 [1] : vector<32x128xf32> to vector<32xf32>
    %318 = vector.shape_cast %317 : vector<32xf32> to vector<32x1xf32>
    %cst_153 = arith.constant 1.280000e+02 : f32
    %319 = vector.broadcast %cst_153 : f32 to vector<32x1xf32>
    %320 = arith.divf %318, %319 : vector<32x1xf32>
    %321 = vector.broadcast %320 : vector<32x1xf32> to vector<32x128xf32>
    %322 = arith.subf %312, %321 : vector<32x128xf32>
    %323 = arith.mulf %322, %322 : vector<32x128xf32>
    %cst_154 = arith.constant dense<0.000000e+00> : vector<32xf32>
    %324 = vector.multi_reduction <add>, %323, %cst_154 [1] : vector<32x128xf32> to vector<32xf32>
    %325 = vector.shape_cast %324 : vector<32xf32> to vector<32x1xf32>
    %cst_155 = arith.constant 1.280000e+02 : f32
    %326 = vector.broadcast %cst_155 : f32 to vector<32x1xf32>
    %327 = arith.divf %325, %326 : vector<32x1xf32>
    %328 = vector.broadcast %320 : vector<32x1xf32> to vector<32x128xf32>
    %329 = arith.subf %312, %328 : vector<32x128xf32>
    %cst_156 = arith.constant 9.99999974E-6 : f32
    %330 = vector.broadcast %cst_156 : f32 to vector<32x1xf32>
    %331 = arith.addf %327, %330 : vector<32x1xf32>
    %332 = math.rsqrt %331 : vector<32x1xf32>
    %333 = vector.broadcast %332 : vector<32x1xf32> to vector<32x128xf32>
    %334 = arith.mulf %329, %333 : vector<32x128xf32>
    %335 = vector.broadcast %314 : vector<1x128xf32> to vector<32x128xf32>
    %336 = arith.mulf %334, %335 : vector<32x128xf32>
    %337 = vector.broadcast %316 : vector<1x128xf32> to vector<32x128xf32>
    %338 = arith.addf %336, %337 : vector<32x128xf32>
    %c0_157 = arith.constant 0 : index
    %c0_158 = arith.constant 0 : index
    %339 = vector.load %arg3[%c0_157, %c0_158] : memref<2x32xf32, #tpu.memory_space<vmem>>, vector<2x32xf32>
    %cst_159 = arith.constant dense<0.000000e+00> : vector<2x128xf32>
    %340 = tpu.matmul %339, %338, %cst_159 {dimension_numbers = #tpu.dot_dimension_numbers<[1], [0], [0], [1], [0, 0, 1, 1], [], []>} : vector<2x32xf32>, vector<32x128xf32>, vector<2x128xf32> -> vector<2x128xf32>
    %c0_160 = arith.constant 0 : index
    %c0_161 = arith.constant 0 : index
    %341 = vector.load %arg4[%c0_160, %c0_161] : memref<2x33xf32, #tpu.memory_space<vmem>>, vector<2x33xf32>
    %c0_162 = arith.constant 0 : index
    %c0_163 = arith.constant 0 : index
    %342 = vector.load %arg19[%c0_162, %c0_163] : memref<33x128xf32, #tpu.memory_space<vmem>>, vector<33x128xf32>
    %cst_164 = arith.constant dense<0.000000e+00> : vector<2x128xf32>
    %343 = tpu.matmul %341, %342, %cst_164 {dimension_numbers = #tpu.dot_dimension_numbers<[1], [0], [0], [1], [0, 0, 1, 1], [], []>} : vector<2x33xf32>, vector<33x128xf32>, vector<2x128xf32> -> vector<2x128xf32>
    %c0_165 = arith.constant 0 : index
    %c0_166 = arith.constant 0 : index
    %344 = vector.load %arg20[%c0_165, %c0_166] : memref<1x128xf32, #tpu.memory_space<vmem>>, vector<1x128xf32>
    %345 = vector.broadcast %344 : vector<1x128xf32> to vector<2x128xf32>
    %346 = arith.addf %343, %345 : vector<2x128xf32>
    %cst_167 = arith.constant 0.000000e+00 : f32
    %347 = vector.broadcast %cst_167 : f32 to vector<2x128xf32>
    %348 = arith.maximumf %346, %347 : vector<2x128xf32>
    %c0_168 = arith.constant 0 : index
    %c0_169 = arith.constant 0 : index
    %349 = vector.load %arg21[%c0_168, %c0_169] : memref<128x128xf32, #tpu.memory_space<vmem>>, vector<128x128xf32>
    %cst_170 = arith.constant dense<0.000000e+00> : vector<2x128xf32>
    %350 = tpu.matmul %348, %349, %cst_170 {dimension_numbers = #tpu.dot_dimension_numbers<[1], [0], [0], [1], [0, 0, 1, 1], [], []>} : vector<2x128xf32>, vector<128x128xf32>, vector<2x128xf32> -> vector<2x128xf32>
    %c0_171 = arith.constant 0 : index
    %c0_172 = arith.constant 0 : index
    %351 = vector.load %arg22[%c0_171, %c0_172] : memref<1x128xf32, #tpu.memory_space<vmem>>, vector<1x128xf32>
    %352 = vector.broadcast %351 : vector<1x128xf32> to vector<2x128xf32>
    %353 = arith.addf %350, %352 : vector<2x128xf32>
    %cst_173 = arith.constant 0.000000e+00 : f32
    %354 = vector.broadcast %cst_173 : f32 to vector<2x128xf32>
    %355 = arith.maximumf %353, %354 : vector<2x128xf32>
    %c0_174 = arith.constant 0 : index
    %c0_175 = arith.constant 0 : index
    %356 = vector.load %arg23[%c0_174, %c0_175] : memref<128x128xf32, #tpu.memory_space<vmem>>, vector<128x128xf32>
    %cst_176 = arith.constant dense<0.000000e+00> : vector<2x128xf32>
    %357 = tpu.matmul %340, %356, %cst_176 {dimension_numbers = #tpu.dot_dimension_numbers<[1], [0], [0], [1], [0, 0, 1, 1], [], []>} : vector<2x128xf32>, vector<128x128xf32>, vector<2x128xf32> -> vector<2x128xf32>
    %c0_177 = arith.constant 0 : index
    %c0_178 = arith.constant 0 : index
    %358 = vector.load %arg24[%c0_177, %c0_178] : memref<128x128xf32, #tpu.memory_space<vmem>>, vector<128x128xf32>
    %cst_179 = arith.constant dense<0.000000e+00> : vector<2x128xf32>
    %359 = tpu.matmul %355, %358, %cst_179 {dimension_numbers = #tpu.dot_dimension_numbers<[1], [0], [0], [1], [0, 0, 1, 1], [], []>} : vector<2x128xf32>, vector<128x128xf32>, vector<2x128xf32> -> vector<2x128xf32>
    %360 = arith.addf %357, %359 : vector<2x128xf32>
    %c0_180 = arith.constant 0 : index
    %c0_181 = arith.constant 0 : index
    %361 = vector.load %arg25[%c0_180, %c0_181] : memref<1x128xf32, #tpu.memory_space<vmem>>, vector<1x128xf32>
    %362 = vector.broadcast %361 : vector<1x128xf32> to vector<2x128xf32>
    %363 = arith.addf %360, %362 : vector<2x128xf32>
    %cst_182 = arith.constant 0.000000e+00 : f32
    %364 = vector.broadcast %cst_182 : f32 to vector<2x128xf32>
    %365 = arith.maximumf %363, %364 : vector<2x128xf32>
    %c0_183 = arith.constant 0 : index
    %c0_184 = arith.constant 0 : index
    %366 = vector.load %arg26[%c0_183, %c0_184] : memref<128x64xf32, #tpu.memory_space<vmem>>, vector<128x64xf32>
    %cst_185 = arith.constant dense<0.000000e+00> : vector<2x64xf32>
    %367 = tpu.matmul %365, %366, %cst_185 {dimension_numbers = #tpu.dot_dimension_numbers<[1], [0], [0], [1], [0, 0, 1, 1], [], []>} : vector<2x128xf32>, vector<128x64xf32>, vector<2x64xf32> -> vector<2x64xf32>
    %c0_186 = arith.constant 0 : index
    %c0_187 = arith.constant 0 : index
    %368 = vector.load %arg27[%c0_186, %c0_187] : memref<1x64xf32, #tpu.memory_space<vmem>>, vector<1x64xf32>
    %369 = vector.broadcast %368 : vector<1x64xf32> to vector<2x64xf32>
    %370 = arith.addf %367, %369 : vector<2x64xf32>
    %cst_188 = arith.constant 0.000000e+00 : f32
    %371 = vector.broadcast %cst_188 : f32 to vector<2x64xf32>
    %372 = arith.maximumf %370, %371 : vector<2x64xf32>
    %c0_189 = arith.constant 0 : index
    %c0_190 = arith.constant 0 : index
    %373 = vector.load %arg28[%c0_189, %c0_190] : memref<64x128xf32, #tpu.memory_space<vmem>>, vector<64x128xf32>
    %cst_191 = arith.constant dense<0.000000e+00> : vector<2x128xf32>
    %374 = tpu.matmul %372, %373, %cst_191 {dimension_numbers = #tpu.dot_dimension_numbers<[1], [0], [0], [1], [0, 0, 1, 1], [], []>} : vector<2x64xf32>, vector<64x128xf32>, vector<2x128xf32> -> vector<2x128xf32>
    %c0_192 = arith.constant 0 : index
    %c0_193 = arith.constant 0 : index
    %375 = vector.load %arg29[%c0_192, %c0_193] : memref<1x128xf32, #tpu.memory_space<vmem>>, vector<1x128xf32>
    %376 = vector.broadcast %375 : vector<1x128xf32> to vector<2x128xf32>
    %377 = arith.addf %374, %376 : vector<2x128xf32>
    %c0_194 = arith.constant 0 : index
    %c0_195 = arith.constant 0 : index
    %378 = vector.load %arg30[%c0_194, %c0_195] : memref<2x128xf32, #tpu.memory_space<vmem>>, vector<2x128xf32>
    tpu.vector_store %arg30[%c0_194, %c0_195], %377 {strides = array<i32>} : memref<2x128xf32, #tpu.memory_space<vmem>>, vector<2x128xf32>,
    return
  }
  func.func @transform_0(%arg0: i32) -> (i32, i32) {
    %c0_i32 = arith.constant 0 : i32
    %c0_i32_0 = arith.constant 0 : i32
    %c0_i32_1 = arith.constant 0 : i32
    return %c0_i32, %c0_i32_0 : i32, i32
  }
  func.func @transform_1(%arg0: i32) -> (i32, i32) {
    %c0_i32 = arith.constant 0 : i32
    %c0_i32_0 = arith.constant 0 : i32
    %c0_i32_1 = arith.constant 0 : i32
    return %c0_i32, %c0_i32_0 : i32, i32
  }
  func.func @transform_2(%arg0: i32) -> (i32, i32) {
    %c0_i32 = arith.constant 0 : i32
    %c0_i32_0 = arith.constant 0 : i32
    %c0_i32_1 = arith.constant 0 : i32
    return %c0_i32, %c0_i32_0 : i32, i32
  }
  func.func @transform_3(%arg0: i32) -> (i32, i32) {
    %c0_i32 = arith.constant 0 : i32
    %c0_i32_0 = arith.constant 0 : i32
    %c0_i32_1 = arith.constant 0 : i32
    return %c0_i32, %c0_i32_0 : i32, i32
  }
  func.func @transform_4(%arg0: i32) -> (i32, i32) {
    %c0_i32 = arith.constant 0 : i32
    %c0_i32_0 = arith.constant 0 : i32
    %c0_i32_1 = arith.constant 0 : i32
    return %c0_i32, %c0_i32_0 : i32, i32
  }
  func.func @transform_5(%arg0: i32) -> (i32, i32) {
    %c0_i32 = arith.constant 0 : i32
    %c0_i32_0 = arith.constant 0 : i32
    %c0_i32_1 = arith.constant 0 : i32
    return %c0_i32, %c0_i32_0 : i32, i32
  }
  func.func @transform_6(%arg0: i32) -> (i32, i32, i32) {
    %c0_i32 = arith.constant 0 : i32
    %c0_i32_0 = arith.constant 0 : i32
    %c0_i32_1 = arith.constant 0 : i32
    %c0_i32_2 = arith.constant 0 : i32
    return %c0_i32, %c0_i32_0, %c0_i32_1 : i32, i32, i32
  }
  func.func @transform_7(%arg0: i32) -> (i32, i32, i32) {
    %c0_i32 = arith.constant 0 : i32
    %c0_i32_0 = arith.constant 0 : i32
    %c0_i32_1 = arith.constant 0 : i32
    %c0_i32_2 = arith.constant 0 : i32
    return %c0_i32, %c0_i32_0, %c0_i32_1 : i32, i32, i32
  }
  func.func @transform_8(%arg0: i32) -> (i32, i32, i32) {
    %c0_i32 = arith.constant 0 : i32
    %c0_i32_0 = arith.constant 0 : i32
    %c0_i32_1 = arith.constant 0 : i32
    %c0_i32_2 = arith.constant 0 : i32
    return %c0_i32, %c0_i32_0, %c0_i32_1 : i32, i32, i32
  }
  func.func @transform_9(%arg0: i32) -> (i32, i32, i32) {
    %c0_i32 = arith.constant 0 : i32
    %c0_i32_0 = arith.constant 0 : i32
    %c0_i32_1 = arith.constant 0 : i32
    %c0_i32_2 = arith.constant 0 : i32
    return %c0_i32, %c0_i32_0, %c0_i32_1 : i32, i32, i32
  }
  func.func @transform_10(%arg0: i32) -> (i32, i32, i32) {
    %c0_i32 = arith.constant 0 : i32
    %c0_i32_0 = arith.constant 0 : i32
    %c0_i32_1 = arith.constant 0 : i32
    %c0_i32_2 = arith.constant 0 : i32
    return %c0_i32, %c0_i32_0, %c0_i32_1 : i32, i32, i32
  }
  func.func @transform_11(%arg0: i32) -> (i32, i32, i32) {
    %c0_i32 = arith.constant 0 : i32
    %c0_i32_0 = arith.constant 0 : i32
    %c0_i32_1 = arith.constant 0 : i32
    %c0_i32_2 = arith.constant 0 : i32
    return %c0_i32, %c0_i32_0, %c0_i32_1 : i32, i32, i32
  }
  func.func @transform_12(%arg0: i32) -> (i32, i32, i32) {
    %c0_i32 = arith.constant 0 : i32
    %c0_i32_0 = arith.constant 0 : i32
    %c0_i32_1 = arith.constant 0 : i32
    %c0_i32_2 = arith.constant 0 : i32
    return %c0_i32, %c0_i32_0, %c0_i32_1 : i32, i32, i32
  }
  func.func @transform_13(%arg0: i32) -> (i32, i32, i32) {
    %c0_i32 = arith.constant 0 : i32
    %c0_i32_0 = arith.constant 0 : i32
    %c0_i32_1 = arith.constant 0 : i32
    %c0_i32_2 = arith.constant 0 : i32
    return %c0_i32, %c0_i32_0, %c0_i32_1 : i32, i32, i32
  }
  func.func @transform_14(%arg0: i32) -> (i32, i32, i32) {
    %c0_i32 = arith.constant 0 : i32
    %c0_i32_0 = arith.constant 0 : i32
    %c0_i32_1 = arith.constant 0 : i32
    %c0_i32_2 = arith.constant 0 : i32
    return %c0_i32, %c0_i32_0, %c0_i32_1 : i32, i32, i32
  }
  func.func @transform_15(%arg0: i32) -> (i32, i32, i32) {
    %c0_i32 = arith.constant 0 : i32
    %c0_i32_0 = arith.constant 0 : i32
    %c0_i32_1 = arith.constant 0 : i32
    %c0_i32_2 = arith.constant 0 : i32
    return %c0_i32, %c0_i32_0, %c0_i32_1 : i32, i32, i32
  }
  func.func @transform_16(%arg0: i32) -> (i32, i32, i32) {
    %c0_i32 = arith.constant 0 : i32
    %c0_i32_0 = arith.constant 0 : i32
    %c0_i32_1 = arith.constant 0 : i32
    %c0_i32_2 = arith.constant 0 : i32
    return %c0_i32, %c0_i32_0, %c0_i32_1 : i32, i32, i32
  }
  func.func @transform_17(%arg0: i32) -> (i32, i32, i32) {
    %c0_i32 = arith.constant 0 : i32
    %c0_i32_0 = arith.constant 0 : i32
    %c0_i32_1 = arith.constant 0 : i32
    %c0_i32_2 = arith.constant 0 : i32
    return %c0_i32, %c0_i32_0, %c0_i32_1 : i32, i32, i32
  }
  func.func @transform_18(%arg0: i32) -> (i32, i32) {
    %c0_i32 = arith.constant 0 : i32
    %c0_i32_0 = arith.constant 0 : i32
    %c0_i32_1 = arith.constant 0 : i32
    return %c0_i32, %c0_i32_0 : i32, i32
  }
  func.func @transform_19(%arg0: i32) -> (i32, i32) {
    %c0_i32 = arith.constant 0 : i32
    %c0_i32_0 = arith.constant 0 : i32
    %c0_i32_1 = arith.constant 0 : i32
    return %c0_i32, %c0_i32_0 : i32, i32
  }
  func.func @transform_20(%arg0: i32) -> (i32, i32) {
    %c0_i32 = arith.constant 0 : i32
    %c0_i32_0 = arith.constant 0 : i32
    %c0_i32_1 = arith.constant 0 : i32
    return %c0_i32, %c0_i32_0 : i32, i32
  }
  func.func @transform_21(%arg0: i32) -> (i32, i32) {
    %c0_i32 = arith.constant 0 : i32
    %c0_i32_0 = arith.constant 0 : i32
    %c0_i32_1 = arith.constant 0 : i32
    return %c0_i32, %c0_i32_0 : i32, i32
  }
  func.func @transform_22(%arg0: i32) -> (i32, i32) {
    %c0_i32 = arith.constant 0 : i32
    %c0_i32_0 = arith.constant 0 : i32
    %c0_i32_1 = arith.constant 0 : i32
    return %c0_i32, %c0_i32_0 : i32, i32
  }
  func.func @transform_23(%arg0: i32) -> (i32, i32) {
    %c0_i32 = arith.constant 0 : i32
    %c0_i32_0 = arith.constant 0 : i32
    %c0_i32_1 = arith.constant 0 : i32
    return %c0_i32, %c0_i32_0 : i32, i32
  }
  func.func @transform_24(%arg0: i32) -> (i32, i32) {
    %c0_i32 = arith.constant 0 : i32
    %c0_i32_0 = arith.constant 0 : i32
    %c0_i32_1 = arith.constant 0 : i32
    return %c0_i32, %c0_i32_0 : i32, i32
  }
  func.func @transform_25(%arg0: i32) -> (i32, i32) {
    %c0_i32 = arith.constant 0 : i32
    %c0_i32_0 = arith.constant 0 : i32
    %c0_i32_1 = arith.constant 0 : i32
    return %c0_i32, %c0_i32_0 : i32, i32
  }
  func.func @transform_26(%arg0: i32) -> (i32, i32) {
    %c0_i32 = arith.constant 0 : i32
    %c0_i32_0 = arith.constant 0 : i32
    %c0_i32_1 = arith.constant 0 : i32
    return %c0_i32, %c0_i32_0 : i32, i32
  }
  func.func @transform_27(%arg0: i32) -> (i32, i32) {
    %c0_i32 = arith.constant 0 : i32
    %c0_i32_0 = arith.constant 0 : i32
    %c0_i32_1 = arith.constant 0 : i32
    return %c0_i32, %c0_i32_0 : i32, i32
  }
  func.func @transform_28(%arg0: i32) -> (i32, i32) {
    %c0_i32 = arith.constant 0 : i32
    %c0_i32_0 = arith.constant 0 : i32
    %c0_i32_1 = arith.constant 0 : i32
    return %c0_i32, %c0_i32_0 : i32, i32
  }
  func.func @transform_29(%arg0: i32) -> (i32, i32) {
    %c0_i32 = arith.constant 0 : i32
    %c0_i32_0 = arith.constant 0 : i32
    %c0_i32_1 = arith.constant 0 : i32
    return %c0_i32, %c0_i32_0 : i32, i32
  }
}

</mosaic_0001>

<bundles_post_ra>
// kernel: forward.1
= control target key start
LH: loop header
LB: loop body
LE: loop exit
PB: predicated region body
PF: predicated region fallthrough
CT: control target
= control target key end

     0   :  { %s7055_s6 = smov 1   ;;  %s7056_s10 = smov 2   ;;  %s8319_s0 = inlined_call_operand.smem [shape: u32[30], index: -1, kind: input, shape index: {}] }
   0x1   :  { %s7119_s5 = sld [smem:[%s8319_s0]]   ;;  %s7057_s14 = smov 3  }
   0x2   :  { %s7124_s9 = sld [smem:[%s8319_s0 + %s7055_s6]]   ;;  %s7058_s18 = smov 4  }
   0x3   :  { %s7129_s13 = sld [smem:[%s8319_s0 + %s7056_s10]]   ;;  %s7059_s22 = smov 5  }
   0x4   :  { %s7134_s17 = sld [smem:[%s8319_s0 + %s7057_s14]]   ;;  %s7060_s26 = smov 6  }
   0x5   :  { %s7139_s21 = sld [smem:[%s8319_s0 + %s7058_s18]]   ;;  %s7061_s30 = smov 7  }
   0x6   :  { %s7144_s25 = sld [smem:[%s8319_s0 + %s7059_s22]]   ;;  %s7062_s4 = smov 8  }
   0x7   :  { %s7149_s29 = sld [smem:[%s8319_s0 + %s7060_s26]]   ;;  %s7063_s10 = smov 9  }
   0x8   :  { %s7154_s3 = sld [smem:[%s8319_s0 + %s7061_s30]]   ;;  %s7064_s15 = smov 10  }
   0x9   :  { %8329 = sst [smem:[#allocation33_spill]] %s7129_s13  ;;  %s7065_s20 = smov 11  }
   0xa   :  { %8330 = sst [smem:[#allocation34_spill]] %s7134_s17  ;;  %s7066_s26 = smov 12  }
   0xb   :  { %s7159_s8 = sld [smem:[%s8319_s0 + %s7062_s4]]   ;;  %s7067_s1 = smov 13  }
   0xc   :  { %s7164_s14 = sld [smem:[%s8319_s0 + %s7063_s10]]   ;;  %s7068_s7 = smov 14  }
   0xd   :  { %s7169_s19 = sld [smem:[%s8319_s0 + %s7064_s15]]   ;;  %s7069_s15 = smov 15  }
   0xe   :  { %s7174_s24 = sld [smem:[%s8319_s0 + %s7065_s20]]   ;;  %s7070_s22 = smov 16  }
   0xf   :  { %s7179_s30 = sld [smem:[%s8319_s0 + %s7066_s26]]   ;;  %s7071_s28 = smov 17  }
  0x10   :  { %s7184_s6 = sld [smem:[%s8319_s0 + %s7067_s1]]  }
  0x11   :  { %8331 = sst [smem:[#allocation35_spill]] %s7159_s8 }
  0x12   :  { %8332 = sst [smem:[#allocation36_spill]] %s7164_s14 }
  0x13   :  { %8333 = sst [smem:[#allocation37_spill]] %s7169_s19 }
  0x14   :  { %8334 = sst [smem:[#allocation38_spill]] %s7174_s24 }
  0x15   :  { %8335 = sst [smem:[#allocation39_spill]] %s7179_s30 }
  0x16   :  { %s7189_s12 = sld [smem:[%s8319_s0 + %s7068_s7]]   ;;  %s7072_s7 = smov 18  }
  0x17   :  { %s7194_s20 = sld [smem:[%s8319_s0 + %s7069_s15]]   ;;  %s7073_s15 = smov 19  }
  0x18   :  { %s7199_s27 = sld [smem:[%s8319_s0 + %s7070_s22]]   ;;  %s7074_s22 = smov 20  }
  0x19   :  { %s7204_s4 = sld [smem:[%s8319_s0 + %s7071_s28]]   ;;  %s7075_s28 = smov 21  }
  0x1a   :  { %s7209_s17 = sld [smem:[%s8319_s0 + %s7072_s7]]   ;;  %s7076_s7 = smov 22  }
  0x1b   :  { %s7214_s13 = sld [smem:[%s8319_s0 + %s7073_s15]]   ;;  %s7077_s15 = smov 23  }
  0x1c   :  { %s7219_s24 = sld [smem:[%s8319_s0 + %s7074_s22]]   ;;  %s7078_s22 = smov 24  }
  0x1d   :  { %s7224_s30 = sld [smem:[%s8319_s0 + %s7075_s28]]   ;;  %s7079_s28 = smov 25  }
  0x1e   :  { %s7244_s19 = sld [smem:[%s8319_s0 + %s7079_s28]]   ;;  %s7083_s28 = smov 29  }
  0x20   :  { %8336 = sst [smem:[#allocation40_spill]] %s7209_s17 }
  0x21   :  { %8337 = sst [smem:[#allocation41_spill]] %s7214_s13 }
  0x22   :  { %8338 = sst [smem:[#allocation42_spill]] %s7219_s24 }
  0x23   :  { %s7229_s17 = sld [smem:[%s8319_s0 + %s7076_s7]]   ;;  %s7080_s7 = smov 26  }
  0x24   :  { %s7234_s13 = sld [smem:[%s8319_s0 + %s7077_s15]]   ;;  %s7081_s15 = smov 27  }
  0x25   :  { %s7239_s24 = sld [smem:[%s8319_s0 + %s7078_s22]]   ;;  %s7082_s22 = smov 28  }
  0x26   :  { %8340 = sst [smem:[#allocation44_spill]] %s7244_s19 }
  0x27   :  { %s7254_s14 = sld [smem:[%s8319_s0 + %s7081_s15]]  }
  0x28   :  { %s7259_s8 = sld [smem:[%s8319_s0 + %s7082_s22]]  }
  0x29   :  { %8339 = sst [smem:[#allocation43_spill]] %s7229_s17 }
  0x2a   :  { %s7249_s17 = sld [smem:[%s8319_s0 + %s7080_s7]]  }
  0x2b   :  { %s7264_s19 = sld [smem:[%s8319_s0 + %s7083_s28]]  }
  0x2c   :  { %64 = vsyncpa [#allocation4], 0 }
  0x2d   :  { %65 = vsyncpa [#allocation7], 0 }
  0x2e   :  { %66 = vsyncpa [#allocation10], 0 }
  0x2f   :  { %67 = vsyncpa [#allocation13], 0 }
  0x30   :  { %68 = vsyncpa [#allocation16], 0 }
  0x31   :  { %69 = vsyncpa [#allocation19], 0 }
  0x32   :  { %70 = vsyncpa [#allocation22], 0 }
  0x33   :  { %71 = vsyncpa [#allocation5], 0  ;;  %s7084_s7 = smov [#allocation6]  }
  0x34   :  { %s101_s10 = sshll.u32 %s7084_s7, 4  ;;  %s102_s10 = int_to_ptr.vmem [resolvable:$true] %s101_s10 }
  0x35   :  { %s6767_s11 = scalar_lea.vmem %s102_s10, 96  ;;  %p6772_p1 = scmp.lt.s32.totalorder %s102_s10, %s102_s10 }
  0x36   :  { %p6768_p0 = scmp.ne.s32.totalorder %s102_s10, %s6767_s11  ;;  %p6773_p2 = scmp.lt.s32.totalorder %s6767_s11, %s6767_s11 }
  0x38   :  { %p6774_p3 = por %p6773_p2, %p6772_p1 }
  0x3a   :  { %p6775_p4 = pnand %p6774_p3, %p6768_p0 }
  0x3c   :  { %6778 = shalt.err (!%p6775_p4)
}
  0x3d   :  { %s7085_s0 = smov 48   ;;  %s7086_s15 = smov 3  }
  0x3e   :  { %107 = dma.hbm_to_vmem [thread:$0]  %s7154_s3, 96, %s102_s10, [#allocation7], %s7085_s0, %s7085_s0, %s7086_s15  }
  0x3f   :  { %s7087_s16 = smov [#allocation9]   ;;  %s7088_s22 = smov [#allocation12]  }
  0x40   :  { %s135_s18 = sshll.u32 %s7087_s16, 4  ;;  %s159_s23 = sshll.u32 %s7088_s22, 4  ;;  %s136_s18 = int_to_ptr.vmem [resolvable:$true] %s135_s18  ;;  %s160_s23 = int_to_ptr.vmem [resolvable:$true] %s159_s23 }
  0x41   :  { %s6787_s26 = scalar_lea.vmem %s136_s18, 32  ;;  %p6792_p6 = scmp.lt.s32.totalorder %s136_s18, %s136_s18 }
  0x42   :  { %p6788_p5 = scmp.ne.s32.totalorder %s136_s18, %s6787_s26  ;;  %p6793_p7 = scmp.lt.s32.totalorder %s6787_s26, %s6787_s26 }
  0x44   :  { %p6794_p8 = por %p6793_p7, %p6792_p6 }
  0x46   :  { %p6795_p9 = pnand %p6794_p8, %p6788_p5 }
  0x48   :  { %6798 = shalt.err (!%p6795_p9)
}
  0x49   :  { %s7089_s28 = smov 16   ;;  %s7090_s1 = smov 1  }
  0x4a   :  { %141 = dma.hbm_to_vmem [thread:$0]  %s7189_s12, 32, %s136_s18, [#allocation10], %s7089_s28, %s7089_s28, %s7090_s1  }
  0x4b   :  { %s6807_s3 = scalar_lea.vmem %s160_s23, 32  ;;  %p6812_p11 = scmp.lt.s32.totalorder %s160_s23, %s160_s23 }
  0x4c   :  { %p6808_p10 = scmp.ne.s32.totalorder %s160_s23, %s6807_s3  ;;  %p6813_p12 = scmp.lt.s32.totalorder %s6807_s3, %s6807_s3 }
  0x4e   :  { %p6814_p13 = por %p6813_p12, %p6812_p11 }
  0x50   :  { %p6815_p0 = pnand %p6814_p13, %p6808_p10 }
  0x52   :  { %6818 = shalt.err (!%p6815_p0)
}
  0x53   :  { %165 = dma.hbm_to_vmem [thread:$0]  %s7199_s27, 32, %s160_s23, [#allocation13], %s7089_s28, %s7089_s28, %s7090_s1  }
  0x54   :  { %s7091_s2 = smov [#allocation15]   ;;  %s7092_s10 = smov [#allocation18]  }
  0x55   :  { %s190_s7 = sshll.u32 %s7091_s2, 4  ;;  %s214_s11 = sshll.u32 %s7092_s10, 4  ;;  %s191_s7 = int_to_ptr.vmem [resolvable:$true] %s190_s7  ;;  %s215_s11 = int_to_ptr.vmem [resolvable:$true] %s214_s11 }
  0x56   :  { %s6827_s0 = scalar_lea.vmem %s191_s7, 16  ;;  %s6831_s12 = scalar_lea.vmem %s191_s7, 32 }
  0x57   :  { %p6828_p1 = scmp.ne.s32.totalorder %s191_s7, %s6827_s0  ;;  %p6832_p2 = scmp.lt.s32.totalorder %s191_s7, %s191_s7 }
  0x58   :  { %p6833_p3 = scmp.lt.s32.totalorder %s6831_s12, %s6827_s0 }
  0x5a   :  { %p6834_p4 = por %p6833_p3, %p6832_p2 }
  0x5c   :  { %p6835_p5 = pnand %p6834_p4, %p6828_p1 }
  0x5e   :  { %6838 = shalt.err (!%p6835_p5)
}
  0x5f   :  { %193 = dma.hbm_to_vmem [thread:$0]  %s7224_s30, 16, %s191_s7, [#allocation16]  }
  0x60   :  { %s6847_s15 = scalar_lea.vmem %s215_s11, 16  ;;  %s6851_s16 = scalar_lea.vmem %s215_s11, 32 }
  0x61   :  { %p6848_p6 = scmp.ne.s32.totalorder %s215_s11, %s6847_s15  ;;  %p6852_p7 = scmp.lt.s32.totalorder %s215_s11, %s215_s11 }
  0x62   :  { %p6853_p8 = scmp.lt.s32.totalorder %s6851_s16, %s6847_s15 }
  0x64   :  { %p6854_p9 = por %p6853_p8, %p6852_p7 }
  0x66   :  { %p6855_p10 = pnand %p6854_p9, %p6848_p6 }
  0x68   :  { %6858 = shalt.err (!%p6855_p10)
}
  0x69   :  { %217 = dma.hbm_to_vmem [thread:$0]  %s7239_s24, 16, %s215_s11, [#allocation19]  }
  0x6a   :  { %s7093_s27 = smov [#allocation21]   ;;  %s7094_s22 = smov [#allocation3]  }
  0x6b   :  { %s235_s18 = sshll.u32 %s7093_s27, 4  ;;  %s85_s23 = sshll.u32 %s7094_s22, 4  ;;  %s236_s18 = int_to_ptr.vmem [resolvable:$true] %s235_s18  ;;  %s86_s23 = int_to_ptr.vmem [resolvable:$true] %s85_s23 }
  0x6c   :  { %s6867_s26 = scalar_lea.vmem %s236_s18, 1024  ;;  %p6872_p12 = scmp.lt.s32.totalorder %s236_s18, %s236_s18 }
  0x6d   :  { %p6868_p11 = scmp.ne.s32.totalorder %s236_s18, %s6867_s26  ;;  %p6873_p13 = scmp.lt.s32.totalorder %s6867_s26, %s6867_s26 }
  0x6f   :  { %p6874_p0 = por %p6873_p13, %p6872_p12 }
  0x71   :  { %p6875_p1 = pnand %p6874_p0, %p6868_p11 }
  0x73   :  { %6878 = shalt.err (!%p6875_p1)
}
  0x74   :  { %s7095_s30 = smov 128   ;;  %s7096_s3 = smov 8  }
  0x75   :  { %241 = dma.hbm_to_vmem [thread:$0]  %s7254_s14, 1024, %s236_s18, [#allocation22], %s7095_s30, %s7095_s30, %s7096_s3  }
  0x76   :  { %s6887_s24 = scalar_lea.vmem %s86_s23, 1024  ;;  %p6892_p3 = scmp.lt.s32.totalorder %s86_s23, %s86_s23 }
  0x77   :  { %p6888_p2 = scmp.ne.s32.totalorder %s86_s23, %s6887_s24  ;;  %p6893_p4 = scmp.lt.s32.totalorder %s6887_s24, %s6887_s24 }
  0x79   :  { %p6894_p5 = por %p6893_p4, %p6892_p3 }
  0x7b   :  { %p6895_p6 = pnand %p6894_p5, %p6888_p2 }
  0x7d   :  { %6898 = shalt.err (!%p6895_p6)
}
  0x7e   :  { %s7097_s2 = smov 64   ;;  %s7098_s7 = smov 4  }
  0x7f   :  { %91 = dma.hbm_to_vmem [thread:$0]  %s7139_s21, 1024, %s86_s23, [#allocation4], %s7097_s2, %s7097_s2, %s7098_s7  }
  0x80   :  { %s7099_s10 = smov [#allocation8]   ;;  %s7100_s0 = smov [#allocation11]  }
  0x81   :  { %s123_s11 = sshll.u32 %s7099_s10, 4  ;;  %s147_s12 = sshll.u32 %s7100_s0, 4  ;;  %s124_s11 = int_to_ptr.vmem [resolvable:$true] %s123_s11  ;;  %s148_s12 = int_to_ptr.vmem [resolvable:$true] %s147_s12 }
  0x82   :  { %s6907_s14 = scalar_lea.vmem %s124_s11, 32  ;;  %p6912_p8 = scmp.lt.s32.totalorder %s124_s11, %s124_s11 }
  0x83   :  { %p6908_p7 = scmp.ne.s32.totalorder %s124_s11, %s6907_s14  ;;  %p6913_p9 = scmp.lt.s32.totalorder %s6907_s14, %s6907_s14 }
  0x85   :  { %p6914_p10 = por %p6913_p9, %p6912_p8 }
  0x87   :  { %p6915_p11 = pnand %p6914_p10, %p6908_p7 }
  0x89   :  { %6918 = shalt.err (!%p6915_p11)
}
  0x8a   :  { %129 = dma.hbm_to_vmem [thread:$0]  %s7184_s6, 32, %s124_s11, [#allocation7], %s7089_s28, %s7089_s28, %s7090_s1  }
  0x8b   :  { %s6927_s15 = scalar_lea.vmem %s148_s12, 32  ;;  %p6932_p13 = scmp.lt.s32.totalorder %s148_s12, %s148_s12 }
  0x8c   :  { %p6928_p12 = scmp.ne.s32.totalorder %s148_s12, %s6927_s15  ;;  %p6933_p0 = scmp.lt.s32.totalorder %s6927_s15, %s6927_s15 }
  0x8e   :  { %p6934_p1 = por %p6933_p0, %p6932_p13 }
  0x90   :  { %p6935_p2 = pnand %p6934_p1, %p6928_p12 }
  0x92   :  { %6938 = shalt.err (!%p6935_p2)
}
  0x93   :  { %153 = dma.hbm_to_vmem [thread:$0]  %s7194_s20, 32, %s148_s12, [#allocation10], %s7089_s28, %s7089_s28, %s7090_s1  }
  0x94   :  { %s7101_s21 = smov [#allocation14]   ;;  %s7102_s27 = smov [#allocation17]  }
  0x95   :  { %s171_s16 = sshll.u32 %s7101_s21, 4  ;;  %s201_s18 = sshll.u32 %s7102_s27, 4  ;;  %s172_s16 = int_to_ptr.vmem [resolvable:$true] %s171_s16  ;;  %s202_s18 = int_to_ptr.vmem [resolvable:$true] %s201_s18 }
  0x96   :  { %s6947_s22 = scalar_lea.vmem %s172_s16, 32  ;;  %p6952_p4 = scmp.lt.s32.totalorder %s172_s16, %s172_s16 }
  0x97   :  { %p6948_p3 = scmp.ne.s32.totalorder %s172_s16, %s6947_s22  ;;  %p6953_p5 = scmp.lt.s32.totalorder %s6947_s22, %s6947_s22 }
  0x99   :  { %p6954_p6 = por %p6953_p5, %p6952_p4 }
  0x9b   :  { %p6955_p7 = pnand %p6954_p6, %p6948_p3 }
  0x9d   :  { %6958 = shalt.err (!%p6955_p7)
}
  0x9e   :  { %177 = dma.hbm_to_vmem [thread:$0]  %s7204_s4, 32, %s172_s16, [#allocation13], %s7089_s28, %s7089_s28, %s7090_s1  }
  0x9f   :  { %s6967_s6 = scalar_lea.vmem %s202_s18, 2048  ;;  %p6972_p9 = scmp.lt.s32.totalorder %s202_s18, %s202_s18 }
  0xa0   :  { %p6968_p8 = scmp.ne.s32.totalorder %s202_s18, %s6967_s6  ;;  %p6973_p10 = scmp.lt.s32.totalorder %s6967_s6, %s6967_s6 }
  0xa2   :  { %p6974_p11 = por %p6973_p10, %p6972_p9 }
  0xa4   :  { %p6975_p12 = pnand %p6974_p11, %p6968_p8 }
  0xa6   :  { %6978 = shalt.err (!%p6975_p12)
}
  0xa7   :  { %207 = dma.hbm_to_vmem [thread:$0]  %s7234_s13, 2048, %s202_s18, [#allocation16], %s7095_s30, %s7095_s30, %s7096_s3  }
  0xa8   :  { %s7103_s20 = smov [#allocation20]   ;;  %s7104_s26 = smov [#allocation23]  }
  0xa9   :  { %s226_s23 = sshll.u32 %s7103_s20, 4  ;;  %s248_s24 = sshll.u32 %s7104_s26, 4  ;;  %s227_s23 = int_to_ptr.vmem [resolvable:$true] %s226_s23  ;;  %s249_s24 = int_to_ptr.vmem [resolvable:$true] %s248_s24 }
  0xaa   :  { %s6987_s7 = scalar_lea.vmem %s227_s23, 16  ;;  %s6991_s4 = scalar_lea.vmem %s227_s23, 32 }
  0xab   :  { %p6988_p13 = scmp.ne.s32.totalorder %s227_s23, %s6987_s7  ;;  %p6992_p0 = scmp.lt.s32.totalorder %s227_s23, %s227_s23 }
  0xac   :  { %p6993_p1 = scmp.lt.s32.totalorder %s6991_s4, %s6987_s7 }
  0xae   :  { %p6994_p2 = por %p6993_p1, %p6992_p0 }
  0xb0   :  { %p6995_p3 = pnand %p6994_p2, %p6988_p13 }
  0xb2   :  { %6998 = shalt.err (!%p6995_p3)
}
  0xb3   :  { %229 = dma.hbm_to_vmem [thread:$0]  %s7249_s17, 16, %s227_s23, [#allocation19]  }
  0xb4   :  { %s7007_s28 = scalar_lea.vmem %s249_s24, 16  ;;  %s7011_s1 = scalar_lea.vmem %s249_s24, 32 }
  0xb5   :  { %p7008_p4 = scmp.ne.s32.totalorder %s249_s24, %s7007_s28  ;;  %p7012_p5 = scmp.lt.s32.totalorder %s249_s24, %s249_s24 }
  0xb6   :  { %p7013_p6 = scmp.lt.s32.totalorder %s7011_s1, %s7007_s28 }
  0xb8   :  { %p7014_p7 = por %p7013_p6, %p7012_p5 }
  0xba   :  { %p7015_p8 = pnand %p7014_p7, %p7008_p4 }
  0xbc   :  { %7018 = shalt.err (!%p7015_p8)
}
  0xbd   :  { %251 = dma.hbm_to_vmem [thread:$0]  %s7259_s8, 16, %s249_s24, [#allocation22]  }
  0xbe   :  { %7039 = dma.done.wait [#allocation4], 1024  }
  0xbf   :  { %7040 = vsyncadd [#allocation4], 4294966272 }
  0xc0   :  { %7041 = dma.done.wait [#allocation7], 128  }
  0xc1   :  { %7042 = vsyncadd [#allocation7], 4294967168 }
  0xc2   :  { %7043 = dma.done.wait [#allocation10], 64  }
  0xc3   :  { %7044 = vsyncadd [#allocation10], 4294967232 }
  0xc4   :  { %7045 = dma.done.wait [#allocation13], 64  }
  0xc5   :  { %7046 = vsyncadd [#allocation13], 4294967232 }
  0xc6   :  { %7047 = dma.done.wait [#allocation16], 2064  }
  0xc7   :  { %7048 = vsyncadd [#allocation16], 4294965232 }
  0xc8   :  { %7049 = dma.done.wait [#allocation19], 32  }
  0xc9   :  { %7050 = vsyncadd [#allocation19], 4294967264 }
  0xca   :  { %7051 = dma.done.wait [#allocation22], 1040  }
  0xcb   :  { %7052 = vsyncadd [#allocation22], 4294966256  ;;  %v6347_v0 = vld [vmem:[#allocation3 + $0x38] sm:$0xff]   ;;  %v6348_v1 = vld [vmem:[#allocation3 + $0x30] sm:$0xff]   ;;  %v7105_v38 = vmov 0   ;;  %v455_v53 = vlaneseq  ;;  %vm706_vm0 = vcmask 261120  }
  0xcc   :  { %5864 = vmatprep.subr.bf16.mxu0 %v6347_v0  ;;  %v6349_v2 = vld [vmem:[#allocation3 + $0x28] sm:$0xff]   ;;  %v6350_v3 = vld [vmem:[#allocation3 + $0x20] sm:$0xff]   ;;  %v6351_v9 = vld [vmem:[#allocation3 + $0x18] sm:$0xff]   ;;  %630 = vmatprep.mubr.bf16.mxu1 %v7105_v38  ;;  %s7107_s13 = smov 32   ;;  %s8341_s17 = sld [smem:[#allocation35_spill]]  ;;  %vm1071_vm1 = vcmask 523520  }
  0xcd   :  { %5865 = vmatpush3.bf16.msra.mxu0 %v6347_v0  ;;  %v296_v4 = vld [vmem:[%s7119_s5] sm:$0xff]  ;;  %v297_v5 = vld [vmem:[%s7119_s5 + $0x8] sm:$0xff]  ;;  %v6361_v11 = vld [vmem:[%s7149_s29 + $0x90] ss:$12 sps:$4 sm:$0xff]   ;;  %v7348_v54 = vshrl.u32 %v455_v53, 7  ;;  %vm1268_vm2 = vcmask 785920  }
  0xce   :  { %5866 = vmatprep.subr.bf16.mxu0 %v6348_v1  ;;  %v300_v6 = vpack.c.bf16 %v297_v5, %v296_v4  ;;  %v6355_v7 = vld [vmem:[%s7149_s29 + $0xac] ss:$12 sps:$4 sm:$0xff]   ;;  %v6357_v8 = vld [vmem:[%s7149_s29 + $0xa8] ss:$12 sps:$4 sm:$0xff]   ;;  %v6367_v15 = vld [vmem:[%s7149_s29 + $0x64] ss:$12 sps:$4 sm:$0xff]  }
  0xcf   :  { %598 = vmatprep.subr.bf16.mxu1 %v6355_v7  ;;  %v6359_v10 = vld [vmem:[%s7149_s29 + $0x94] ss:$12 sps:$4 sm:$0xff]   ;;  %v6363_v12 = vld [vmem:[%s7149_s29 + $0x7c] ss:$12 sps:$4 sm:$0xff]   ;;  %v6365_v14 = vld [vmem:[%s7149_s29 + $0x78] ss:$12 sps:$4 sm:$0xff]  }
  0xd0   :  { %5880 = vmatprep.mubr.bf16.mxu0 %v300_v6  ;;  %599 = vmatpush1.bf16.msra.mxu1 %v6357_v8  ;;  %v6352_v13 = vld [vmem:[#allocation3 + $0x10] sm:$0xff]   ;;  %v6353_v16 = vld [vmem:[#allocation3 + $0x8] sm:$0xff]   ;;  %v6354_v18 = vld [vmem:[#allocation3] sm:$0xff]   ;;  %v7351_v55 = vsub.s32 0, %v7348_v54  ;;  %v7354_v57 = vsub.s32 2, %v7348_v54  ;;  %vm1465_vm3 = vcmask 1048320  }
  0xd1   :  { %5867 = vmatpush3.bf16.msra.mxu0 %v6348_v1  ;;  %600 = vmatprep.subr.bf16.mxu1 %v6359_v10  ;;  %v6369_v17 = vld [vmem:[%s7149_s29 + $0x60] ss:$12 sps:$4 sm:$0xff]   ;;  %v6373_v20 = vld [vmem:[%s7149_s29 + $0x48] ss:$12 sps:$4 sm:$0xff]   ;;  %v299_v23 = vld [vmem:[%s7119_s5 + $0x18] sm:$0xff]  ;;  %s8343_s8 = sld [smem:[#allocation37_spill]] }
  0xd2   :  { %5868 = vmatprep.subr.bf16.mxu0 %v6349_v2  ;;  %v6371_v19 = vld [vmem:[%s7149_s29 + $0x4c] ss:$12 sps:$4 sm:$0xff]   ;;  %v6375_v21 = vld [vmem:[%s7149_s29 + $0x34] ss:$12 sps:$4 sm:$0xff]   ;;  %v6358_v24 = vld [vmem:[%s7149_s29 + $0xb0] ss:$12 sps:$4 sm:$0xff]  }
  0xd3   :  { %v298_v22 = vld [vmem:[%s7119_s5 + $0x10] sm:$0xff]  ;;  %v6362_v26 = vld [vmem:[%s7149_s29 + $0x98] ss:$12 sps:$4 sm:$0xff]   ;;  %v6366_v27 = vld [vmem:[%s7149_s29 + $0x80] ss:$12 sps:$4 sm:$0xff]   ;;  %s7106_s5 = smov 96  }
  0xd4   :  { %601 = vmatpush1.bf16.msra.mxu1 %v6361_v11  ;;  %v301_v25 = vpack.c.bf16 %v299_v23, %v298_v22  ;;  %v6370_v28 = vld [vmem:[%s7149_s29 + $0x68] ss:$12 sps:$4 sm:$0xff]   ;;  %v6374_v29 = vld [vmem:[%s7149_s29 + $0x50] ss:$12 sps:$4 sm:$0xff]   ;;  %v6378_v31 = vld [vmem:[%s7149_s29 + $0x38] ss:$12 sps:$4 sm:$0xff]  }
  0xd5   :  { %5869 = vmatpush3.bf16.msra.mxu0 %v6349_v2  ;;  %602 = vmatprep.subr.bf16.mxu1 %v6363_v12  ;;  %v6377_v30 = vld [vmem:[%s7149_s29 + $0x30] ss:$12 sps:$4 sm:$0xff]   ;;  %v6381_v33 = vld [vmem:[%s7149_s29 + $0x18] ss:$12 sps:$4 sm:$0xff]   ;;  %v6382_v34 = vld [vmem:[%s7149_s29 + $0x20] ss:$12 sps:$4 sm:$0xff]  }
  0xd6   :  { %5870 = vmatprep.subr.bf16.mxu0 %v6350_v3  ;;  %v6379_v32 = vld [vmem:[%s7149_s29 + $0x1c] ss:$12 sps:$4 sm:$0xff]   ;;  %v6383_v35 = vld [vmem:[%s7149_s29 + $0x4] ss:$12 sps:$4 sm:$0xff]   ;;  %v6385_v36 = vld [vmem:[%s7149_s29] ss:$12 sps:$4 sm:$0xff]  }
  0xd7   :  { %v6386_v37 = vld [vmem:[%s7149_s29 + $0x8] ss:$12 sps:$4 sm:$0xff]   ;;  %v321_v41 = vld [vmem:[%s7144_s25 + $0x18] sm:$0xff]  ;;  %v318_v42 = vld [vmem:[%s7144_s25] sm:$0xff]  ;;  %s8344_s30 = sld [smem:[#allocation39_spill]]  ;;  %vm7109_vm4 = vmmov 0  }
  0xd8   :  { %603 = vmatpush1.bf16.msra.mxu1 %v6365_v14  ;;  %v319_v44 = vld [vmem:[%s7144_s25 + $0x8] sm:$0xff]  ;;  %v320_v45 = vld [vmem:[%s7144_s25 + $0x10] sm:$0xff]  ;;  %v453_v56 = vld [vmem:[#allocation6] sm:$0x7]  ;;  %s8342_s25 = sld [smem:[#allocation36_spill]]  ;;  %vm4567_vm5 = vcmask 1040384  }
  0xd9   :  { %5871 = vmatpush3.bf16.msra.mxu0 %v6350_v3  ;;  %604 = vmatprep.subr.bf16.mxu1 %v6367_v15  ;;  %v458_v59 = vrot.slane %v453_v56, %v7351_v55  ;;  %v466_v61 = vrot.slane %v453_v56, %v7354_v57  ;;  %s8345_s3 = sld [smem:[#allocation38_spill]]  ;;  %vm4563_vm6 = vcmask 269312   ;;  %vm5026_vm7 = vcmask 523264   ;;  %s7110_s14 = smov [#allocation24]  }
  0xda   :  { %5872 = vmatprep.subr.bf16.mxu0 %v6351_v9  ;;  %s8349_s10 = sld [smem:[#allocation42_spill]]  ;;  %s5107_s15 = sshll.u32 %s7110_s14, 4  ;;  %s5108_s15 = int_to_ptr.vmem [resolvable:$true] %s5107_s15 }
  0xdb   :  { %s8350_s11 = sld [smem:[#allocation41_spill]]  ;;  %s7019_s21 = scalar_lea.vmem %s5108_s15, 32 }
  0xdc   :  { %605 = vmatpush1.bf16.msra.mxu1 %v6369_v17  ;;  %s8351_s0 = sld [smem:[#allocation43_spill]]  ;;  %p7020_p9 = scmp.ne.s32.totalorder %s5108_s15, %s7019_s21 }
  0xdd   :  { %5873 = vmatpush3.bf16.msra.mxu0 %v6351_v9  ;;  %606 = vmatprep.subr.bf16.mxu1 %v6371_v19  ;;  %s8352_s12 = sld [smem:[#allocation44_spill]]  ;;  %p7024_p10 = scmp.lt.s32.totalorder %s5108_s15, %s5108_s15 }
  0xde   :  { %5874 = vmatprep.subr.bf16.mxu0 %v6352_v13  ;;  %p7025_p11 = scmp.lt.s32.totalorder %s7019_s21, %s7019_s21 }
  0xe0   :  { %607 = vmatpush1.bf16.msra.mxu1 %v6373_v20  ;;  %p7026_p12 = por %p7025_p11, %p7024_p10 }
  0xe1   :  { %5875 = vmatpush3.bf16.msra.mxu0 %v6352_v13  ;;  %608 = vmatprep.subr.bf16.mxu1 %v6375_v21  ;;  %v7363_v13 = vsub.s32 1, %v7348_v54 }
  0xe2   :  { %5876 = vmatprep.subr.bf16.mxu0 %v6353_v16  ;;  %p7027_p13 = pnand %p7026_p12, %p7020_p9 }
  0xe3   :  { %v462_v17 = vrot.slane %v453_v56, %v7363_v13 }
  0xe4   :  { %609 = vmatpush1.bf16.msra.mxu1 %v6377_v30 }
  0xe5   :  { %5877 = vmatpush3.bf16.msra.mxu0 %v6353_v16  ;;  %610 = vmatprep.subr.bf16.mxu1 %v6379_v32 }
  0xe6   :  { %5878 = vmatprep.subr.bf16.mxu0 %v6354_v18 }
  0xe8   :  { %611 = vmatpush1.bf16.msra.mxu1 %v6381_v33 }
  0xe9   :  { %5879 = vmatpush3.bf16.msra.mxu0 %v6354_v18  ;;  %612 = vmatprep.subr.bf16.mxu1 %v6383_v35 }
  0xea   :  { %5884 = vmatprep.subr.bf16.mxu0 %v6358_v24 }
  0xec   :  { %5881 = vmatmul.mubr.bf16.vlgmr.msra.gmra.mxu0 %v301_v25  ;;  %613 = vmatpush1.bf16.msra.mxu1 %v6385_v36 }
  0xed   :  { %5885 = vmatpush3.bf16.msra.mxu0 %v6358_v24 }
  0xee   :  { %5886 = vmatprep.subr.bf16.mxu0 %v6362_v26 }
  0xf1   :  { %5887 = vmatpush3.bf16.msra.mxu0 %v6362_v26 }
  0xf2   :  { %5888 = vmatprep.subr.bf16.mxu0 %v6366_v27 }
  0xf5   :  { %5889 = vmatpush3.bf16.msra.mxu0 %v6366_v27 }
  0xf6   :  { %5890 = vmatprep.subr.bf16.mxu0 %v6370_v28 }
  0xf9   :  { %5891 = vmatpush3.bf16.msra.mxu0 %v6370_v28 }
  0xfa   :  { %5892 = vmatprep.subr.bf16.mxu0 %v6374_v29 }
  0xfd   :  { %5893 = vmatpush3.bf16.msra.mxu0 %v6374_v29 }
  0xfe   :  { %5894 = vmatprep.subr.bf16.mxu0 %v6378_v31 }
 0x101   :  { %5895 = vmatpush3.bf16.msra.mxu0 %v6378_v31 }
 0x102   :  { %5896 = vmatprep.subr.bf16.mxu0 %v6382_v34 }
 0x105   :  { %5897 = vmatpush3.bf16.msra.mxu0 %v6382_v34 }
 0x106   :  { %5898 = vmatprep.subr.bf16.mxu0 %v6386_v37 }
 0x109   :  { %5899 = vmatpush3.bf16.msra.mxu0 %v6386_v37  ;;  %v7410_v37 = vld [vmem:[%s7124_s9 + $0x10] sm:$0xff] }
 0x1ac   :  { %v5882_v39 = vpop.f32.mrf.mxu0 }
 0x1ad   :  { %v7341_v50 = vadd.f32 %v5882_v39, %v320_v45  ;;  %v7419_v45 = vld [vmem:[%s7124_s9 + $0x18] sm:$0xff] }
 0x1ae   :  { %v404_v40 = vpop.f32.mrf.mxu0 }
 0x1af   :  { %v7337_v48 = vadd.f32 %v404_v40, %v318_v42  ;;  %v7413_v40 = vld [vmem:[%s7124_s9] sm:$0xff] }
 0x1b0   :  { %v5883_v43 = vpop.f32.mrf.mxu0 }
 0x1b1   :  { %v7335_v46 = vadd.f32 %v5883_v43, %v321_v41 }
 0x1b2   :  { %v407_v47 = vpop.f32.mrf.mxu0 }
 0x1b3   :  { %v7339_v49 = vadd.f32 %v407_v47, %v319_v44  ;;  %v420_v52 = vpack.c.bf16 %v7335_v46, %v7341_v50 }
 0x1b5   :  { %v419_v51 = vpack.c.bf16 %v7339_v49, %v7337_v48 }
 0x1b7   :  { %631 = vmatmul.mubr.bf16.vlgmr.msra.gmra.mxu1 %v419_v51  ;;  %5900 = vmatprep.mubr.bf16.mxu0 %v419_v51  ;;  %v7422_v51 = vld [vmem:[%s7124_s9 + $0x8] sm:$0xff] }
 0x1b8   :  { %5901 = vmatmul.mubr.bf16.vlgmr.msra.gmra.mxu0 %v420_v52  ;;  %640 = vmatprep.mubr.bf16.mxu1 %v7105_v38 }
 0x1bf   :  { %641 = vmatmul.mubr.bf16.gmra.mxu1 %v420_v52 }
 0x277   :  { %v632_v58 = vpop.f32.mrf.mxu1 }
 0x278   :  { %v5902_v60 = vpop.f32.mrf.mxu0  ;;  %v633_v1 = vadd.f32 %v632_v58, %v458_v59 }
 0x279   :  { %v634_v62 = vpop.f32.mrf.mxu1  ;;  %v694_v4 = vadd.f32 %v5902_v60, %v466_v61 }
 0x27a   :  { %v685_v63 = vpop.f32.mrf.mxu0  ;;  %v635_v25 = vadd.f32 %v634_v62, %v462_v17 }
 0x27b   :  { %v636_v0 = vpop.f32.mrf.mxu1  ;;  %v686_v9 = vadd.f32 %v685_v63, %v466_v61 }
 0x27c   :  { %v637_v2 = vadd.f32 %v636_v0, %v458_v59  ;;  %v5903_v3 = vpop.f32.mrf.mxu0 }
 0x27d   :  { %v697_v5 = vadd.f32 %v5903_v3, %v466_v61  ;;  %v638_v6 = vpop.f32.mrf.mxu1 }
 0x27e   :  { %v7358_v7 = vpack.c.bf16 %v637_v2, %v633_v1  ;;  %v688_v8 = vpop.f32.mrf.mxu0  ;;  %v639_v21 = vadd.f32 %v638_v6, %v462_v17 }
 0x27f   :  { %v7360_v10 = vpack.c.bf16 %v697_v5, %v694_v4  ;;  %v689_v11 = vadd.f32 %v688_v8, %v466_v61  ;;  %v642_v12 = vpop.f32.mrf.mxu1 }
 0x280   :  { %875 = vrot.lane.b32.xlu1 %v7358_v7, %s7106_s5  ;;  %5908 = vmatprep.mubr.msk.bf16.mxu1 %vm706_vm0, %v7358_v7  ;;  %v643_v18 = vadd.f32 %v642_v12, %v458_v59  ;;  %v7382_v27 = vpack.c.bf16 %v639_v21, %v635_v25 }
 0x281   :  { %v7369_v14 = vpack.c.bf16 %v689_v11, %v686_v9  ;;  %v644_v15 = vpop.f32.mrf.mxu1  ;;  %5912 = vmatprep.subr.bf16.mxu0 %v7360_v10 }
 0x282   :  { %5913 = vmatpush3.bf16.msra.mxu0 %v7360_v10  ;;  %v645_v22 = vadd.f32 %v644_v15, %v462_v17  ;;  %v714_v29 = vsel %vm706_vm0, %v7382_v27, 0 }
 0x283   :  { %v646_v16 = vpop.f32.mrf.mxu1  ;;  %5914 = vmatprep.subr.bf16.mxu0 %v7369_v14 }
 0x284   :  { %v647_v19 = vadd.f32 %v646_v16, %v458_v59 }
 0x285   :  { %v648_v20 = vpop.f32.mrf.mxu1 }
 0x286   :  { %v7375_v23 = vpack.c.bf16 %v647_v19, %v643_v18  ;;  %v649_v24 = vadd.f32 %v648_v20, %v462_v17  ;;  %5915 = vmatpush3.bf16.msra.mxu0 %v7369_v14 }
 0x288   :  { %v7378_v26 = vpack.c.bf16 %v649_v24, %v645_v22  ;;  %877 = vrot.lane.b32.xlu1 %v7375_v23, %s7106_s5 }
 0x28a   :  { %883 = vrot.lane.b32.xlu0 %v7378_v26, %s7106_s5  ;;  %6275 = vmatprep.subr.msk.bf16.mxu1 %vm706_vm0, %v7378_v26  ;;  %v717_v28 = vsel %vm706_vm0, %v7378_v26, 0 }
 0x28b   :  { %5905 = vmatpush3.bf16.xpose.msra.mxu1 %v717_v28 }
 0x28c   :  { %6276 = vmatprep.subr.msk.bf16.mxu1 %vm706_vm0, %v7382_v27  ;;  %988 = vrot.lane.b32.xlu1 %v7360_v10, %s7106_s5 }
 0x28e   :  { %881 = vrot.lane.b32.xlu0 %v7382_v27, %s7106_s5 }
 0x293   :  { %5907 = vmatpush3.bf16.xpose.msra.mxu1 %v714_v29 }
 0x29a   :  { %5909 = vmatmul.mubr.msk.bf16.vlgmr.msra.gmra.mxu1 %vm706_vm0, %v7375_v23 }
 0x2f2   :  { %v876_v30 = vpop.permute.xlu1 %875 }
 0x2f3   :  { %5924 = vmatprep.mubr.msk.bf16.mxu1 %vm706_vm0, %v876_v30 }
 0x2fa   :  { %v878_v31 = vpop.permute.xlu1 %877 }
 0x2fc   :  { %v884_v32 = vpop.permute.xlu0 %883 }
 0x2fd   :  { %6277 = vmatprep.subr.msk.bf16.mxu1 %vm706_vm0, %v884_v32  ;;  %v895_v33 = vsel %vm706_vm0, %v884_v32, 0 }
 0x2fe   :  { %v7403_v34 = vpop.permute.xlu1 %988  ;;  %5921 = vmatpush3.bf16.xpose.msra.mxu1 %v895_v33 }
 0x2ff   :  { %5928 = vmatprep.subr.bf16.mxu0 %v7403_v34 }
 0x300   :  { %v882_v35 = vpop.permute.xlu0 %881 }
 0x301   :  { %6278 = vmatprep.subr.msk.bf16.mxu1 %vm706_vm0, %v882_v35  ;;  %v892_v36 = vsel %vm706_vm0, %v882_v35, 0 }
 0x306   :  { %5923 = vmatpush3.bf16.xpose.msra.mxu1 %v892_v36 }
 0x30d   :  { %5925 = vmatmul.mubr.msk.bf16.vlgmr.msra.gmra.mxu1 %vm706_vm0, %v878_v31 }
 0x35a   :  { %v5910_v39 = vpop.f32.mrf.mxu1 }
 0x35b   :  { %v762_v41 = vadd.f32 %v5910_v39, %v7410_v37 }
 0x35c   :  { %v753_v42 = vpop.f32.mrf.mxu1 }
 0x35d   :  { %v754_v43 = vadd.f32 %v753_v42, %v7413_v40  ;;  %v774_v44 = vsel %vm706_vm0, %v762_v41, -inf }
 0x35e   :  { %v5911_v47 = vpop.f32.mrf.mxu1  ;;  %775 = vmax.xlane.f32.xlu0 %v774_v44 }
 0x35f   :  { %v765_v53 = vadd.f32 %v5911_v47, %v7419_v45  ;;  %v768_v58 = vsel %vm706_vm0, %v754_v43, -inf }
 0x360   :  { %v756_v52 = vpop.f32.mrf.mxu1 }
 0x361   :  { %v757_v56 = vadd.f32 %v756_v52, %v7422_v51  ;;  %v777_v60 = vsel %vm706_vm0, %v765_v53, -inf }
 0x362   :  { %769 = vmax.xlane.f32.xlu0 %v768_v58 }
 0x363   :  { %v771_v59 = vsel %vm706_vm0, %v757_v56, -inf }
 0x364   :  { %772 = vmax.xlane.f32.xlu1 %v771_v59 }
 0x366   :  { %778 = vmax.xlane.f32.xlu0 %v777_v60 }
 0x3cd   :  { %v5926_v61 = vpop.f32.mrf.mxu1 }
 0x3ce   :  { %v940_v62 = vadd.f32 %v5926_v61, %v7410_v37 }
 0x3cf   :  { %v931_v63 = vpop.f32.mrf.mxu1 }
 0x3d0   :  { %v932_v0 = vadd.f32 %v931_v63, %v7413_v40  ;;  %v952_v1 = vsel %vm706_vm0, %v940_v62, -inf }
 0x3d1   :  { %v5927_v2 = vpop.f32.mrf.mxu1  ;;  %953 = vmax.xlane.f32.xlu1 %v952_v1 }
 0x3d2   :  { %v943_v3 = vadd.f32 %v5927_v2, %v7419_v45  ;;  %v946_v6 = vsel %vm706_vm0, %v932_v0, -inf }
 0x3d3   :  { %v934_v4 = vpop.f32.mrf.mxu1 }
 0x3d4   :  { %v935_v5 = vadd.f32 %v934_v4, %v7422_v51  ;;  %v955_v8 = vsel %vm706_vm0, %v943_v3, -inf }
 0x3d5   :  { %947 = vmax.xlane.f32.xlu1 %v946_v6  ;;  %956 = vmax.xlane.f32.xlu0 %v955_v8 }
 0x3d6   :  { %v949_v9 = vsel %vm706_vm0, %v935_v5, -inf }
 0x3d9   :  { %950 = vmax.xlane.f32.xlu0 %v949_v9 }
 0x3e6   :  { %1082 = vrot.lane.b32.xlu1 %v7378_v26, %s7097_s2 }
 0x3e7   :  { %v776_v11 = vpop.xlane.xlu0 %775 }
 0x3e8   :  { %v782_v12 = vsub.f32 %v762_v41, %v776_v11 }
 0x3ea   :  { %1080 = vrot.lane.b32.xlu1 %v7382_v27, %s7097_s2  ;;  %v788_v20 = vmul.f32 1.442695, %v782_v12 }
 0x3eb   :  { %v770_v15 = vpop.xlane.xlu0 %769 }
 0x3ec   :  { %v780_v16 = vsub.f32 %v754_v43, %v770_v15 }
 0x3ed   :  { %v773_v17 = vpop.xlane.xlu1 %772 }
 0x3ee   :  { %v784_v18 = vmul.f32 1.442695, %v780_v16  ;;  %v781_v19 = vsub.f32 %v757_v56, %v773_v17  ;;  %1078 = vrot.lane.b32.xlu1 %v7375_v23, %s7097_s2 }
 0x3ef   :  { %986 = vrot.lane.b32.xlu0 %v7369_v14, %s7106_s5  ;;  %v779_v21 = vpop.xlane.xlu0 %778 }
 0x3f0   :  { %v786_v22 = vmul.f32 1.442695, %v781_v19  ;;  %v783_v24 = vsub.f32 %v765_v53, %v779_v21  ;;  %6595 = vpow2.f32 %v784_v18 }
 0x3f2   :  { %6597 = vpow2.f32 %v786_v22  ;;  %v790_v25 = vmul.f32 1.442695, %v783_v24  ;;  %1185 = vrot.lane.b32.xlu1 %v7360_v10, %s7097_s2 }
 0x3f3   :  { %6599 = vpow2.f32 %v788_v20  ;;  %1076 = vrot.lane.b32.xlu0 %v7358_v7, %s7097_s2 }
 0x3f4   :  { %6601 = vpow2.f32 %v790_v25 }
 0x3fd   :  { %v7449_v28 = vpop.eup %6595 }
 0x3ff   :  { %v7451_v29 = vpop.eup %6597 }
 0x400   :  { %v7453_v30 = vpop.eup %6599  ;;  %v804_v31 = vpack.c.bf16 %v7451_v29, %v7449_v28 }
 0x401   :  { %v7457_v32 = vpop.eup %6601 }
 0x402   :  { %5916 = vmatprep.mubr.msk.bf16.mxu0 %vm706_vm0, %v804_v31  ;;  %v805_v33 = vpack.c.bf16 %v7457_v32, %v7453_v30 }
 0x404   :  { %5917 = vmatmul.mubr.msk.bf16.vlgmr.msra.gmra.mxu0 %vm706_vm0, %v805_v33 }
 0x405   :  { %5929 = vmatpush3.bf16.msra.mxu0 %v7403_v34 }
 0x45a   :  { %v954_v35 = vpop.xlane.xlu1 %953 }
 0x45b   :  { %v960_v43 = vsub.f32 %v940_v62, %v954_v35 }
 0x45d   :  { %v966_v58 = vmul.f32 1.442695, %v960_v43 }
 0x45e   :  { %v948_v36 = vpop.xlane.xlu1 %947  ;;  %v957_v39 = vpop.xlane.xlu0 %956 }
 0x45f   :  { %v958_v41 = vsub.f32 %v932_v0, %v948_v36  ;;  %v961_v42 = vsub.f32 %v943_v3, %v957_v39 }
 0x461   :  { %v962_v44 = vmul.f32 1.442695, %v958_v41  ;;  %v968_v47 = vmul.f32 1.442695, %v961_v42 }
 0x462   :  { %v1083_v52 = vpop.permute.xlu1 %1082  ;;  %v951_v53 = vpop.xlane.xlu0 %950 }
 0x463   :  { %v959_v56 = vsub.f32 %v935_v5, %v951_v53  ;;  %6603 = vpow2.f32 %v962_v44  ;;  %v1094_v6 = vsel %vm706_vm0, %v1083_v52, 0 }
 0x464   :  { %6605 = vpow2.f32 %v968_v47 }
 0x465   :  { %v964_v59 = vmul.f32 1.442695, %v959_v56 }
 0x466   :  { %v1081_v60 = vpop.permute.xlu1 %1080  ;;  %v987_v61 = vpop.permute.xlu0 %986 }
 0x467   :  { %6607 = vpow2.f32 %v964_v59  ;;  %5930 = vmatprep.subr.bf16.mxu0 %v987_v61  ;;  %v1091_v8 = vsel %vm706_vm0, %v1081_v60, 0 }
 0x468   :  { %6609 = vpow2.f32 %v966_v58  ;;  %5931 = vmatpush3.bf16.msra.mxu0 %v987_v61 }
 0x469   :  { %6279 = vmatprep.subr.msk.bf16.mxu0 %vm706_vm0, %v1083_v52 }
 0x46a   :  { %v1079_v34 = vpop.permute.xlu1 %1078  ;;  %v1077_v5 = vpop.permute.xlu0 %1076 }
 0x46e   :  { %v1186_v63 = vpop.permute.xlu1 %1185 }
 0x46f   :  { %5944 = vmatprep.subr.bf16.mxu1 %v1186_v63 }
 0x470   :  { %5945 = vmatpush3.bf16.msra.mxu1 %v1186_v63  ;;  %v7465_v62 = vpop.eup %6603 }
 0x471   :  { %v7467_v0 = vpop.eup %6605 }
 0x474   :  { %v7469_v1 = vpop.eup %6607 }
 0x475   :  { %v7471_v2 = vpop.eup %6609  ;;  %v982_v3 = vpack.c.bf16 %v7469_v1, %v7465_v62 }
 0x476   :  { %v983_v4 = vpack.c.bf16 %v7467_v0, %v7471_v2 }
 0x477   :  { %5932 = vmatprep.mubr.msk.bf16.mxu0 %vm706_vm0, %v982_v3 }
 0x478   :  { %5933 = vmatmul.mubr.msk.bf16.vlgmr.msra.gmra.mxu0 %vm706_vm0, %v983_v4 }
 0x479   :  { %5937 = vmatpush3.bf16.xpose.msra.mxu0 %v1094_v6  ;;  %5940 = vmatprep.mubr.msk.bf16.mxu0 %vm706_vm0, %v1077_v5 }
 0x47a   :  { %6280 = vmatprep.subr.msk.bf16.mxu0 %vm706_vm0, %v1081_v60 }
 0x481   :  { %5939 = vmatpush3.bf16.xpose.msra.mxu0 %v1091_v8 }
 0x488   :  { %5941 = vmatmul.mubr.msk.bf16.vlgmr.msra.gmra.mxu0 %vm706_vm0, %v1079_v34 }
 0x4c4   :  { %v7484_v9 = vpop.f32.mrf.mxu0 }
 0x4c6   :  { %v7486_v11 = vpop.f32.mrf.mxu0 }
 0x4c8   :  { %v7488_v12 = vpop.f32.mrf.mxu0 }
 0x4ca   :  { %v7490_v15 = vpop.f32.mrf.mxu0 }
 0x538   :  { %v7492_v16 = vpop.f32.mrf.mxu0 }
 0x53a   :  { %v7494_v17 = vpop.f32.mrf.mxu0 }
 0x53c   :  { %v7496_v18 = vpop.f32.mrf.mxu0 }
 0x53e   :  { %v7498_v19 = vpop.f32.mrf.mxu0 }
 0x548   :  { %v5942_v20 = vpop.f32.mrf.mxu0 }
 0x549   :  { %v1139_v21 = vadd.f32 %v5942_v20, %v7410_v37 }
 0x54a   :  { %v1130_v22 = vpop.f32.mrf.mxu0 }
 0x54b   :  { %v1131_v24 = vadd.f32 %v1130_v22, %v7413_v40  ;;  %v1151_v25 = vsel %vm706_vm0, %v1139_v21, -inf }
 0x54c   :  { %1152 = vmax.xlane.f32.xlu0 %v1151_v25  ;;  %v5943_v31 = vpop.f32.mrf.mxu0 }
 0x54d   :  { %v1142_v35 = vadd.f32 %v5943_v31, %v7419_v45  ;;  %v1145_v39 = vsel %vm706_vm0, %v1131_v24, -inf }
 0x54e   :  { %v1133_v33 = vpop.f32.mrf.mxu0 }
 0x54f   :  { %v1134_v36 = vadd.f32 %v1133_v33, %v7422_v51  ;;  %v1154_v42 = vsel %vm706_vm0, %v1142_v35, -inf }
 0x550   :  { %1146 = vmax.xlane.f32.xlu0 %v1145_v39 }
 0x551   :  { %v1148_v41 = vsel %vm706_vm0, %v1134_v36, -inf }
 0x552   :  { %1149 = vmax.xlane.f32.xlu1 %v1148_v41 }
 0x554   :  { %1155 = vmax.xlane.f32.xlu0 %v1154_v42 }
 0x563   :  { %1279 = vrot.lane.b32.xlu1 %v7378_v26, %s7107_s13 }
 0x567   :  { %1277 = vrot.lane.b32.xlu1 %v7382_v27, %s7107_s13 }
 0x56a   :  { %1183 = vrot.lane.b32.xlu0 %v7369_v14, %s7097_s2 }
 0x56b   :  { %1275 = vrot.lane.b32.xlu1 %v7375_v23, %s7107_s13 }
 0x56e   :  { %1273 = vrot.lane.b32.xlu0 %v7358_v7, %s7107_s13 }
 0x5d5   :  { %v1153_v43 = vpop.xlane.xlu0 %1152 }
 0x5d6   :  { %v1159_v44 = vsub.f32 %v1139_v21, %v1153_v43 }
 0x5d8   :  { %v1165_v26 = vmul.f32 1.442695, %v1159_v44 }
 0x5d9   :  { %v1147_v47 = vpop.xlane.xlu0 %1146 }
 0x5da   :  { %v1157_v52 = vsub.f32 %v1131_v24, %v1147_v47 }
 0x5db   :  { %v1150_v53 = vpop.xlane.xlu1 %1149 }
 0x5dc   :  { %v1161_v56 = vmul.f32 1.442695, %v1157_v52  ;;  %v1158_v58 = vsub.f32 %v1134_v36, %v1150_v53 }
 0x5dd   :  { %v1156_v59 = vpop.xlane.xlu0 %1155 }
 0x5de   :  { %v1163_v60 = vmul.f32 1.442695, %v1158_v58  ;;  %v1160_v27 = vsub.f32 %v1142_v35, %v1156_v59  ;;  %6611 = vpow2.f32 %v1161_v56 }
 0x5df   :  { %v1280_v23 = vpop.permute.xlu1 %1279 }
 0x5e0   :  { %6613 = vpow2.f32 %v1163_v60  ;;  %v1167_v61 = vmul.f32 1.442695, %v1160_v27  ;;  %v1291_v20 = vsel %vm706_vm0, %v1280_v23, 0 }
 0x5e1   :  { %6615 = vpow2.f32 %v1165_v26  ;;  %v1184_v34 = vpop.permute.xlu0 %1183  ;;  %v979_v26 = vsel %vm706_vm0, %v7467_v0, 0.0 }
 0x5e2   :  { %6617 = vpow2.f32 %v1167_v61  ;;  %5946 = vmatprep.subr.bf16.mxu1 %v1184_v34 }
 0x5e3   :  { %5947 = vmatpush3.bf16.msra.mxu1 %v1184_v34  ;;  %v1278_v21 = vpop.permute.xlu1 %1277 }
 0x5e4   :  { %6281 = vmatprep.subr.msk.bf16.mxu1 %vm706_vm0, %v1280_v23  ;;  %v1288_v22 = vsel %vm706_vm0, %v1278_v21, 0 }
 0x5e5   :  { %v1274_v8 = vpop.permute.xlu0 %1273 }
 0x5e7   :  { %v1276_v24 = vpop.permute.xlu1 %1275 }
 0x5eb   :  { %v6612_v7 = vpop.eup %6611 }
 0x5ed   :  { %v6614_v63 = vpop.eup %6613 }
 0x5ee   :  { %v6616_v3 = vpop.eup %6615  ;;  %v1181_v4 = vpack.c.bf16 %v6614_v63, %v6612_v7 }
 0x5ef   :  { %v6618_v5 = vpop.eup %6617 }
 0x5f0   :  { %5948 = vmatprep.mubr.msk.bf16.mxu1 %vm706_vm0, %v1181_v4  ;;  %v1182_v6 = vpack.c.bf16 %v6618_v5, %v6616_v3 }
 0x5f2   :  { %5949 = vmatmul.mubr.msk.bf16.vlgmr.msra.gmra.mxu1 %vm706_vm0, %v1182_v6 }
 0x5f3   :  { %5953 = vmatpush3.bf16.xpose.msra.mxu1 %v1291_v20  ;;  %5956 = vmatprep.mubr.msk.bf16.mxu1 %vm706_vm0, %v1274_v8 }
 0x5f4   :  { %6282 = vmatprep.subr.msk.bf16.mxu1 %vm706_vm0, %v1278_v21 }
 0x5fb   :  { %5955 = vmatpush3.bf16.xpose.msra.mxu1 %v1288_v22 }
 0x602   :  { %5957 = vmatmul.mubr.msk.bf16.vlgmr.msra.gmra.mxu1 %vm706_vm0, %v1276_v24 }
 0x603   :  { %1915 = vmatprep.mubr.bf16.mxu1 %v7105_v38 }
 0x6b2   :  { %v7527_v25 = vpop.f32.mrf.mxu1 }
 0x6b4   :  { %v7529_v31 = vpop.f32.mrf.mxu1 }
 0x6b6   :  { %v7531_v33 = vpop.f32.mrf.mxu1 }
 0x6b8   :  { %v7533_v35 = vpop.f32.mrf.mxu1 }
 0x6c2   :  { %v5958_v36 = vpop.f32.mrf.mxu1 }
 0x6c3   :  { %v1336_v39 = vadd.f32 %v5958_v36, %v7410_v37 }
 0x6c4   :  { %v1327_v41 = vpop.f32.mrf.mxu1 }
 0x6c5   :  { %v1328_v42 = vadd.f32 %v1327_v41, %v7413_v40  ;;  %v1348_v43 = vsel %vm706_vm0, %v1336_v39, -inf  ;;  %v970_v40 = vsel %vm706_vm0, %v7465_v62, 0.0  ;;  %v1175_v62 = vsel %vm706_vm0, %v6616_v3, 0.0 }
 0x6c6   :  { %1349 = vmax.xlane.f32.xlu0 %v1348_v43  ;;  %v5959_v44 = vpop.f32.mrf.mxu1 }
 0x6c7   :  { %v1339_v52 = vadd.f32 %v5959_v44, %v7419_v45  ;;  %v1342_v56 = vsel %vm706_vm0, %v1328_v42, -inf  ;;  %v973_v45 = vsel %vm706_vm0, %v7469_v1, 0.0  ;;  %v1178_v1 = vsel %vm706_vm0, %v6618_v5, 0.0 }
 0x6c8   :  { %v1330_v47 = vpop.f32.mrf.mxu1  ;;  %v792_v44 = vsel %vm706_vm0, %v7449_v28, 0.0 }
 0x6c9   :  { %v1331_v53 = vadd.f32 %v1330_v47, %v7422_v51  ;;  %v1351_v37 = vsel %vm706_vm0, %v1339_v52, -inf  ;;  %v976_v51 = vsel %vm706_vm0, %v7471_v2, 0.0  ;;  %v795_v47 = vsel %vm706_vm0, %v7451_v29, 0.0 }
 0x6ca   :  { %1343 = vmax.xlane.f32.xlu0 %v1342_v56 }
 0x6cb   :  { %v1345_v58 = vsel %vm706_vm0, %v1331_v53, -inf }
 0x6cc   :  { %1346 = vmax.xlane.f32.xlu1 %v1345_v58 }
 0x6ce   :  { %1352 = vmax.xlane.f32.xlu0 %v1351_v37 }
 0x6dd   :  { %1382 = vrot.lane.b32.xlu1 %v7360_v10, %s7107_s13  ;;  %v1169_v10 = vsel %vm706_vm0, %v6612_v7, 0.0 }
 0x6e4   :  { %1380 = vrot.lane.b32.xlu0 %v7369_v14, %s7107_s13  ;;  %v1172_v14 = vsel %vm706_vm0, %v6614_v63, 0.0 }
 0x701   :  { %971 = vadd.xlane.f32.xlu1 %v970_v40 }
 0x703   :  { %974 = vadd.xlane.f32.xlu0 %v973_v45 }
 0x705   :  { %977 = vadd.xlane.f32.xlu1 %v976_v51 }
 0x707   :  { %980 = vadd.xlane.f32.xlu0 %v979_v26 }
 0x709   :  { %1170 = vadd.xlane.f32.xlu1 %v1169_v10 }
 0x70b   :  { %1173 = vadd.xlane.f32.xlu0 %v1172_v14 }
 0x70d   :  { %1176 = vadd.xlane.f32.xlu1 %v1175_v62 }
 0x70f   :  { %1179 = vadd.xlane.f32.xlu0 %v1178_v1 }
 0x74f   :  { %v1350_v59 = vpop.xlane.xlu0 %1349 }
 0x750   :  { %v1356_v60 = vsub.f32 %v1336_v39, %v1350_v59 }
 0x752   :  { %v1362_v61 = vmul.f32 1.442695, %v1356_v60 }
 0x753   :  { %v1344_v2 = vpop.xlane.xlu0 %1343 }
 0x754   :  { %v1354_v27 = vsub.f32 %v1328_v42, %v1344_v2 }
 0x755   :  { %v1347_v34 = vpop.xlane.xlu1 %1346 }
 0x756   :  { %v1358_v0 = vmul.f32 1.442695, %v1354_v27  ;;  %v1355_v23 = vsub.f32 %v1331_v53, %v1347_v34  ;;  %v801_v53 = vsel %vm706_vm0, %v7457_v32, 0.0  ;;  %v6388_v34 = vld [vmem:[%s8341_s17 + $0x30] sm:$0xff]  }
 0x757   :  { %v1353_v4 = vpop.xlane.xlu0 %1352 }
 0x758   :  { %6619 = vpow2.f32 %v1358_v0  ;;  %v1360_v7 = vmul.f32 1.442695, %v1355_v23  ;;  %v1357_v6 = vsub.f32 %v1339_v52, %v1353_v4  ;;  %v798_v52 = vsel %vm706_vm0, %v7453_v30, 0.0  ;;  %v6389_v0 = vld [vmem:[%s8341_s17 + $0x28] sm:$0xff]  }
 0x759   :  { %6621 = vpow2.f32 %v1362_v61  ;;  %v1383_v63 = vpop.permute.xlu1 %1382 }
 0x75a   :  { %6623 = vpow2.f32 %v1360_v7  ;;  %v1364_v3 = vmul.f32 1.442695, %v1357_v6  ;;  %5960 = vmatprep.subr.bf16.mxu0 %v1383_v63 }
 0x75b   :  { %5961 = vmatpush3.bf16.msra.mxu0 %v1383_v63  ;;  %v1381_v5 = vpop.permute.xlu0 %1380 }
 0x75c   :  { %6625 = vpow2.f32 %v1364_v3  ;;  %5962 = vmatprep.subr.bf16.mxu0 %v1381_v5 }
 0x75f   :  { %5963 = vmatpush3.bf16.msra.mxu0 %v1381_v5 }
 0x765   :  { %v6620_v8 = vpop.eup %6619 }
 0x766   :  { %v6622_v20 = vpop.eup %6621  ;;  %v1366_v21 = vsel %vm706_vm0, %v6620_v8, 0.0 }
 0x767   :  { %v6624_v22 = vpop.eup %6623  ;;  %1367 = vadd.xlane.f32.xlu1 %v1366_v21  ;;  %v1372_v41 = vsel %vm706_vm0, %v6622_v20, 0.0 }
 0x768   :  { %v1369_v24 = vsel %vm706_vm0, %v6624_v22, 0.0  ;;  %v1378_v36 = vpack.c.bf16 %v6624_v22, %v6620_v8 }
 0x769   :  { %v6626_v39 = vpop.eup %6625  ;;  %1370 = vadd.xlane.f32.xlu0 %v1369_v24 }
 0x76a   :  { %5964 = vmatprep.mubr.msk.bf16.mxu0 %vm706_vm0, %v1378_v36  ;;  %v1379_v42 = vpack.c.bf16 %v6626_v39, %v6622_v20  ;;  %v1375_v43 = vsel %vm706_vm0, %v6626_v39, 0.0 }
 0x76b   :  { %1373 = vadd.xlane.f32.xlu1 %v1372_v41 }
 0x76c   :  { %5965 = vmatmul.mubr.msk.bf16.vlgmr.msra.gmra.mxu0 %vm706_vm0, %v1379_v42 }
 0x76d   :  { %1376 = vadd.xlane.f32.xlu0 %v1375_v43 }
 0x76f   :  { %793 = vadd.xlane.f32.xlu1 %v792_v44 }
 0x771   :  { %796 = vadd.xlane.f32.xlu0 %v795_v47  ;;  %v6391_v47 = vld [vmem:[%s8341_s17 + $0x18] sm:$0xff]  }
 0x773   :  { %799 = vadd.xlane.f32.xlu1 %v798_v52  ;;  %v6392_v52 = vld [vmem:[%s8341_s17 + $0x10] sm:$0xff]  }
 0x775   :  { %802 = vadd.xlane.f32.xlu0 %v801_v53 }
 0x78a   :  { %v972_v56 = vpop.xlane.xlu1 %971 }
 0x78b   :  { %6627 = vrcp.f32 %v972_v56  ;;  %v6393_v56 = vld [vmem:[%s8341_s17 + $0x8] sm:$0xff]  }
 0x78c   :  { %v975_v58 = vpop.xlane.xlu0 %974 }
 0x78d   :  { %6629 = vrcp.f32 %v975_v58  ;;  %v6394_v58 = vld [vmem:[%s8341_s17] sm:$0xff]  }
 0x78e   :  { %v978_v37 = vpop.xlane.xlu1 %977 }
 0x78f   :  { %6631 = vrcp.f32 %v978_v37 }
 0x790   :  { %v981_v28 = vpop.xlane.xlu0 %980 }
 0x791   :  { %6633 = vrcp.f32 %v981_v28 }
 0x792   :  { %v1171_v40 = vpop.xlane.xlu1 %1170 }
 0x793   :  { %6635 = vrcp.f32 %v1171_v40 }
 0x794   :  { %v1174_v29 = vpop.xlane.xlu0 %1173 }
 0x795   :  { %6637 = vrcp.f32 %v1174_v29 }
 0x796   :  { %v1177_v45 = vpop.xlane.xlu1 %1176 }
 0x797   :  { %6639 = vrcp.f32 %v1177_v45 }
 0x798   :  { %v6628_v30 = vpop.eup %6627  ;;  %v1180_v51 = vpop.xlane.xlu0 %1179 }
 0x799   :  { %6641 = vrcp.f32 %v1180_v51  ;;  %v1051_v32 = vmul.f32 %v6628_v30, %v7494_v17 }
 0x79a   :  { %v6630_v26 = vpop.eup %6629 }
 0x79b   :  { %1059 = vrot.lane.b32.xlu1 %v1051_v32, %s7107_s13  ;;  %v1052_v10 = vmul.f32 %v6630_v26, %v7498_v19 }
 0x79c   :  { %v6632_v14 = vpop.eup %6631 }
 0x79d   :  { %1061 = vrot.lane.b32.xlu0 %v1052_v10, %s7107_s13  ;;  %v1053_v62 = vmul.f32 %v6632_v14, %v7492_v16 }
 0x79e   :  { %v6634_v1 = vpop.eup %6633 }
 0x79f   :  { %1063 = vrot.lane.b32.xlu1 %v1053_v62, %s7107_s13  ;;  %v1054_v17 = vmul.f32 %v6634_v1, %v7496_v18  ;;  %v6387_v18 = vld [vmem:[%s8341_s17 + $0x38] sm:$0xff]  }
 0x7a0   :  { %v6636_v59 = vpop.eup %6635  ;;  %5968 = vmatprep.subr.bf16.mxu0 %v6387_v18 }
 0x7a1   :  { %v1248_v60 = vmul.f32 %v6636_v59, %v7529_v31  ;;  %5969 = vmatpush3.bf16.msra.mxu0 %v6387_v18  ;;  %v5199_v18 = vld [vmem:[%s8342_s25] ss:$0 sm:$0xff] }
 0x7a2   :  { %v6638_v2 = vpop.eup %6637  ;;  %5970 = vmatprep.subr.bf16.mxu0 %v6388_v34 }
 0x7a3   :  { %1256 = vrot.lane.b32.xlu0 %v1248_v60, %s7097_s2  ;;  %1065 = vrot.lane.b32.xlu1 %v1054_v17, %s7107_s13  ;;  %v1249_v27 = vmul.f32 %v6638_v2, %v7533_v35 }
 0x7a4   :  { %v6640_v19 = vpop.eup %6639 }
 0x7a5   :  { %v1250_v16 = vmul.f32 %v6640_v19, %v7527_v25  ;;  %5971 = vmatpush3.bf16.msra.mxu0 %v6388_v34  ;;  %v6390_v25 = vld [vmem:[%s8341_s17 + $0x20] sm:$0xff]  }
 0x7a6   :  { %v6642_v61 = vpop.eup %6641  ;;  %5972 = vmatprep.subr.bf16.mxu0 %v6389_v0 }
 0x7a7   :  { %1260 = vrot.lane.b32.xlu0 %v1250_v16, %s7097_s2  ;;  %1258 = vrot.lane.b32.xlu1 %v1249_v27, %s7097_s2  ;;  %v1251_v31 = vmul.f32 %v6642_v61, %v7531_v33 }
 0x7a9   :  { %5973 = vmatpush3.bf16.msra.mxu0 %v6389_v0 }
 0x7aa   :  { %5974 = vmatprep.subr.bf16.mxu0 %v6390_v25 }
 0x7ab   :  { %1262 = vrot.lane.b32.xlu1 %v1251_v31, %s7097_s2 }
 0x7ad   :  { %5975 = vmatpush3.bf16.msra.mxu0 %v6390_v25 }
 0x7ae   :  { %5976 = vmatprep.subr.bf16.mxu0 %v6391_v47 }
 0x7b1   :  { %5977 = vmatpush3.bf16.msra.mxu0 %v6391_v47  ;;  %v6403_v47 = vld [vmem:[%s8343_s8 + $0xc4] ss:$16 sps:$4 sm:$0xff]  }
 0x7b2   :  { %5978 = vmatprep.subr.bf16.mxu0 %v6392_v52 }
 0x7b5   :  { %5979 = vmatpush3.bf16.msra.mxu0 %v6392_v52  ;;  %v6406_v52 = vld [vmem:[%s8343_s8 + $0xcc] ss:$16 sps:$4 sm:$0xff]  }
 0x7b6   :  { %5980 = vmatprep.subr.bf16.mxu0 %v6393_v56 }
 0x7b9   :  { %5981 = vmatpush3.bf16.msra.mxu0 %v6393_v56  ;;  %v6404_v56 = vld [vmem:[%s8343_s8 + $0xc8] ss:$16 sps:$4 sm:$0xff]  }
 0x7ba   :  { %5982 = vmatprep.subr.bf16.mxu0 %v6394_v58 }
 0x7bd   :  { %5983 = vmatpush3.bf16.msra.mxu0 %v6394_v58  ;;  %v6409_v58 = vld [vmem:[%s8343_s8 + $0xa4] ss:$16 sps:$4 sm:$0xff]  }
 0x7f0   :  { %v1368_v35 = vpop.xlane.xlu1 %1367 }
 0x7f2   :  { %v1371_v23 = vpop.xlane.xlu0 %1370 }
 0x7f4   :  { %v1374_v4 = vpop.xlane.xlu1 %1373 }
 0x7f6   :  { %v1377_v7 = vpop.xlane.xlu0 %1376 }
 0x7f8   :  { %v794_v6 = vpop.xlane.xlu1 %793 }
 0x7f9   :  { %6643 = vrcp.f32 %v794_v6 }
 0x7fa   :  { %v797_v33 = vpop.xlane.xlu0 %796 }
 0x7fb   :  { %6645 = vrcp.f32 %v797_v33 }
 0x7fc   :  { %v800_v63 = vpop.xlane.xlu1 %799 }
 0x7fd   :  { %6647 = vrcp.f32 %v800_v63 }
 0x7fe   :  { %v803_v3 = vpop.xlane.xlu0 %802 }
 0x7ff   :  { %6649 = vrcp.f32 %v803_v3 }
 0x800   :  { %6651 = vrcp.f32 %v1368_v35 }
 0x801   :  { %6653 = vrcp.f32 %v1371_v23 }
 0x802   :  { %6655 = vrcp.f32 %v1374_v4 }
 0x803   :  { %6657 = vrcp.f32 %v1377_v7 }
 0x806   :  { %v6644_v5 = vpop.eup %6643 }
 0x807   :  { %v865_v8 = vmul.f32 %v6644_v5, %v7486_v11  ;;  %v6395_v5 = vld [vmem:[%s8343_s8 + $0xe0] ss:$16 sps:$4 sm:$0xff]  }
 0x808   :  { %v6646_v20 = vpop.eup %6645 }
 0x809   :  { %869 = vst.msk [vmem:[#allocation2] sm:$0xff] %vm706_vm0, %v865_v8  ;;  %v866_v21 = vmul.f32 %v6646_v20, %v7490_v15  ;;  %v6397_v8 = vld [vmem:[%s8343_s8 + $0xe4] ss:$16 sps:$4 sm:$0xff]   ;;  %v6398_v20 = vld [vmem:[%s8343_s8 + $0xe8] ss:$16 sps:$4 sm:$0xff]  }
 0x80a   :  { %v6648_v22 = vpop.eup %6647  ;;  %1883 = vmatprep.subr.bf16.mxu1 %v6397_v8 }
 0x80b   :  { %870 = vst.msk [vmem:[#allocation2 + $0x8] sm:$0xff] %vm706_vm0, %v866_v21  ;;  %v867_v24 = vmul.f32 %v6648_v22, %v7484_v9  ;;  %v6400_v21 = vld [vmem:[%s8343_s8 + $0xec] ss:$16 sps:$4 sm:$0xff]   ;;  %1884 = vmatpush1.bf16.msra.mxu1 %v6395_v5 }
 0x80c   :  { %v6650_v36 = vpop.eup %6649  ;;  %1936 = vmatprep.subr.bf16.mxu0 %v6400_v21  ;;  %1885 = vmatprep.subr.bf16.mxu1 %v6403_v47 }
 0x80d   :  { %v1060_v39 = vpop.permute.xlu1 %1059  ;;  %871 = vst.msk [vmem:[#allocation2 + $0x10] sm:$0xff] %vm706_vm0, %v867_v24  ;;  %v868_v41 = vmul.f32 %v6650_v36, %v7488_v12  ;;  %v6652_v37 = vpop.eup %6651 }
 0x80e   :  { %1072 = vst.msk [vmem:[#allocation2] sm:$0xff] %vm1071_vm1, %v1060_v39  ;;  %v6654_v45 = vpop.eup %6653 }
 0x80f   :  { %v1062_v11 = vpop.permute.xlu0 %1061  ;;  %872 = vst.msk [vmem:[#allocation2 + $0x18] sm:$0xff] %vm706_vm0, %v868_v41  ;;  %v6656_v30 = vpop.eup %6655 }
 0x810   :  { %1073 = vst.msk [vmem:[#allocation2 + $0x8] sm:$0xff] %vm1071_vm1, %v1062_v11  ;;  %v6658_v10 = vpop.eup %6657 }
 0x811   :  { %v1064_v15 = vpop.permute.xlu1 %1063 }
 0x812   :  { %1074 = vst.msk [vmem:[#allocation2 + $0x10] sm:$0xff] %vm1071_vm1, %v1064_v15 }
 0x815   :  { %v1066_v42 = vpop.permute.xlu1 %1065  ;;  %v1257_v9 = vpop.permute.xlu0 %1256 }
 0x816   :  { %1075 = vst.msk [vmem:[#allocation2 + $0x18] sm:$0xff] %vm1071_vm1, %v1066_v42 }
 0x817   :  { %1269 = vst.msk [vmem:[#allocation2] sm:$0xff] %vm1268_vm2, %v1257_v9 }
 0x819   :  { %v1259_v12 = vpop.permute.xlu1 %1258  ;;  %v1261_v43 = vpop.permute.xlu0 %1260 }
 0x81a   :  { %1270 = vst.msk [vmem:[#allocation2 + $0x8] sm:$0xff] %vm1268_vm2, %v1259_v12  ;;  %1271 = vst.msk [vmem:[#allocation2 + $0x10] sm:$0xff] %vm1268_vm2, %v1261_v43 }
 0x81d   :  { %v1263_v44 = vpop.permute.xlu1 %1262 }
 0x81e   :  { %1272 = vst.msk [vmem:[#allocation2 + $0x18] sm:$0xff] %vm1268_vm2, %v1263_v44 }
 0x82c   :  { %v5966_v53 = vpop.f32.mrf.mxu0 }
 0x82d   :  { %v1447_v32 = vmul.f32 %v6656_v30, %v5966_v53  ;;  %v6401_v53 = vld [vmem:[%s8343_s8 + $0xc0] ss:$16 sps:$4 sm:$0xff]  }
 0x82e   :  { %v1426_v28 = vpop.f32.mrf.mxu0  ;;  %1886 = vmatpush1.bf16.msra.mxu1 %v6401_v53  ;;  %v6413_v30 = vld [vmem:[%s8343_s8 + $0x80] ss:$16 sps:$4 sm:$0xff]   ;;  %v6446_v53 = vld [vmem:[%s8344_s30 + $0xb8] sm:$0xff]  }
 0x82f   :  { %v1445_v40 = vmul.f32 %v6652_v37, %v1426_v28  ;;  %v6412_v37 = vld [vmem:[%s8343_s8 + $0xac] ss:$16 sps:$4 sm:$0xff]   ;;  %v6407_v28 = vld [vmem:[%s8343_s8 + $0xa0] ss:$16 sps:$4 sm:$0xff]   ;;  %1887 = vmatprep.subr.bf16.mxu1 %v6409_v58 }
 0x830   :  { %v5967_v29 = vpop.f32.mrf.mxu0  ;;  %v6448_v58 = vld [vmem:[%s8344_s30 + $0xf0] sm:$0xff]  }
 0x831   :  { %1453 = vrot.lane.b32.xlu0 %v1445_v40, %s7106_s5  ;;  %v1448_v14 = vmul.f32 %v6658_v10, %v5967_v29  ;;  %v6410_v40 = vld [vmem:[%s8343_s8 + $0xa8] ss:$16 sps:$4 sm:$0xff]   ;;  %v6415_v29 = vld [vmem:[%s8343_s8 + $0x84] ss:$16 sps:$4 sm:$0xff]  }
 0x832   :  { %v1429_v51 = vpop.f32.mrf.mxu0  ;;  %1888 = vmatpush1.bf16.msra.mxu1 %v6407_v28  ;;  %v6422_v10 = vld [vmem:[%s8343_s8 + $0x68] ss:$16 sps:$4 sm:$0xff]   ;;  %v6450_v28 = vld [vmem:[%s8344_s30 + $0xb0] sm:$0xff]  }
 0x833   :  { %v1446_v26 = vmul.f32 %v6654_v45, %v1429_v51  ;;  %v6418_v45 = vld [vmem:[%s8343_s8 + $0x8c] ss:$16 sps:$4 sm:$0xff]   ;;  %v6416_v51 = vld [vmem:[%s8343_s8 + $0x88] ss:$16 sps:$4 sm:$0xff]   ;;  %1889 = vmatprep.subr.bf16.mxu1 %v6415_v29 }
 0x834   :  { %v6452_v29 = vld [vmem:[%s8344_s30 + $0xe8] sm:$0xff]  }
 0x835   :  { %1457 = vrot.lane.b32.xlu0 %v1447_v32, %s7106_s5  ;;  %1455 = vrot.lane.b32.xlu1 %v1446_v26, %s7106_s5  ;;  %v6419_v32 = vld [vmem:[%s8343_s8 + $0x60] ss:$16 sps:$4 sm:$0xff]   ;;  %v6421_v26 = vld [vmem:[%s8343_s8 + $0x64] ss:$16 sps:$4 sm:$0xff]  }
 0x836   :  { %1890 = vmatpush1.bf16.msra.mxu1 %v6413_v30 }
 0x837   :  { %1891 = vmatprep.subr.bf16.mxu1 %v6421_v26  ;;  %v6455_v26 = vld [vmem:[%s8344_s30 + $0x60] sm:$0xff]  }
 0x839   :  { %1459 = vrot.lane.b32.xlu1 %v1448_v14, %s7106_s5  ;;  %v6424_v14 = vld [vmem:[%s8343_s8 + $0x6c] ss:$16 sps:$4 sm:$0xff]  }
 0x83a   :  { %1892 = vmatpush1.bf16.msra.mxu1 %v6419_v32  ;;  %v6454_v32 = vld [vmem:[%s8344_s30 + $0xa8] sm:$0xff]  }
 0x8a3   :  { %v1454_v62 = vpop.permute.xlu0 %1453 }
 0x8a4   :  { %1466 = vst.msk [vmem:[#allocation2] sm:$0xff] %vm1465_vm3, %v1454_v62  ;;  %v6427_v62 = vld [vmem:[%s8343_s8 + $0x44] ss:$16 sps:$4 sm:$0xff]  }
 0x8a5   :  { %1893 = vmatprep.subr.bf16.mxu1 %v6427_v62  ;;  %v6458_v62 = vld [vmem:[%s8344_s30 + $0xa0] sm:$0xff]  }
 0x8a7   :  { %v1456_v1 = vpop.permute.xlu1 %1455  ;;  %v1458_v59 = vpop.permute.xlu0 %1457 }
 0x8a8   :  { %1467 = vst.msk [vmem:[#allocation2 + $0x8] sm:$0xff] %vm1465_vm3, %v1456_v1  ;;  %1468 = vst.msk [vmem:[#allocation2 + $0x10] sm:$0xff] %vm1465_vm3, %v1458_v59  ;;  %v6430_v1 = vld [vmem:[%s8343_s8 + $0x4c] ss:$16 sps:$4 sm:$0xff]   ;;  %v6425_v59 = vld [vmem:[%s8343_s8 + $0x40] ss:$16 sps:$4 sm:$0xff]  }
 0x8a9   :  { %1894 = vmatpush1.bf16.msra.mxu1 %v6425_v59  ;;  %v6460_v59 = vld [vmem:[%s8344_s30 + $0xd8] sm:$0xff]  }
 0x8ab   :  { %v1460_v60 = vpop.permute.xlu1 %1459  ;;  %v1470_v17 = vld [vmem:[#allocation2] sm:$0xff] }
 0x8ac   :  { %1469 = vst.msk [vmem:[#allocation2 + $0x18] sm:$0xff] %vm1465_vm3, %v1460_v60  ;;  %v6428_v60 = vld [vmem:[%s8343_s8 + $0x48] ss:$16 sps:$4 sm:$0xff]  }
 0x8af   :  { %v1471_v2 = vld [vmem:[#allocation2 + $0x8] sm:$0xff]  ;;  %v1472_v16 = vld [vmem:[#allocation2 + $0x10] sm:$0xff] }
 0x8b0   :  { %v1474_v19 = vpack.c.bf16 %v1471_v2, %v1470_v17  ;;  %v6433_v17 = vld [vmem:[%s8343_s8 + $0x24] ss:$16 sps:$4 sm:$0xff]   ;;  %v6436_v2 = vld [vmem:[%s8343_s8 + $0x2c] ss:$16 sps:$4 sm:$0xff]  }
 0x8b1   :  { %1895 = vmatprep.subr.bf16.mxu1 %v6433_v17  ;;  %v6462_v17 = vld [vmem:[%s8344_s30 + $0x98] sm:$0xff]  }
 0x8b2   :  { %5984 = vmatprep.mubr.bf16.mxu0 %v1474_v19  ;;  %v6431_v19 = vld [vmem:[%s8343_s8 + $0x20] ss:$16 sps:$4 sm:$0xff]  }
 0x8b3   :  { %v1473_v27 = vld [vmem:[#allocation2 + $0x18] sm:$0xff]  ;;  %1896 = vmatpush1.bf16.msra.mxu1 %v6431_v19  ;;  %v6464_v19 = vld [vmem:[%s8344_s30 + $0xd0] sm:$0xff]  }
 0x8b4   :  { %v1475_v61 = vpack.c.bf16 %v1473_v27, %v1472_v16  ;;  %v6434_v16 = vld [vmem:[%s8343_s8 + $0x28] ss:$16 sps:$4 sm:$0xff]   ;;  %v6439_v27 = vld [vmem:[%s8343_s8 + $0x4] ss:$16 sps:$4 sm:$0xff]  }
 0x8b5   :  { %1897 = vmatprep.subr.bf16.mxu1 %v6439_v27  ;;  %v6466_v27 = vld [vmem:[%s8344_s30 + $0x90] sm:$0xff]  }
 0x8b6   :  { %5985 = vmatmul.mubr.bf16.vlgmr.msra.gmra.mxu0 %v1475_v61  ;;  %v6442_v61 = vld [vmem:[%s8343_s8 + $0xc] ss:$16 sps:$4 sm:$0xff]  }
 0x8b7   :  { %1968 = vmatprep.mubr.bf16.mxu0 %v7105_v38  ;;  %1937 = vmatpush1.bf16.msra.mxu0 %v6398_v20 }
 0x8b8   :  { %1938 = vmatprep.subr.bf16.mxu0 %v6406_v52 }
 0x8bb   :  { %1939 = vmatpush1.bf16.msra.mxu0 %v6404_v56  ;;  %v6447_v56 = vld [vmem:[%s8344_s30 + $0x70] sm:$0xff]  }
 0x8bc   :  { %1940 = vmatprep.subr.bf16.mxu0 %v6412_v37  ;;  %v6449_v37 = vld [vmem:[%s8344_s30 + $0x30] sm:$0xff]  }
 0x8bf   :  { %1941 = vmatpush1.bf16.msra.mxu0 %v6410_v40  ;;  %v6451_v40 = vld [vmem:[%s8344_s30 + $0x68] sm:$0xff]  }
 0x8c0   :  { %1942 = vmatprep.subr.bf16.mxu0 %v6418_v45 }
 0x8c3   :  { %1943 = vmatpush1.bf16.msra.mxu0 %v6416_v51  ;;  %v6453_v51 = vld [vmem:[%s8344_s30 + $0x28] sm:$0xff]  }
 0x8c4   :  { %1944 = vmatprep.subr.bf16.mxu0 %v6424_v14  ;;  %v6457_v14 = vld [vmem:[%s8344_s30 + $0x20] sm:$0xff]  }
 0x8c7   :  { %1945 = vmatpush1.bf16.msra.mxu0 %v6422_v10  ;;  %v6456_v10 = vld [vmem:[%s8344_s30 + $0xe0] sm:$0xff]  }
 0x8c8   :  { %1946 = vmatprep.subr.bf16.mxu0 %v6430_v1  ;;  %v6459_v1 = vld [vmem:[%s8344_s30 + $0x58] sm:$0xff]  }
 0x8cb   :  { %1947 = vmatpush1.bf16.msra.mxu0 %v6428_v60  ;;  %v6461_v60 = vld [vmem:[%s8344_s30 + $0x18] sm:$0xff]  }
 0x8cc   :  { %1948 = vmatprep.subr.bf16.mxu0 %v6436_v2  ;;  %v6463_v2 = vld [vmem:[%s8344_s30 + $0x50] sm:$0xff]  }
 0x8cf   :  { %1949 = vmatpush1.bf16.msra.mxu0 %v6434_v16  ;;  %v6465_v16 = vld [vmem:[%s8344_s30 + $0x10] sm:$0xff]  }
 0x8d0   :  { %1950 = vmatprep.subr.bf16.mxu0 %v6442_v61  ;;  %v6467_v61 = vld [vmem:[%s8344_s30 + $0x48] sm:$0xff]  }
 0x976   :  { %v5986_v31 = vpop.f32.mrf.mxu0 }
 0x977   :  { %v1590_v35 = vadd.f32 %v5986_v31, %v5199_v18  ;;  %v6437_v31 = vld [vmem:[%s8343_s8] ss:$16 sps:$4 sm:$0xff]  }
 0x978   :  { %v1581_v34 = vpop.f32.mrf.mxu0  ;;  %1898 = vmatpush1.bf16.msra.mxu1 %v6437_v31  ;;  %v6468_v31 = vld [vmem:[%s8344_s30 + $0xc8] sm:$0xff]  }
 0x979   :  { %v1582_v0 = vadd.f32 %v5199_v18, %v1581_v34  ;;  %v1598_v63 = vadd.f32 %v1590_v35, %v7341_v50  ;;  %v6443_v34 = vld [vmem:[%s8344_s30 + $0x78] sm:$0xff]  }
 0x97a   :  { %v5987_v25 = vpop.f32.mrf.mxu0  ;;  %5612 = vmatprep.subr.bf16.mxu1 %v6443_v34  ;;  %v6470_v34 = vld [vmem:[%s8344_s30 + $0x88] sm:$0xff]  }
 0x97b   :  { %v1596_v23 = vadd.f32 %v1582_v0, %v7337_v48  ;;  %v1593_v6 = vadd.f32 %v5987_v25, %v5199_v18  ;;  %v6444_v0 = vld [vmem:[%s8344_s30 + $0xf8] sm:$0xff]  }
 0x97c   :  { %v1584_v4 = vpop.f32.mrf.mxu0 }
 0x97d   :  { %v1585_v7 = vadd.f32 %v5199_v18, %v1584_v4  ;;  %1602 = vadd.xlane.f32.xlu0 %v1596_v23  ;;  %v1599_v3 = vadd.f32 %v1593_v6, %v7335_v46  ;;  %v6440_v18 = vld [vmem:[%s8343_s8 + $0x8] ss:$16 sps:$4 sm:$0xff]  }
 0x97e   :  { %1951 = vmatpush1.bf16.msra.mxu0 %v6440_v18  ;;  %v6469_v18 = vld [vmem:[%s8344_s30 + $0x8] sm:$0xff]  }
 0x97f   :  { %v1597_v33 = vadd.f32 %v1585_v7, %v7339_v49  ;;  %5640 = vmatprep.subr.bf16.mxu0 %v6444_v0  ;;  %v6471_v0 = vld [vmem:[%s8344_s30 + $0x40] sm:$0xff]  }
 0x981   :  { %1604 = vadd.xlane.f32.xlu1 %v1597_v33  ;;  %1606 = vadd.xlane.f32.xlu0 %v1598_v63 }
 0x985   :  { %1608 = vadd.xlane.f32.xlu0 %v1599_v3 }
 0xa06   :  { %v1603_v48 = vpop.xlane.xlu0 %1602 }
 0xa07   :  { %v1611_v22 = vmul.f32 0.0078125, %v1603_v48 }
 0xa09   :  { %v7631_v24 = vsub.f32 %v1596_v23, %v1611_v22  ;;  %v5208_v22 = vld [vmem:[#allocation9] ss:$0 sm:$0xff] }
 0xa0a   :  { %v1605_v49 = vpop.xlane.xlu1 %1604  ;;  %v1607_v36 = vpop.xlane.xlu0 %1606 }
 0xa0b   :  { %v1612_v50 = vmul.f32 0.0078125, %v1605_v49  ;;  %v1613_v39 = vmul.f32 0.0078125, %v1607_v36  ;;  %v1619_v46 = vmul.f32 %v7631_v24, %v7631_v24 }
 0xa0d   :  { %v7635_v41 = vsub.f32 %v1597_v33, %v1612_v50  ;;  %v7637_v11 = vsub.f32 %v1598_v63, %v1613_v39  ;;  %1623 = vadd.xlane.f32.xlu1 %v1619_v46  ;;  %v5209_v46 = vld [vmem:[#allocation11] ss:$0 sm:$0xff] }
 0xa0e   :  { %v1609_v15 = vpop.xlane.xlu0 %1608 }
 0xa0f   :  { %v1614_v42 = vmul.f32 0.0078125, %v1609_v15  ;;  %v1620_v9 = vmul.f32 %v7635_v41, %v7635_v41  ;;  %v1621_v12 = vmul.f32 %v7637_v11, %v7637_v11 }
 0xa11   :  { %v7643_v43 = vsub.f32 %v1599_v3, %v1614_v42  ;;  %1625 = vadd.xlane.f32.xlu0 %v1620_v9  ;;  %1627 = vadd.xlane.f32.xlu1 %v1621_v12 }
 0xa13   :  { %v1622_v44 = vmul.f32 %v7643_v43, %v7643_v43 }
 0xa15   :  { %1629 = vadd.xlane.f32.xlu0 %v1622_v44 }
 0xa96   :  { %v1624_v25 = vpop.xlane.xlu1 %1623 }
 0xa97   :  { %v1631_v35 = vmul.f32 0.0078125, %v1624_v25  ;;  %v6472_v25 = vld [vmem:[%s8344_s30 + $0xc0] sm:$0xff]  }
 0xa99   :  { %v1635_v23 = vadd.f32 1e-05, %v1631_v35  ;;  %v6473_v35 = vld [vmem:[%s8344_s30] sm:$0xff]  }
 0xa9a   :  { %v1628_v4 = vpop.xlane.xlu1 %1627  ;;  %v1626_v7 = vpop.xlane.xlu0 %1625 }
 0xa9b   :  { %6659 = vrsqrt.f32 %v1635_v23  ;;  %v1633_v6 = vmul.f32 0.0078125, %v1628_v4  ;;  %v1632_v33 = vmul.f32 0.0078125, %v1626_v7  ;;  %v6474_v23 = vld [vmem:[%s8344_s30 + $0x80] sm:$0xff]   ;;  %v1717_v4 = vsub.s32 3, %v7348_v54 }
 0xa9c   :  { %v1701_v7 = vld [vmem:[%s8345_s3] sm:$0xf] }
 0xa9d   :  { %v1636_v63 = vadd.f32 1e-05, %v1632_v33  ;;  %v1637_v3 = vadd.f32 1e-05, %v1633_v6 }
 0xa9e   :  { %v1630_v5 = vpop.xlane.xlu0 %1629 }
 0xa9f   :  { %v1634_v8 = vmul.f32 0.0078125, %v1630_v5  ;;  %6661 = vrsqrt.f32 %v1636_v63  ;;  %v1710_v63 = vrot.slane %v1701_v7, %v7363_v13  ;;  %v1706_v5 = vrot.slane %v1701_v7, %v7351_v55 }
 0xaa0   :  { %6663 = vrsqrt.f32 %v1637_v3  ;;  %v1718_v3 = vrot.slane %v1701_v7, %v1717_v4 }
 0xaa1   :  { %v1638_v20 = vadd.f32 1e-05, %v1634_v8  ;;  %v1714_v8 = vrot.slane %v1701_v7, %v7354_v57 }
 0xaa3   :  { %6665 = vrsqrt.f32 %v1638_v20 }
 0xaa8   :  { %v6660_v21 = vpop.eup %6659 }
 0xaa9   :  { %v1643_v48 = vmul.f32 %v6660_v21, %v7631_v24 }
 0xaab   :  { %v1653_v50 = vmul.f32 %v5208_v22, %v1643_v48 }
 0xaac   :  { %v6662_v49 = vpop.eup %6661 }
 0xaad   :  { %v1644_v36 = vmul.f32 %v6662_v49, %v7635_v41  ;;  %v6664_v39 = vpop.eup %6663  ;;  %v7680_v12 = vadd.f32 %v5209_v46, %v1653_v50  ;;  %v6445_v41 = vld [vmem:[%s8344_s30 + $0x38] sm:$0xff]  }
 0xaae   :  { %v1645_v24 = vmul.f32 %v6664_v39, %v7637_v11 }
 0xaaf   :  { %v1654_v42 = vmul.f32 %v5208_v22, %v1644_v36 }
 0xab0   :  { %v6666_v15 = vpop.eup %6665 }
 0xab1   :  { %v1646_v9 = vmul.f32 %v6666_v15, %v7643_v43  ;;  %v7682_v44 = vadd.f32 %v5209_v46, %v1654_v42  ;;  %v1655_v43 = vmul.f32 %v5208_v22, %v1645_v24 }
 0xab3   :  { %v1667_v47 = vpack.c.bf16 %v7682_v44, %v7680_v12  ;;  %v1656_v52 = vmul.f32 %v5208_v22, %v1646_v9  ;;  %v7699_v45 = vadd.f32 %v5209_v46, %v1655_v43 }
 0xab5   :  { %1916 = vmatmul.mubr.bf16.vlgmr.msra.gmra.mxu1 %v1667_v47  ;;  %1969 = vmatmul.mubr.bf16.vlgmr.msra.gmra.mxu0 %v1667_v47  ;;  %v7693_v11 = vadd.f32 %v5209_v46, %v1656_v52 }
 0xab6   :  { %1925 = vmatprep.mubr.bf16.mxu1 %v7105_v38  ;;  %1978 = vmatprep.mubr.bf16.mxu0 %v7105_v38 }
 0xab7   :  { %5613 = vmatpush3.bf16.msra.mxu1 %v6445_v41  ;;  %5641 = vmatpush3.bf16.msra.mxu0 %v6446_v53  ;;  %v1668_v30 = vpack.c.bf16 %v7693_v11, %v7699_v45 }
 0xab8   :  { %5614 = vmatprep.subr.bf16.mxu1 %v6447_v56  ;;  %5642 = vmatprep.subr.bf16.mxu0 %v6448_v58 }
 0xabb   :  { %5615 = vmatpush3.bf16.msra.mxu1 %v6449_v37  ;;  %5643 = vmatpush3.bf16.msra.mxu0 %v6450_v28 }
 0xabc   :  { %5616 = vmatprep.subr.bf16.mxu1 %v6451_v40  ;;  %5644 = vmatprep.subr.bf16.mxu0 %v6452_v29 }
 0xabd   :  { %1926 = vmatmul.mubr.bf16.gmra.mxu1 %v1668_v30  ;;  %1979 = vmatmul.mubr.bf16.gmra.mxu0 %v1668_v30 }
 0xabf   :  { %5617 = vmatpush3.bf16.msra.mxu1 %v6453_v51  ;;  %5645 = vmatpush3.bf16.msra.mxu0 %v6454_v32 }
 0xac0   :  { %5618 = vmatprep.subr.bf16.mxu1 %v6455_v26  ;;  %5646 = vmatprep.subr.bf16.mxu0 %v6456_v10 }
 0xac3   :  { %5619 = vmatpush3.bf16.msra.mxu1 %v6457_v14  ;;  %5647 = vmatpush3.bf16.msra.mxu0 %v6458_v62 }
 0xac4   :  { %5620 = vmatprep.subr.bf16.mxu1 %v6459_v1  ;;  %5648 = vmatprep.subr.bf16.mxu0 %v6460_v59 }
 0xac7   :  { %5621 = vmatpush3.bf16.msra.mxu1 %v6461_v60  ;;  %5649 = vmatpush3.bf16.msra.mxu0 %v6462_v17 }
 0xac8   :  { %5622 = vmatprep.subr.bf16.mxu1 %v6463_v2  ;;  %5650 = vmatprep.subr.bf16.mxu0 %v6464_v19 }
 0xacb   :  { %5623 = vmatpush3.bf16.msra.mxu1 %v6465_v16  ;;  %5651 = vmatpush3.bf16.msra.mxu0 %v6466_v27 }
 0xacc   :  { %5624 = vmatprep.subr.bf16.mxu1 %v6467_v61  ;;  %5652 = vmatprep.subr.bf16.mxu0 %v6468_v31 }
 0xacf   :  { %5625 = vmatpush3.bf16.msra.mxu1 %v6469_v18  ;;  %5653 = vmatpush3.bf16.msra.mxu0 %v6470_v34 }
 0xad0   :  { %5626 = vmatprep.subr.bf16.mxu1 %v6471_v0  ;;  %5654 = vmatprep.subr.bf16.mxu0 %v6472_v25 }
 0xad3   :  { %5627 = vmatpush3.bf16.msra.mxu1 %v6473_v35  ;;  %5655 = vmatpush3.bf16.msra.mxu0 %v6474_v23 }
 0xb75   :  { %v1917_v6 = vpop.f32.mrf.mxu1  ;;  %v1970_v33 = vpop.f32.mrf.mxu0 }
 0xb76   :  { %v1918_v46 = vadd.f32 %v1917_v6, %v1706_v5  ;;  %v1971_v15 = vadd.f32 %v1970_v33, %v1714_v8 }
 0xb77   :  { %v1919_v20 = vpop.f32.mrf.mxu1  ;;  %v1972_v21 = vpop.f32.mrf.mxu0 }
 0xb78   :  { %v1920_v49 = vadd.f32 %v1919_v20, %v1710_v63  ;;  %v1973_v36 = vadd.f32 %v1972_v21, %v1718_v3  ;;  %v1989_v40 = vmax.f32 %v1918_v46, 0.0  ;;  %v1991_v29 = vmax.f32 %v1971_v15, 0.0 }
 0xb79   :  { %v1921_v48 = vpop.f32.mrf.mxu1  ;;  %v1974_v22 = vpop.f32.mrf.mxu0 }
 0xb7a   :  { %v1922_v50 = vadd.f32 %v1921_v48, %v1706_v5  ;;  %v1975_v39 = vadd.f32 %v1974_v22, %v1714_v8  ;;  %v1990_v58 = vmax.f32 %v1920_v49, 0.0  ;;  %v1992_v43 = vmax.f32 %v1973_v36, 0.0 }
 0xb7b   :  { %v1923_v42 = vpop.f32.mrf.mxu1  ;;  %v1976_v9 = vpop.f32.mrf.mxu0 }
 0xb7c   :  { %v1924_v24 = vadd.f32 %v1923_v42, %v1710_v63  ;;  %v1977_v47 = vadd.f32 %v1976_v9, %v1718_v3  ;;  %v1993_v52 = vmax.f32 %v1922_v50, 0.0  ;;  %v1995_v41 = vmax.f32 %v1975_v39, 0.0 }
 0xb7d   :  { %v1927_v53 = vpop.f32.mrf.mxu1  ;;  %v1980_v56 = vpop.f32.mrf.mxu0 }
 0xb7e   :  { %v1994_v37 = vmax.f32 %v1924_v24, 0.0  ;;  %v1996_v28 = vmax.f32 %v1977_v47, 0.0  ;;  %v2005_v10 = vpack.c.bf16 %v1993_v52, %v1989_v40  ;;  %v2007_v14 = vpack.c.bf16 %v1995_v41, %v1991_v29 }
 0xb7f   :  { %v1929_v30 = vpop.f32.mrf.mxu1  ;;  %v1982_v51 = vpop.f32.mrf.mxu0  ;;  %v1928_v19 = vadd.f32 %v1927_v53, %v1706_v5  ;;  %v1981_v16 = vadd.f32 %v1980_v56, %v1714_v8 }
 0xb80   :  { %v2006_v32 = vpack.c.bf16 %v1994_v37, %v1990_v58  ;;  %v2008_v26 = vpack.c.bf16 %v1996_v28, %v1992_v43  ;;  %v1930_v62 = vadd.f32 %v1929_v30, %v1710_v63  ;;  %v1983_v60 = vadd.f32 %v1982_v51, %v1718_v3 }
 0xb81   :  { %v1931_v1 = vpop.f32.mrf.mxu1  ;;  %v1984_v59 = vpop.f32.mrf.mxu0  ;;  %v1997_v6 = vmax.f32 %v1928_v19, 0.0  ;;  %v1999_v33 = vmax.f32 %v1981_v16, 0.0  ;;  %v6475_v19 = vld [vmem:[%s7149_s29 + $0x168] ss:$12 sps:$4 sm:$0xff]   ;;  %v6477_v16 = vld [vmem:[%s7149_s29 + $0x16c] ss:$12 sps:$4 sm:$0xff]  }
 0xb82   :  { %v1932_v17 = vadd.f32 %v1931_v1, %v1706_v5  ;;  %v1985_v2 = vadd.f32 %v1984_v59, %v1714_v8  ;;  %2308 = vmatprep.mubr.bf16.mxu1 %v2006_v32  ;;  %2357 = vmatprep.mubr.bf16.mxu0 %v2008_v26  ;;  %v1998_v25 = vmax.f32 %v1930_v62, 0.0  ;;  %v2000_v35 = vmax.f32 %v1983_v60, 0.0  ;;  %v5242_v5 = vld [vmem:[#allocation8] ss:$0 sm:$0xff] }
 0xb83   :  { %v1933_v27 = vpop.f32.mrf.mxu1  ;;  %v1986_v61 = vpop.f32.mrf.mxu0  ;;  %2309 = vmatmul.mubr.bf16.vlgmr.msra.gmra.mxu1 %v2005_v10  ;;  %2358 = vmatmul.mubr.bf16.vlgmr.msra.gmra.mxu0 %v2007_v14 }
 0xb84   :  { %v1934_v31 = vadd.f32 %v1933_v27, %v1710_v63  ;;  %v1987_v18 = vadd.f32 %v1986_v61, %v1718_v3  ;;  %v2001_v34 = vmax.f32 %v1932_v17, 0.0  ;;  %v2003_v0 = vmax.f32 %v1985_v2, 0.0  ;;  %2625 = vmatprep.subr.bf16.mxu1 %v6477_v16 }
 0xb85   :  { %2626 = vmatpush1.bf16.msra.mxu1 %v6475_v19  ;;  %v5276_v19 = vld [vmem:[#allocation14] ss:$0 sm:$0xff] }
 0xb86   :  { %v2002_v23 = vmax.f32 %v1934_v31, 0.0  ;;  %v2004_v7 = vmax.f32 %v1987_v18, 0.0  ;;  %v2009_v48 = vpack.c.bf16 %v2001_v34, %v1997_v6  ;;  %v2011_v22 = vpack.c.bf16 %v2003_v0, %v1999_v33 }
 0xb88   :  { %v2010_v20 = vpack.c.bf16 %v2002_v23, %v1998_v25  ;;  %v2012_v21 = vpack.c.bf16 %v2004_v7, %v2000_v35 }
 0xb8a   :  { %2316 = vmatprep.mubr.bf16.mxu1 %v2010_v20  ;;  %2365 = vmatprep.mubr.bf16.mxu0 %v2012_v21  ;;  %v6480_v21 = vld [vmem:[%s7149_s29 + $0x154] ss:$12 sps:$4 sm:$0xff]  }
 0xb8b   :  { %2317 = vmatmul.mubr.bf16.gmra.mxu1 %v2009_v48  ;;  %2366 = vmatmul.mubr.bf16.gmra.mxu0 %v2011_v22  ;;  %v6478_v48 = vld [vmem:[%s7149_s29 + $0x150] ss:$12 sps:$4 sm:$0xff]  }
 0xb8c   :  { %2657 = vmatprep.mubr.bf16.mxu1 %v7105_v38  ;;  %2627 = vmatprep.subr.bf16.mxu1 %v6480_v21  ;;  %v6483_v22 = vld [vmem:[%s7149_s29 + $0x13c] ss:$12 sps:$4 sm:$0xff]  }
 0xb8d   :  { %2628 = vmatpush1.bf16.msra.mxu1 %v6478_v48 }
 0xb8e   :  { %2629 = vmatprep.subr.bf16.mxu1 %v6483_v22 }
 0xc43   :  { %v5628_v63 = vpop.f32.mrf.mxu1  ;;  %v5656_v3 = vpop.f32.mrf.mxu0 }
 0xc45   :  { %v5629_v8 = vpop.f32.mrf.mxu1  ;;  %v5657_v49 = vpop.f32.mrf.mxu0 }
 0xc46   :  { %v5630_v36 = vadd.f32 %v5629_v8, %v5628_v63  ;;  %v5658_v15 = vadd.f32 %v5657_v49, %v5656_v3  ;;  %v6484_v63 = vld [vmem:[%s7149_s29 + $0x170] ss:$12 sps:$4 sm:$0xff]   ;;  %v6481_v3 = vld [vmem:[%s7149_s29 + $0x138] ss:$12 sps:$4 sm:$0xff]   ;;  %v6485_v49 = vld [vmem:[%s7149_s29 + $0x120] ss:$12 sps:$4 sm:$0xff]  }
 0xc47   :  { %v5631_v50 = vpop.f32.mrf.mxu1  ;;  %v5659_v39 = vpop.f32.mrf.mxu0  ;;  %5988 = vmatprep.subr.bf16.mxu0 %v6484_v63  ;;  %2630 = vmatpush1.bf16.msra.mxu1 %v6481_v3  ;;  %v6488_v8 = vld [vmem:[%s7149_s29 + $0x158] ss:$12 sps:$4 sm:$0xff]  }
 0xc48   :  { %v2311_v46 = vadd.f32 %v5630_v36, %v5242_v5  ;;  %5989 = vmatpush3.bf16.msra.mxu0 %v6484_v63  ;;  %v6491_v36 = vld [vmem:[%s7149_s29 + $0x10c] ss:$12 sps:$4 sm:$0xff]  }
 0xc49   :  { %v5632_v42 = vpop.f32.mrf.mxu1  ;;  %v5660_v9 = vpop.f32.mrf.mxu0  ;;  %5990 = vmatprep.subr.bf16.mxu0 %v6488_v8 }
 0xc4a   :  { %v2360_v24 = vadd.f32 %v5658_v15, %v2311_v46  ;;  %v5633_v47 = vadd.f32 %v5632_v42, %v5631_v50  ;;  %v5661_v56 = vadd.f32 %v5660_v9, %v5659_v39  ;;  %v6492_v50 = vld [vmem:[%s7149_s29 + $0x140] ss:$12 sps:$4 sm:$0xff]   ;;  %v6489_v39 = vld [vmem:[%s7149_s29 + $0x108] ss:$12 sps:$4 sm:$0xff]   ;;  %v6493_v42 = vld [vmem:[%s7149_s29 + $0xf0] ss:$12 sps:$4 sm:$0xff]  }
 0xc4b   :  { %v5634_v52 = vpop.f32.mrf.mxu1  ;;  %v5662_v41 = vpop.f32.mrf.mxu0  ;;  %v6495_v46 = vld [vmem:[%s7149_s29 + $0xf4] ss:$12 sps:$4 sm:$0xff]   ;;  %v6499_v9 = vld [vmem:[%s7149_s29 + $0xdc] ss:$12 sps:$4 sm:$0xff]  }
 0xc4c   :  { %v2314_v53 = vadd.f32 %v5633_v47, %v5242_v5  ;;  %v2374_v58 = vadd.f32 %v2360_v24, %v7680_v12  ;;  %5991 = vmatpush3.bf16.msra.mxu0 %v6488_v8  ;;  %v6496_v15 = vld [vmem:[%s7149_s29 + $0x128] ss:$12 sps:$4 sm:$0xff]   ;;  %v6500_v24 = vld [vmem:[%s7149_s29 + $0x110] ss:$12 sps:$4 sm:$0xff]   ;;  %v6497_v47 = vld [vmem:[%s7149_s29 + $0xd8] ss:$12 sps:$4 sm:$0xff]  }
 0xc4d   :  { %v5635_v43 = vpop.f32.mrf.mxu1  ;;  %v5663_v37 = vpop.f32.mrf.mxu0  ;;  %5992 = vmatprep.subr.bf16.mxu0 %v6492_v50 }
 0xc4e   :  { %v2363_v28 = vadd.f32 %v5661_v56, %v2314_v53  ;;  %v5636_v40 = vadd.f32 %v5635_v43, %v5634_v52  ;;  %2380 = vadd.xlane.f32.xlu1 %v2374_v58  ;;  %v5664_v32 = vadd.f32 %v5663_v37, %v5662_v41  ;;  %v6503_v52 = vld [vmem:[%s7149_s29 + $0xc4] ss:$12 sps:$4 sm:$0xff]   ;;  %v6501_v53 = vld [vmem:[%s7149_s29 + $0xc0] ss:$12 sps:$4 sm:$0xff]  }
 0xc4f   :  { %v5637_v29 = vpop.f32.mrf.mxu1  ;;  %v5665_v30 = vpop.f32.mrf.mxu0  ;;  %v6504_v41 = vld [vmem:[%s7149_s29 + $0xf8] ss:$12 sps:$4 sm:$0xff]   ;;  %v6505_v56 = vld [vmem:[%s7149_s29 + $0xe0] ss:$12 sps:$4 sm:$0xff]  }
 0xc50   :  { %v2319_v51 = vadd.f32 %v5636_v40, %v5242_v5  ;;  %v2375_v26 = vadd.f32 %v2363_v28, %v7682_v44  ;;  %5993 = vmatpush3.bf16.msra.mxu0 %v6492_v50 }
 0xc51   :  { %v5638_v10 = vpop.f32.mrf.mxu1  ;;  %v5666_v14 = vpop.f32.mrf.mxu0  ;;  %5994 = vmatprep.subr.bf16.mxu0 %v6496_v15 }
 0xc52   :  { %v2368_v62 = vadd.f32 %v5664_v32, %v2319_v51  ;;  %v5639_v1 = vadd.f32 %v5638_v10, %v5637_v29  ;;  %2382 = vadd.xlane.f32.xlu0 %v2375_v26  ;;  %v5667_v12 = vadd.f32 %v5666_v14, %v5665_v30 }
 0xc54   :  { %v2322_v59 = vadd.f32 %v5639_v1, %v5242_v5  ;;  %v2376_v60 = vadd.f32 %v2368_v62, %v7699_v45  ;;  %v6487_v5 = vld [vmem:[%s7149_s29 + $0x124] ss:$12 sps:$4 sm:$0xff]   ;;  %5995 = vmatpush3.bf16.msra.mxu0 %v6496_v15 }
 0xc55   :  { %2631 = vmatprep.subr.bf16.mxu1 %v6487_v5  ;;  %5996 = vmatprep.subr.bf16.mxu0 %v6500_v24 }
 0xc56   :  { %v2371_v17 = vadd.f32 %v5667_v12, %v2322_v59  ;;  %2384 = vadd.xlane.f32.xlu1 %v2376_v60  ;;  %2632 = vmatpush1.bf16.msra.mxu1 %v6485_v49  ;;  %v5275_v12 = vld [vmem:[#allocation12] ss:$0 sm:$0xff] }
 0xc57   :  { %2633 = vmatprep.subr.bf16.mxu1 %v6491_v36 }
 0xc58   :  { %v2377_v2 = vadd.f32 %v2371_v17, %v7693_v11  ;;  %5997 = vmatpush3.bf16.msra.mxu0 %v6500_v24 }
 0xc59   :  { %5998 = vmatprep.subr.bf16.mxu0 %v6504_v41 }
 0xc5a   :  { %2386 = vadd.xlane.f32.xlu0 %v2377_v2  ;;  %2634 = vmatpush1.bf16.msra.mxu1 %v6489_v39 }
 0xc5b   :  { %2635 = vmatprep.subr.bf16.mxu1 %v6495_v46 }
 0xc5c   :  { %5999 = vmatpush3.bf16.msra.mxu0 %v6504_v41 }
 0xc5d   :  { %6000 = vmatprep.subr.bf16.mxu0 %v6505_v56 }
 0xc5e   :  { %2636 = vmatpush1.bf16.msra.mxu1 %v6493_v42 }
 0xc5f   :  { %2637 = vmatprep.subr.bf16.mxu1 %v6499_v9 }
 0xc60   :  { %6001 = vmatpush3.bf16.msra.mxu0 %v6505_v56 }
 0xc62   :  { %2638 = vmatpush1.bf16.msra.mxu1 %v6497_v47 }
 0xc63   :  { %2639 = vmatprep.subr.bf16.mxu1 %v6503_v52 }
 0xc66   :  { %2640 = vmatpush1.bf16.msra.mxu1 %v6501_v53 }
 0xcd7   :  { %v2381_v27 = vpop.xlane.xlu1 %2380 }
 0xcd8   :  { %v2388_v44 = vmul.f32 0.0078125, %v2381_v27 }
 0xcda   :  { %v7739_v61 = vsub.f32 %v2374_v58, %v2388_v44  ;;  %v6506_v58 = vld [vmem:[%s7149_s29 + $0xc8] ss:$12 sps:$4 sm:$0xff]   ;;  %s8347_s29 = sld [smem:[#allocation40_spill]] }
 0xcdb   :  { %v2383_v31 = vpop.xlane.xlu0 %2382  ;;  %6002 = vmatprep.subr.bf16.mxu0 %v6506_v58 }
 0xcdc   :  { %v2389_v18 = vmul.f32 0.0078125, %v2383_v31  ;;  %v2396_v34 = vmul.f32 %v7739_v61, %v7739_v61  ;;  %6003 = vmatpush3.bf16.msra.mxu0 %v6506_v58 }
 0xcde   :  { %v7743_v45 = vsub.f32 %v2375_v26, %v2389_v18  ;;  %2400 = vadd.xlane.f32.xlu1 %v2396_v34 }
 0xcdf   :  { %v2385_v11 = vpop.xlane.xlu1 %2384 }
 0xce0   :  { %v2390_v0 = vmul.f32 0.0078125, %v2385_v11  ;;  %v2397_v25 = vmul.f32 %v7743_v45, %v7743_v45 }
 0xce2   :  { %v7747_v35 = vsub.f32 %v2376_v60, %v2390_v0  ;;  %2402 = vadd.xlane.f32.xlu0 %v2397_v25 }
 0xce3   :  { %v2387_v23 = vpop.xlane.xlu0 %2386 }
 0xce4   :  { %v2391_v7 = vmul.f32 0.0078125, %v2387_v23  ;;  %v2398_v6 = vmul.f32 %v7747_v35, %v7747_v35 }
 0xce6   :  { %v7751_v33 = vsub.f32 %v2377_v2, %v2391_v7  ;;  %2404 = vadd.xlane.f32.xlu1 %v2398_v6 }
 0xce8   :  { %v2399_v20 = vmul.f32 %v7751_v33, %v7751_v33 }
 0xcea   :  { %2406 = vadd.xlane.f32.xlu0 %v2399_v20 }
 0xd67   :  { %v2401_v43 = vpop.xlane.xlu1 %2400 }
 0xd68   :  { %v2408_v37 = vmul.f32 0.0078125, %v2401_v43 }
 0xd6a   :  { %v2412_v28 = vadd.f32 1e-05, %v2408_v37 }
 0xd6b   :  { %v2403_v40 = vpop.xlane.xlu0 %2402 }
 0xd6c   :  { %6667 = vrsqrt.f32 %v2412_v28  ;;  %v2409_v29 = vmul.f32 0.0078125, %v2403_v40 }
 0xd6e   :  { %v2413_v30 = vadd.f32 1e-05, %v2409_v29 }
 0xd6f   :  { %v2405_v51 = vpop.xlane.xlu1 %2404 }
 0xd70   :  { %6669 = vrsqrt.f32 %v2413_v30  ;;  %v2410_v32 = vmul.f32 0.0078125, %v2405_v51 }
 0xd72   :  { %v2414_v26 = vadd.f32 1e-05, %v2410_v32 }
 0xd73   :  { %v2407_v10 = vpop.xlane.xlu0 %2406 }
 0xd74   :  { %6671 = vrsqrt.f32 %v2414_v26  ;;  %v2411_v14 = vmul.f32 0.0078125, %v2407_v10 }
 0xd76   :  { %v2415_v62 = vadd.f32 1e-05, %v2411_v14 }
 0xd78   :  { %6673 = vrsqrt.f32 %v2415_v62  ;;  %v7826_v62 = vld [vmem:[%s7124_s9 + $0x10] sm:$0xff] }
 0xd79   :  { %v6668_v1 = vpop.eup %6667 }
 0xd7a   :  { %v2420_v59 = vmul.f32 %v6668_v1, %v7739_v61 }
 0xd7c   :  { %v2430_v2 = vmul.f32 %v5275_v12, %v2420_v59 }
 0xd7d   :  { %v6670_v60 = vpop.eup %6669 }
 0xd7e   :  { %v2421_v17 = vmul.f32 %v6670_v60, %v7743_v45  ;;  %v7779_v44 = vadd.f32 %v5276_v19, %v2430_v2 }
 0xd80   :  { %v2431_v16 = vmul.f32 %v5275_v12, %v2421_v17 }
 0xd81   :  { %v6672_v27 = vpop.eup %6671 }
 0xd82   :  { %v7781_v31 = vadd.f32 %v5276_v19, %v2431_v16  ;;  %v2422_v18 = vmul.f32 %v6672_v27, %v7747_v35  ;;  %v2480_v35 = vld [vmem:[#allocation6 + $0x3] sm:$0x7]  ;;  %v7835_v16 = vld [vmem:[%s7124_s9 + $0x8] sm:$0xff] }
 0xd83   :  { %v2485_v20 = vrot.slane %v2480_v35, %v7351_v55  ;;  %v2489_v50 = vrot.slane %v2480_v35, %v7363_v13  ;;  %v2493_v56 = vrot.slane %v2480_v35, %v7354_v57 }
 0xd84   :  { %v2444_v34 = vpack.c.bf16 %v7781_v31, %v7779_v44  ;;  %v2432_v0 = vmul.f32 %v5275_v12, %v2422_v18 }
 0xd85   :  { %v6674_v11 = vpop.eup %6673 }
 0xd86   :  { %2658 = vmatmul.mubr.bf16.vlgmr.msra.gmra.mxu1 %v2444_v34  ;;  %6004 = vmatprep.mubr.bf16.mxu0 %v2444_v34  ;;  %v2423_v61 = vmul.f32 %v6674_v11, %v7751_v33  ;;  %v7788_v25 = vadd.f32 %v5276_v19, %v2432_v0  ;;  %v7840_v34 = vld [vmem:[%s7124_s9 + $0x18] sm:$0xff] }
 0xd87   :  { %2667 = vmatprep.mubr.bf16.mxu1 %v7105_v38 }
 0xd88   :  { %v2433_v45 = vmul.f32 %v5275_v12, %v2423_v61  ;;  %v7830_v12 = vld [vmem:[%s7124_s9] sm:$0xff]  ;;  %s8346_s9 = sld [smem:[#allocation33_spill]] }
 0xd8a   :  { %v7790_v23 = vadd.f32 %v5276_v19, %v2433_v45 }
 0xd8c   :  { %v2445_v7 = vpack.c.bf16 %v7790_v23, %v7788_v25 }
 0xd8e   :  { %2668 = vmatmul.mubr.bf16.gmra.mxu1 %v2445_v7  ;;  %6005 = vmatmul.mubr.bf16.vlgmr.msra.gmra.mxu0 %v2445_v7 }
 0xe46   :  { %v2659_v6 = vpop.f32.mrf.mxu1 }
 0xe47   :  { %v2660_v33 = vadd.f32 %v2659_v6, %v2485_v20 }
 0xe48   :  { %v2661_v21 = vpop.f32.mrf.mxu1 }
 0xe49   :  { %v2662_v24 = vadd.f32 %v2661_v21, %v2489_v50 }
 0xe4a   :  { %v2663_v48 = vpop.f32.mrf.mxu1 }
 0xe4b   :  { %v2664_v22 = vadd.f32 %v2663_v48, %v2485_v20 }
 0xe4c   :  { %v2665_v63 = vpop.f32.mrf.mxu1 }
 0xe4d   :  { %v7795_v3 = vpack.c.bf16 %v2664_v22, %v2660_v33  ;;  %v2666_v46 = vadd.f32 %v2665_v63, %v2489_v50 }
 0xe4e   :  { %v2669_v5 = vpop.f32.mrf.mxu1  ;;  %v6006_v49 = vpop.f32.mrf.mxu0 }
 0xe4f   :  { %6012 = vmatprep.mubr.msk.bf16.mxu1 %vm706_vm0, %v7795_v3  ;;  %v7802_v52 = vpack.c.bf16 %v2666_v46, %v2662_v24  ;;  %v2721_v43 = vadd.f32 %v6006_v49, %v2493_v56  ;;  %v2670_v30 = vadd.f32 %v2669_v5, %v2485_v20 }
 0xe50   :  { %v2671_v8 = vpop.f32.mrf.mxu1  ;;  %v2712_v9 = vpop.f32.mrf.mxu0 }
 0xe51   :  { %v2672_v15 = vadd.f32 %v2671_v8, %v2489_v50  ;;  %v2740_v28 = vsel %vm706_vm0, %v7802_v52, 0  ;;  %v2713_v32 = vadd.f32 %v2712_v9, %v2493_v56 }
 0xe52   :  { %v2673_v36 = vpop.f32.mrf.mxu1  ;;  %v6007_v53 = vpop.f32.mrf.mxu0 }
 0xe53   :  { %v2724_v58 = vadd.f32 %v6007_v53, %v2493_v56  ;;  %v2674_v29 = vadd.f32 %v2673_v36, %v2485_v20 }
 0xe54   :  { %v2675_v39 = vpop.f32.mrf.mxu1  ;;  %v2715_v40 = vpop.f32.mrf.mxu0 }
 0xe55   :  { %v2676_v42 = vadd.f32 %v2675_v39, %v2489_v50  ;;  %v7811_v37 = vpack.c.bf16 %v2724_v58, %v2721_v43  ;;  %v2716_v51 = vadd.f32 %v2715_v40, %v2493_v56  ;;  %v7816_v26 = vpack.c.bf16 %v2674_v29, %v2670_v30 }
 0xe57   :  { %v7800_v47 = vpack.c.bf16 %v2676_v42, %v2672_v15  ;;  %v7818_v10 = vpack.c.bf16 %v2716_v51, %v2713_v32 }
 0xe59   :  { %6283 = vmatprep.subr.msk.bf16.mxu1 %vm706_vm0, %v7800_v47  ;;  %v2743_v41 = vsel %vm706_vm0, %v7800_v47, 0 }
 0xe5a   :  { %6009 = vmatpush3.bf16.xpose.msra.mxu1 %v2743_v41 }
 0xe5b   :  { %6284 = vmatprep.subr.msk.bf16.mxu1 %vm706_vm0, %v7802_v52 }
 0xe62   :  { %6011 = vmatpush3.bf16.xpose.msra.mxu1 %v2740_v28 }
 0xe63   :  { %6016 = vmatprep.subr.bf16.mxu1 %v7811_v37 }
 0xe69   :  { %6013 = vmatmul.mubr.msk.bf16.vlgmr.msra.gmra.mxu1 %vm706_vm0, %v7816_v26 }
 0xe6a   :  { %6017 = vmatpush3.bf16.msra.mxu1 %v7811_v37 }
 0xe6b   :  { %6018 = vmatprep.subr.bf16.mxu1 %v7818_v10 }
 0xe6e   :  { %6019 = vmatpush3.bf16.msra.mxu1 %v7818_v10 }
 0xf29   :  { %v6014_v14 = vpop.f32.mrf.mxu1 }
 0xf2a   :  { %v2788_v1 = vadd.f32 %v7826_v62, %v6014_v14 }
 0xf2b   :  { %v2779_v59 = vpop.f32.mrf.mxu1 }
 0xf2c   :  { %v2780_v60 = vadd.f32 %v7830_v12, %v2779_v59  ;;  %v2800_v17 = vsel %vm706_vm0, %v2788_v1, -inf }
 0xf2d   :  { %2801 = vmax.xlane.f32.xlu1 %v2800_v17  ;;  %v6015_v2 = vpop.f32.mrf.mxu1 }
 0xf2e   :  { %v2794_v18 = vsel %vm706_vm0, %v2780_v60, -inf  ;;  %v2791_v11 = vadd.f32 %v7840_v34, %v6015_v2 }
 0xf2f   :  { %v2782_v19 = vpop.f32.mrf.mxu1 }
 0xf30   :  { %v2783_v27 = vadd.f32 %v7835_v16, %v2782_v19  ;;  %v2803_v0 = vsel %vm706_vm0, %v2791_v11, -inf }
 0xf31   :  { %2795 = vmax.xlane.f32.xlu1 %v2794_v18 }
 0xf32   :  { %v2797_v61 = vsel %vm706_vm0, %v2783_v27, -inf }
 0xf33   :  { %2798 = vmax.xlane.f32.xlu0 %v2797_v61 }
 0xf37   :  { %2804 = vmax.xlane.f32.xlu0 %v2803_v0 }
 0xf42   :  { %2909 = vrot.lane.b32.xlu1 %v7800_v47, %s7106_s5 }
 0xf46   :  { %2901 = vrot.lane.b32.xlu1 %v7795_v3, %s7106_s5 }
 0xf4a   :  { %2903 = vrot.lane.b32.xlu1 %v7816_v26, %s7106_s5 }
 0xf4d   :  { %2907 = vrot.lane.b32.xlu0 %v7802_v52, %s7106_s5 }
 0xf4e   :  { %3014 = vrot.lane.b32.xlu1 %v7811_v37, %s7106_s5 }
 0xfb6   :  { %v2802_v45 = vpop.xlane.xlu1 %2801 }
 0xfb7   :  { %v2808_v6 = vsub.f32 %v2788_v1, %v2802_v45 }
 0xfb9   :  { %v2814_v63 = vmul.f32 1.442695, %v2808_v6 }
 0xfba   :  { %v2796_v7 = vpop.xlane.xlu1 %2795 }
 0xfbb   :  { %v2806_v35 = vsub.f32 %v2780_v60, %v2796_v7 }
 0xfbc   :  { %v2799_v20 = vpop.xlane.xlu0 %2798 }
 0xfbd   :  { %v2810_v21 = vmul.f32 1.442695, %v2806_v35  ;;  %v2807_v48 = vsub.f32 %v2783_v27, %v2799_v20 }
 0xfbe   :  { %v2910_v33 = vpop.permute.xlu1 %2909 }
 0xfbf   :  { %v2812_v22 = vmul.f32 1.442695, %v2807_v48  ;;  %6285 = vmatprep.subr.msk.bf16.mxu1 %vm706_vm0, %v2910_v33  ;;  %6675 = vpow2.f32 %v2810_v21  ;;  %v2921_v53 = vsel %vm706_vm0, %v2910_v33, 0 }
 0xfc0   :  { %v2805_v5 = vpop.xlane.xlu0 %2804 }
 0xfc1   :  { %6677 = vpow2.f32 %v2812_v22  ;;  %v2809_v8 = vsub.f32 %v2791_v11, %v2805_v5 }
 0xfc2   :  { %v2902_v49 = vpop.permute.xlu1 %2901  ;;  %6679 = vpow2.f32 %v2814_v63 }
 0xfc3   :  { %v2816_v36 = vmul.f32 1.442695, %v2809_v8 }
 0xfc4   :  { %v2908_v56 = vpop.permute.xlu0 %2907 }
 0xfc5   :  { %6681 = vpow2.f32 %v2816_v36  ;;  %v2918_v58 = vsel %vm706_vm0, %v2908_v56, 0 }
 0xfc6   :  { %v2904_v50 = vpop.permute.xlu1 %2903 }
 0xfca   :  { %v3015_v39 = vpop.permute.xlu1 %3014 }
 0xfcb   :  { %6032 = vmatprep.subr.bf16.mxu0 %v3015_v39 }
 0xfcc   :  { %6033 = vmatpush3.bf16.msra.mxu0 %v3015_v39  ;;  %v7856_v46 = vpop.eup %6675 }
 0xfce   :  { %v7858_v15 = vpop.eup %6677 }
 0xfcf   :  { %v2830_v42 = vpack.c.bf16 %v7858_v15, %v7856_v46  ;;  %v7862_v9 = vpop.eup %6679 }
 0xfd1   :  { %6020 = vmatprep.mubr.msk.bf16.mxu1 %vm706_vm0, %v2830_v42 }
 0xfd2   :  { %v7865_v24 = vpop.eup %6681 }
 0xfd3   :  { %v2831_v41 = vpack.c.bf16 %v7865_v24, %v7862_v9 }
 0xfd5   :  { %6021 = vmatmul.mubr.msk.bf16.vlgmr.msra.gmra.mxu1 %vm706_vm0, %v2831_v41 }
 0xfd6   :  { %6025 = vmatpush3.bf16.xpose.msra.mxu1 %v2921_v53  ;;  %6028 = vmatprep.mubr.msk.bf16.mxu1 %vm706_vm0, %v2902_v49 }
 0xfd7   :  { %6286 = vmatprep.subr.msk.bf16.mxu1 %vm706_vm0, %v2908_v56 }
 0xfde   :  { %6027 = vmatpush3.bf16.xpose.msra.mxu1 %v2918_v58 }
 0xfe5   :  { %6029 = vmatmul.mubr.msk.bf16.vlgmr.msra.gmra.mxu1 %vm706_vm0, %v2904_v50 }
0x1095   :  { %v7875_v43 = vpop.f32.mrf.mxu1 }
0x1097   :  { %v7877_v28 = vpop.f32.mrf.mxu1 }
0x1099   :  { %v7879_v40 = vpop.f32.mrf.mxu1 }
0x109b   :  { %v7881_v29 = vpop.f32.mrf.mxu1 }
0x10a5   :  { %v6030_v30 = vpop.f32.mrf.mxu1 }
0x10a6   :  { %v2966_v51 = vadd.f32 %v7826_v62, %v6030_v30 }
0x10a7   :  { %v2957_v32 = vpop.f32.mrf.mxu1 }
0x10a8   :  { %v2958_v14 = vadd.f32 %v7830_v12, %v2957_v32  ;;  %v2978_v1 = vsel %vm706_vm0, %v2966_v51, -inf }
0x10a9   :  { %2979 = vmax.xlane.f32.xlu0 %v2978_v1  ;;  %v6031_v59 = vpop.f32.mrf.mxu1 }
0x10aa   :  { %v2969_v17 = vadd.f32 %v7840_v34, %v6031_v59  ;;  %v2972_v19 = vsel %vm706_vm0, %v2958_v14, -inf }
0x10ab   :  { %v2960_v60 = vpop.f32.mrf.mxu1 }
0x10ac   :  { %v2961_v2 = vadd.f32 %v7835_v16, %v2960_v60  ;;  %v2981_v18 = vsel %vm706_vm0, %v2969_v17, -inf }
0x10ad   :  { %2973 = vmax.xlane.f32.xlu0 %v2972_v19 }
0x10ae   :  { %v2975_v27 = vsel %vm706_vm0, %v2961_v2, -inf }
0x10af   :  { %2976 = vmax.xlane.f32.xlu1 %v2975_v27 }
0x10b1   :  { %2982 = vmax.xlane.f32.xlu0 %v2981_v18 }
0x10c0   :  { %3107 = vrot.lane.b32.xlu1 %v7800_v47, %s7097_s2 }
0x10c4   :  { %3105 = vrot.lane.b32.xlu1 %v7802_v52, %s7097_s2 }
0x10c7   :  { %3012 = vrot.lane.b32.xlu0 %v7818_v10, %s7106_s5 }
0x10c8   :  { %3103 = vrot.lane.b32.xlu1 %v7816_v26, %s7097_s2 }
0x10cb   :  { %3101 = vrot.lane.b32.xlu0 %v7795_v3, %s7097_s2 }
0x10cc   :  { %3210 = vrot.lane.b32.xlu1 %v7811_v37, %s7097_s2 }
0x1132   :  { %v2980_v11 = vpop.xlane.xlu0 %2979 }
0x1133   :  { %v2986_v61 = vsub.f32 %v2966_v51, %v2980_v11 }
0x1135   :  { %v2992_v20 = vmul.f32 1.442695, %v2986_v61 }
0x1136   :  { %v2974_v0 = vpop.xlane.xlu0 %2973 }
0x1137   :  { %v2984_v45 = vsub.f32 %v2958_v14, %v2974_v0 }
0x1138   :  { %v2977_v7 = vpop.xlane.xlu1 %2976 }
0x1139   :  { %v2988_v35 = vmul.f32 1.442695, %v2984_v45  ;;  %v2985_v6 = vsub.f32 %v2961_v2, %v2977_v7 }
0x113a   :  { %v2983_v21 = vpop.xlane.xlu0 %2982 }
0x113b   :  { %v2990_v48 = vmul.f32 1.442695, %v2985_v6  ;;  %v2987_v33 = vsub.f32 %v2969_v17, %v2983_v21  ;;  %6683 = vpow2.f32 %v2988_v35 }
0x113c   :  { %v3108_v22 = vpop.permute.xlu1 %3107 }
0x113d   :  { %6685 = vpow2.f32 %v2990_v48  ;;  %v2994_v63 = vmul.f32 1.442695, %v2987_v33  ;;  %v3119_v58 = vsel %vm706_vm0, %v3108_v22, 0 }
0x113e   :  { %6687 = vpow2.f32 %v2992_v20  ;;  %v3013_v5 = vpop.permute.xlu0 %3012 }
0x113f   :  { %6689 = vpow2.f32 %v2994_v63  ;;  %6034 = vmatprep.subr.bf16.mxu0 %v3013_v5 }
0x1140   :  { %6035 = vmatpush3.bf16.msra.mxu0 %v3013_v5  ;;  %v3106_v8 = vpop.permute.xlu1 %3105 }
0x1141   :  { %6287 = vmatprep.subr.msk.bf16.mxu0 %vm706_vm0, %v3108_v22  ;;  %v3116_v51 = vsel %vm706_vm0, %v3106_v8, 0 }
0x1142   :  { %v3102_v30 = vpop.permute.xlu0 %3101 }
0x1144   :  { %v3104_v49 = vpop.permute.xlu1 %3103 }
0x1148   :  { %v3211_v36 = vpop.permute.xlu1 %3210  ;;  %v7904_v50 = vpop.eup %6683 }
0x1149   :  { %6048 = vmatprep.subr.bf16.mxu1 %v3211_v36 }
0x114a   :  { %v7906_v39 = vpop.eup %6685  ;;  %6049 = vmatpush3.bf16.msra.mxu1 %v3211_v36 }
0x114b   :  { %v7908_v42 = vpop.eup %6687  ;;  %v3008_v41 = vpack.c.bf16 %v7906_v39, %v7904_v50 }
0x114c   :  { %v7912_v53 = vpop.eup %6689 }
0x114d   :  { %6036 = vmatprep.mubr.msk.bf16.mxu0 %vm706_vm0, %v3008_v41  ;;  %v3009_v56 = vpack.c.bf16 %v7912_v53, %v7908_v42 }
0x114f   :  { %6037 = vmatmul.mubr.msk.bf16.vlgmr.msra.gmra.mxu0 %vm706_vm0, %v3009_v56 }
0x1150   :  { %6041 = vmatpush3.bf16.xpose.msra.mxu0 %v3119_v58  ;;  %6044 = vmatprep.mubr.msk.bf16.mxu0 %vm706_vm0, %v3102_v30 }
0x1151   :  { %6288 = vmatprep.subr.msk.bf16.mxu0 %vm706_vm0, %v3106_v8 }
0x1158   :  { %6043 = vmatpush3.bf16.xpose.msra.mxu0 %v3116_v51 }
0x115f   :  { %6045 = vmatmul.mubr.msk.bf16.vlgmr.msra.gmra.mxu0 %vm706_vm0, %v3104_v49 }
0x120f   :  { %v7923_v32 = vpop.f32.mrf.mxu0 }
0x1211   :  { %v7925_v14 = vpop.f32.mrf.mxu0 }
0x1213   :  { %v7927_v1 = vpop.f32.mrf.mxu0 }
0x1215   :  { %v7929_v59 = vpop.f32.mrf.mxu0 }
0x121f   :  { %v6046_v60 = vpop.f32.mrf.mxu0 }
0x1220   :  { %v3164_v17 = vadd.f32 %v7826_v62, %v6046_v60 }
0x1221   :  { %v3155_v2 = vpop.f32.mrf.mxu0 }
0x1222   :  { %v3156_v19 = vadd.f32 %v7830_v12, %v3155_v2  ;;  %v3176_v27 = vsel %vm706_vm0, %v3164_v17, -inf }
0x1223   :  { %3177 = vmax.xlane.f32.xlu0 %v3176_v27  ;;  %v6047_v18 = vpop.f32.mrf.mxu0 }
0x1224   :  { %v3167_v61 = vadd.f32 %v7840_v34, %v6047_v18  ;;  %v3170_v45 = vsel %vm706_vm0, %v3156_v19, -inf }
0x1225   :  { %v3158_v11 = vpop.f32.mrf.mxu0 }
0x1226   :  { %v3159_v0 = vadd.f32 %v7835_v16, %v3158_v11  ;;  %v3179_v35 = vsel %vm706_vm0, %v3167_v61, -inf }
0x1227   :  { %3171 = vmax.xlane.f32.xlu0 %v3170_v45 }
0x1228   :  { %v3173_v7 = vsel %vm706_vm0, %v3159_v0, -inf }
0x1229   :  { %3174 = vmax.xlane.f32.xlu1 %v3173_v7 }
0x122b   :  { %3180 = vmax.xlane.f32.xlu0 %v3179_v35 }
0x123a   :  { %3303 = vrot.lane.b32.xlu1 %v7800_v47, %s7107_s13 }
0x123e   :  { %3301 = vrot.lane.b32.xlu1 %v7802_v52, %s7107_s13 }
0x1241   :  { %3208 = vrot.lane.b32.xlu0 %v7818_v10, %s7097_s2 }
0x1242   :  { %3299 = vrot.lane.b32.xlu1 %v7816_v26, %s7107_s13 }
0x1245   :  { %3297 = vrot.lane.b32.xlu0 %v7795_v3, %s7107_s13 }
0x12ac   :  { %v3178_v6 = vpop.xlane.xlu0 %3177 }
0x12ad   :  { %v3184_v20 = vsub.f32 %v3164_v17, %v3178_v6 }
0x12af   :  { %v3190_v47 = vmul.f32 1.442695, %v3184_v20 }
0x12b0   :  { %v3172_v21 = vpop.xlane.xlu0 %3171 }
0x12b1   :  { %v3182_v48 = vsub.f32 %v3156_v19, %v3172_v21 }
0x12b2   :  { %v3175_v33 = vpop.xlane.xlu1 %3174 }
0x12b3   :  { %v3186_v22 = vmul.f32 1.442695, %v3182_v48  ;;  %v3183_v63 = vsub.f32 %v3159_v0, %v3175_v33 }
0x12b4   :  { %v3181_v5 = vpop.xlane.xlu0 %3180 }
0x12b5   :  { %v3188_v8 = vmul.f32 1.442695, %v3183_v63  ;;  %v3185_v52 = vsub.f32 %v3167_v61, %v3181_v5  ;;  %6691 = vpow2.f32 %v3186_v22  ;;  %v3005_v5 = vsel %vm706_vm0, %v7912_v53, 0.0 }
0x12b6   :  { %v3304_v26 = vpop.permute.xlu1 %3303 }
0x12b7   :  { %6693 = vpow2.f32 %v3188_v8  ;;  %v3192_v49 = vmul.f32 1.442695, %v3185_v52  ;;  %v3315_v60 = vsel %vm706_vm0, %v3304_v26, 0 }
0x12b8   :  { %6695 = vpow2.f32 %v3190_v47  ;;  %v3209_v36 = vpop.permute.xlu0 %3208 }
0x12b9   :  { %6697 = vpow2.f32 %v3192_v49  ;;  %6050 = vmatprep.subr.bf16.mxu1 %v3209_v36 }
0x12ba   :  { %6051 = vmatpush3.bf16.msra.mxu1 %v3209_v36  ;;  %v3302_v2 = vpop.permute.xlu1 %3301 }
0x12bb   :  { %6289 = vmatprep.subr.msk.bf16.mxu1 %vm706_vm0, %v3304_v26  ;;  %v3312_v19 = vsel %vm706_vm0, %v3302_v2, 0 }
0x12bc   :  { %v3298_v17 = vpop.permute.xlu0 %3297 }
0x12be   :  { %v3300_v27 = vpop.permute.xlu1 %3299 }
0x12c2   :  { %v6692_v3 = vpop.eup %6691 }
0x12c4   :  { %v6694_v41 = vpop.eup %6693 }
0x12c5   :  { %v6696_v56 = vpop.eup %6695  ;;  %v3206_v58 = vpack.c.bf16 %v6694_v41, %v6692_v3 }
0x12c6   :  { %v6698_v30 = vpop.eup %6697 }
0x12c7   :  { %6052 = vmatprep.mubr.msk.bf16.mxu1 %vm706_vm0, %v3206_v58  ;;  %v3207_v51 = vpack.c.bf16 %v6698_v30, %v6696_v56 }
0x12c9   :  { %6053 = vmatmul.mubr.msk.bf16.vlgmr.msra.gmra.mxu1 %vm706_vm0, %v3207_v51 }
0x12ca   :  { %6057 = vmatpush3.bf16.xpose.msra.mxu1 %v3315_v60  ;;  %6060 = vmatprep.mubr.msk.bf16.mxu1 %vm706_vm0, %v3298_v17 }
0x12cb   :  { %6290 = vmatprep.subr.msk.bf16.mxu1 %vm706_vm0, %v3302_v2 }
0x12d2   :  { %6059 = vmatpush3.bf16.xpose.msra.mxu1 %v3312_v19 }
0x12d9   :  { %6061 = vmatmul.mubr.msk.bf16.vlgmr.msra.gmra.mxu1 %vm706_vm0, %v3300_v27 }
0x12da   :  { %3943 = vmatprep.mubr.bf16.mxu1 %v7105_v38 }
0x1389   :  { %v7958_v18 = vpop.f32.mrf.mxu1 }
0x138b   :  { %v7960_v11 = vpop.f32.mrf.mxu1 }
0x138d   :  { %v7962_v61 = vpop.f32.mrf.mxu1 }
0x138f   :  { %v7964_v0 = vpop.f32.mrf.mxu1 }
0x1399   :  { %v6062_v45 = vpop.f32.mrf.mxu1 }
0x139a   :  { %v3360_v7 = vadd.f32 %v7826_v62, %v6062_v45 }
0x139b   :  { %v3351_v35 = vpop.f32.mrf.mxu1 }
0x139c   :  { %v3352_v6 = vadd.f32 %v7830_v12, %v3351_v35  ;;  %v3372_v20 = vsel %vm706_vm0, %v3360_v7, -inf  ;;  %v2996_v12 = vsel %vm706_vm0, %v7904_v50, 0.0  ;;  %v3200_v50 = vsel %vm706_vm0, %v6696_v56, 0.0 }
0x139d   :  { %3373 = vmax.xlane.f32.xlu0 %v3372_v20  ;;  %v6063_v21 = vpop.f32.mrf.mxu1 }
0x139e   :  { %v3363_v33 = vadd.f32 %v7840_v34, %v6063_v21  ;;  %v3366_v63 = vsel %vm706_vm0, %v3352_v6, -inf  ;;  %v3002_v34 = vsel %vm706_vm0, %v7908_v42, 0.0 }
0x139f   :  { %v3354_v48 = vpop.f32.mrf.mxu1 }
0x13a0   :  { %v3355_v22 = vadd.f32 %v7835_v16, %v3354_v48  ;;  %v3375_v62 = vsel %vm706_vm0, %v3363_v33, -inf  ;;  %v2999_v16 = vsel %vm706_vm0, %v7906_v39, 0.0  ;;  %v3203_v39 = vsel %vm706_vm0, %v6698_v30, 0.0 }
0x13a1   :  { %3367 = vmax.xlane.f32.xlu0 %v3366_v63  ;;  %v2818_v48 = vsel %vm706_vm0, %v7856_v46, 0.0  ;;  %v2827_v63 = vsel %vm706_vm0, %v7865_v24, 0.0 }
0x13a2   :  { %v3369_v47 = vsel %vm706_vm0, %v3355_v22, -inf }
0x13a3   :  { %3370 = vmax.xlane.f32.xlu1 %v3369_v47 }
0x13a5   :  { %3376 = vmax.xlane.f32.xlu0 %v3375_v62 }
0x13b4   :  { %3406 = vrot.lane.b32.xlu1 %v7811_v37, %s7107_s13  ;;  %v3194_v37 = vsel %vm706_vm0, %v6692_v3, 0.0 }
0x13bb   :  { %3404 = vrot.lane.b32.xlu0 %v7818_v10, %s7107_s13  ;;  %v3197_v10 = vsel %vm706_vm0, %v6694_v41, 0.0 }
0x13d8   :  { %2997 = vadd.xlane.f32.xlu1 %v2996_v12 }
0x13da   :  { %3000 = vadd.xlane.f32.xlu0 %v2999_v16 }
0x13dc   :  { %3003 = vadd.xlane.f32.xlu1 %v3002_v34 }
0x13de   :  { %3006 = vadd.xlane.f32.xlu0 %v3005_v5 }
0x13e0   :  { %3195 = vadd.xlane.f32.xlu1 %v3194_v37 }
0x13e2   :  { %3198 = vadd.xlane.f32.xlu0 %v3197_v10 }
0x13e4   :  { %3201 = vadd.xlane.f32.xlu1 %v3200_v50 }
0x13e6   :  { %3204 = vadd.xlane.f32.xlu0 %v3203_v39 }
0x1426   :  { %v3374_v8 = vpop.xlane.xlu0 %3373 }
0x1427   :  { %v3380_v52 = vsub.f32 %v3360_v7, %v3374_v8 }
0x1429   :  { %v3386_v36 = vmul.f32 1.442695, %v3380_v52 }
0x142a   :  { %v3368_v42 = vpop.xlane.xlu0 %3367 }
0x142b   :  { %v3378_v49 = vsub.f32 %v3352_v6, %v3368_v42 }
0x142c   :  { %v3371_v26 = vpop.xlane.xlu1 %3370 }
0x142d   :  { %v3382_v53 = vmul.f32 1.442695, %v3378_v49  ;;  %v3379_v58 = vsub.f32 %v3355_v22, %v3371_v26  ;;  %v2824_v22 = vsel %vm706_vm0, %v7862_v9, 0.0 }
0x142e   :  { %v3377_v51 = vpop.xlane.xlu0 %3376 }
0x142f   :  { %6699 = vpow2.f32 %v3382_v53  ;;  %v3384_v3 = vmul.f32 1.442695, %v3379_v58  ;;  %v3381_v60 = vsub.f32 %v3363_v33, %v3377_v51  ;;  %v2821_v33 = vsel %vm706_vm0, %v7858_v15, 0.0  ;;  %v6508_v53 = vld [vmem:[%s8341_s17 + $0x70] sm:$0xff]   ;;  %v6509_v58 = vld [vmem:[%s8341_s17 + $0x68] sm:$0xff]  }
0x1430   :  { %6701 = vpow2.f32 %v3386_v36  ;;  %v3407_v41 = vpop.permute.xlu1 %3406 }
0x1431   :  { %6703 = vpow2.f32 %v3384_v3  ;;  %v3388_v56 = vmul.f32 1.442695, %v3381_v60  ;;  %6064 = vmatprep.subr.bf16.mxu0 %v3407_v41 }
0x1432   :  { %6065 = vmatpush3.bf16.msra.mxu0 %v3407_v41  ;;  %v3405_v30 = vpop.permute.xlu0 %3404 }
0x1433   :  { %6705 = vpow2.f32 %v3388_v56  ;;  %6066 = vmatprep.subr.bf16.mxu0 %v3405_v30 }
0x1436   :  { %6067 = vmatpush3.bf16.msra.mxu0 %v3405_v30 }
0x143c   :  { %v6700_v17 = vpop.eup %6699 }
0x143d   :  { %v6702_v2 = vpop.eup %6701  ;;  %v3390_v19 = vsel %vm706_vm0, %v6700_v17, 0.0 }
0x143e   :  { %v6704_v27 = vpop.eup %6703  ;;  %3391 = vadd.xlane.f32.xlu1 %v3390_v19  ;;  %v3396_v6 = vsel %vm706_vm0, %v6702_v2, 0.0 }
0x143f   :  { %v3393_v45 = vsel %vm706_vm0, %v6704_v27, 0.0  ;;  %v3402_v7 = vpack.c.bf16 %v6704_v27, %v6700_v17 }
0x1440   :  { %v6706_v35 = vpop.eup %6705  ;;  %3394 = vadd.xlane.f32.xlu0 %v3393_v45 }
0x1441   :  { %6068 = vmatprep.mubr.msk.bf16.mxu0 %vm706_vm0, %v3402_v7  ;;  %v3403_v20 = vpack.c.bf16 %v6706_v35, %v6702_v2  ;;  %v3399_v21 = vsel %vm706_vm0, %v6706_v35, 0.0 }
0x1442   :  { %3397 = vadd.xlane.f32.xlu1 %v3396_v6 }
0x1443   :  { %6069 = vmatmul.mubr.msk.bf16.vlgmr.msra.gmra.mxu0 %vm706_vm0, %v3403_v20 }
0x1444   :  { %3400 = vadd.xlane.f32.xlu0 %v3399_v21 }
0x1446   :  { %2819 = vadd.xlane.f32.xlu1 %v2818_v48 }
0x1448   :  { %2822 = vadd.xlane.f32.xlu0 %v2821_v33 }
0x144a   :  { %2825 = vadd.xlane.f32.xlu1 %v2824_v22  ;;  %v6511_v22 = vld [vmem:[%s8341_s17 + $0x58] sm:$0xff]  }
0x144c   :  { %2828 = vadd.xlane.f32.xlu0 %v2827_v63  ;;  %v6512_v63 = vld [vmem:[%s8341_s17 + $0x50] sm:$0xff]  }
0x1461   :  { %v2998_v47 = vpop.xlane.xlu1 %2997 }
0x1462   :  { %6707 = vrcp.f32 %v2998_v47 }
0x1463   :  { %v3001_v62 = vpop.xlane.xlu0 %3000 }
0x1464   :  { %6709 = vrcp.f32 %v3001_v62  ;;  %v6513_v62 = vld [vmem:[%s8341_s17 + $0x48] sm:$0xff]  }
0x1465   :  { %v3004_v12 = vpop.xlane.xlu1 %3003 }
0x1466   :  { %6711 = vrcp.f32 %v3004_v12  ;;  %v6514_v12 = vld [vmem:[%s8341_s17 + $0x40] sm:$0xff]  }
0x1467   :  { %v3007_v46 = vpop.xlane.xlu0 %3006 }
0x1468   :  { %6713 = vrcp.f32 %v3007_v46 }
0x1469   :  { %v3196_v16 = vpop.xlane.xlu1 %3195 }
0x146a   :  { %6715 = vrcp.f32 %v3196_v16 }
0x146b   :  { %v3199_v15 = vpop.xlane.xlu0 %3198 }
0x146c   :  { %6717 = vrcp.f32 %v3199_v15 }
0x146d   :  { %v3202_v34 = vpop.xlane.xlu1 %3201 }
0x146e   :  { %6719 = vrcp.f32 %v3202_v34 }
0x146f   :  { %v6708_v9 = vpop.eup %6707  ;;  %v3205_v5 = vpop.xlane.xlu0 %3204 }
0x1470   :  { %6721 = vrcp.f32 %v3205_v5  ;;  %v3077_v24 = vmul.f32 %v6708_v9, %v7925_v14 }
0x1471   :  { %v6710_v37 = vpop.eup %6709 }
0x1472   :  { %3085 = vrot.lane.b32.xlu1 %v3077_v24, %s7107_s13  ;;  %v3078_v10 = vmul.f32 %v6710_v37, %v7929_v59 }
0x1473   :  { %v6712_v50 = vpop.eup %6711 }
0x1474   :  { %3087 = vrot.lane.b32.xlu0 %v3078_v10, %s7107_s13  ;;  %v3079_v39 = vmul.f32 %v6712_v50, %v7923_v32 }
0x1475   :  { %v6714_v8 = vpop.eup %6713 }
0x1476   :  { %3089 = vrot.lane.b32.xlu1 %v3079_v39, %s7107_s13  ;;  %v3080_v14 = vmul.f32 %v6714_v8, %v7927_v1  ;;  %v6507_v1 = vld [vmem:[%s8341_s17 + $0x78] sm:$0xff]  }
0x1477   :  { %v6716_v52 = vpop.eup %6715  ;;  %6072 = vmatprep.subr.bf16.mxu0 %v6507_v1 }
0x1478   :  { %v3273_v42 = vmul.f32 %v6716_v52, %v7960_v11  ;;  %6073 = vmatpush3.bf16.msra.mxu0 %v6507_v1 }
0x1479   :  { %v6718_v49 = vpop.eup %6717  ;;  %6074 = vmatprep.subr.bf16.mxu0 %v6508_v53 }
0x147a   :  { %3281 = vrot.lane.b32.xlu0 %v3273_v42, %s7097_s2  ;;  %3091 = vrot.lane.b32.xlu1 %v3080_v14, %s7107_s13  ;;  %v3274_v36 = vmul.f32 %v6718_v49, %v7964_v0 }
0x147b   :  { %v6720_v59 = vpop.eup %6719 }
0x147c   :  { %v3275_v32 = vmul.f32 %v6720_v59, %v7958_v18  ;;  %6075 = vmatpush3.bf16.msra.mxu0 %v6508_v53  ;;  %v6510_v18 = vld [vmem:[%s8341_s17 + $0x60] sm:$0xff]  }
0x147d   :  { %v6722_v26 = vpop.eup %6721  ;;  %6076 = vmatprep.subr.bf16.mxu0 %v6509_v58  ;;  %v5366_v53 = vld [vmem:[%s8342_s25 + $0x1] ss:$0 sm:$0xff] }
0x147e   :  { %3285 = vrot.lane.b32.xlu0 %v3275_v32, %s7097_s2  ;;  %3283 = vrot.lane.b32.xlu1 %v3274_v36, %s7097_s2  ;;  %v3276_v11 = vmul.f32 %v6722_v26, %v7962_v61 }
0x1480   :  { %6077 = vmatpush3.bf16.msra.mxu0 %v6509_v58 }
0x1481   :  { %6078 = vmatprep.subr.bf16.mxu0 %v6510_v18 }
0x1482   :  { %3287 = vrot.lane.b32.xlu1 %v3276_v11, %s7097_s2  ;;  %s8348_s2 = sld [smem:[#allocation34_spill]] }
0x1484   :  { %6079 = vmatpush3.bf16.msra.mxu0 %v6510_v18 }
0x1485   :  { %6080 = vmatprep.subr.bf16.mxu0 %v6511_v22 }
0x1488   :  { %6081 = vmatpush3.bf16.msra.mxu0 %v6511_v22 }
0x1489   :  { %6082 = vmatprep.subr.bf16.mxu0 %v6512_v63 }
0x148c   :  { %6083 = vmatpush3.bf16.msra.mxu0 %v6512_v63  ;;  %v6523_v63 = vld [vmem:[%s8343_s8 + $0x1c4] ss:$16 sps:$4 sm:$0xff]  }
0x148d   :  { %6084 = vmatprep.subr.bf16.mxu0 %v6513_v62 }
0x1490   :  { %6085 = vmatpush3.bf16.msra.mxu0 %v6513_v62  ;;  %v6521_v62 = vld [vmem:[%s8343_s8 + $0x1c0] ss:$16 sps:$4 sm:$0xff]  }
0x1491   :  { %6086 = vmatprep.subr.bf16.mxu0 %v6514_v12 }
0x1494   :  { %6087 = vmatpush3.bf16.msra.mxu0 %v6514_v12  ;;  %v6524_v12 = vld [vmem:[%s8343_s8 + $0x1c8] ss:$16 sps:$4 sm:$0xff]  }
0x14c7   :  { %v3392_v0 = vpop.xlane.xlu1 %3391 }
0x14c9   :  { %v3395_v51 = vpop.xlane.xlu0 %3394 }
0x14cb   :  { %v3398_v3 = vpop.xlane.xlu1 %3397 }
0x14cd   :  { %v3401_v60 = vpop.xlane.xlu0 %3400 }
0x14cf   :  { %v2820_v41 = vpop.xlane.xlu1 %2819 }
0x14d0   :  { %6723 = vrcp.f32 %v2820_v41 }
0x14d1   :  { %v2823_v61 = vpop.xlane.xlu0 %2822 }
0x14d2   :  { %6725 = vrcp.f32 %v2823_v61 }
0x14d3   :  { %v2826_v56 = vpop.xlane.xlu1 %2825 }
0x14d4   :  { %6727 = vrcp.f32 %v2826_v56 }
0x14d5   :  { %v2829_v30 = vpop.xlane.xlu0 %2828 }
0x14d6   :  { %6729 = vrcp.f32 %v2829_v30 }
0x14d7   :  { %6731 = vrcp.f32 %v3392_v0 }
0x14d8   :  { %6733 = vrcp.f32 %v3395_v51 }
0x14d9   :  { %6735 = vrcp.f32 %v3398_v3 }
0x14da   :  { %6737 = vrcp.f32 %v3401_v60 }
0x14dd   :  { %v6724_v17 = vpop.eup %6723 }
0x14de   :  { %v2891_v2 = vmul.f32 %v6724_v17, %v7877_v28 }
0x14df   :  { %v6726_v19 = vpop.eup %6725 }
0x14e0   :  { %2895 = vst.msk [vmem:[#allocation2] sm:$0xff] %vm706_vm0, %v2891_v2  ;;  %v2892_v27 = vmul.f32 %v6726_v19, %v7881_v29  ;;  %v6515_v2 = vld [vmem:[%s8343_s8 + $0x1e0] ss:$16 sps:$4 sm:$0xff]   ;;  %v6517_v19 = vld [vmem:[%s8343_s8 + $0x1e4] ss:$16 sps:$4 sm:$0xff]  }
0x14e1   :  { %v6728_v45 = vpop.eup %6727  ;;  %3911 = vmatprep.subr.bf16.mxu1 %v6517_v19 }
0x14e2   :  { %2896 = vst.msk [vmem:[#allocation2 + $0x8] sm:$0xff] %vm706_vm0, %v2892_v27  ;;  %v2893_v7 = vmul.f32 %v6728_v45, %v7875_v43  ;;  %v6518_v27 = vld [vmem:[%s8343_s8 + $0x1e8] ss:$16 sps:$4 sm:$0xff]   ;;  %v6520_v45 = vld [vmem:[%s8343_s8 + $0x1ec] ss:$16 sps:$4 sm:$0xff]   ;;  %3912 = vmatpush1.bf16.msra.mxu1 %v6515_v2 }
0x14e3   :  { %v6730_v35 = vpop.eup %6729  ;;  %3964 = vmatprep.subr.bf16.mxu0 %v6520_v45  ;;  %3913 = vmatprep.subr.bf16.mxu1 %v6523_v63 }
0x14e4   :  { %2897 = vst.msk [vmem:[#allocation2 + $0x10] sm:$0xff] %vm706_vm0, %v2893_v7  ;;  %v2894_v6 = vmul.f32 %v6730_v35, %v7879_v40  ;;  %v3086_v20 = vpop.permute.xlu1 %3085  ;;  %v6732_v46 = vpop.eup %6731 }
0x14e5   :  { %3097 = vst.msk [vmem:[#allocation2] sm:$0xff] %vm1071_vm1, %v3086_v20  ;;  %v6734_v9 = vpop.eup %6733 }
0x14e6   :  { %2898 = vst.msk [vmem:[#allocation2 + $0x18] sm:$0xff] %vm706_vm0, %v2894_v6  ;;  %v3088_v28 = vpop.permute.xlu0 %3087  ;;  %v6736_v5 = vpop.eup %6735  ;;  %3914 = vmatpush1.bf16.msra.mxu1 %v6521_v62 }
0x14e7   :  { %3098 = vst.msk [vmem:[#allocation2 + $0x8] sm:$0xff] %vm1071_vm1, %v3088_v28  ;;  %v6738_v50 = vpop.eup %6737 }
0x14e8   :  { %v3090_v29 = vpop.permute.xlu1 %3089 }
0x14e9   :  { %3099 = vst.msk [vmem:[#allocation2 + $0x10] sm:$0xff] %vm1071_vm1, %v3090_v29 }
0x14ec   :  { %v3092_v21 = vpop.permute.xlu1 %3091  ;;  %v3282_v43 = vpop.permute.xlu0 %3281 }
0x14ed   :  { %3100 = vst.msk [vmem:[#allocation2 + $0x18] sm:$0xff] %vm1071_vm1, %v3092_v21 }
0x14ee   :  { %3293 = vst.msk [vmem:[#allocation2] sm:$0xff] %vm1268_vm2, %v3282_v43 }
0x14f0   :  { %v3284_v40 = vpop.permute.xlu1 %3283  ;;  %v3286_v48 = vpop.permute.xlu0 %3285 }
0x14f1   :  { %3294 = vst.msk [vmem:[#allocation2 + $0x8] sm:$0xff] %vm1268_vm2, %v3284_v40  ;;  %3295 = vst.msk [vmem:[#allocation2 + $0x10] sm:$0xff] %vm1268_vm2, %v3286_v48 }
0x14f4   :  { %v3288_v33 = vpop.permute.xlu1 %3287 }
0x14f5   :  { %3296 = vst.msk [vmem:[#allocation2 + $0x18] sm:$0xff] %vm1268_vm2, %v3288_v33 }
0x1503   :  { %v6070_v47 = vpop.f32.mrf.mxu0 }
0x1504   :  { %v3471_v37 = vmul.f32 %v6736_v5, %v6070_v47  ;;  %v6526_v47 = vld [vmem:[%s8343_s8 + $0x1cc] ss:$16 sps:$4 sm:$0xff]  }
0x1505   :  { %v3450_v16 = vpop.f32.mrf.mxu0  ;;  %v6538_v5 = vld [vmem:[%s8343_s8 + $0x18c] ss:$16 sps:$4 sm:$0xff]  }
0x1506   :  { %v3469_v15 = vmul.f32 %v6732_v46, %v3450_v16  ;;  %v6529_v46 = vld [vmem:[%s8343_s8 + $0x1a4] ss:$16 sps:$4 sm:$0xff]   ;;  %v6532_v16 = vld [vmem:[%s8343_s8 + $0x1ac] ss:$16 sps:$4 sm:$0xff]  }
0x1507   :  { %v6071_v34 = vpop.f32.mrf.mxu0  ;;  %3915 = vmatprep.subr.bf16.mxu1 %v6529_v46  ;;  %v6567_v46 = vld [vmem:[%s8344_s30 + $0x170] sm:$0xff]  }
0x1508   :  { %3477 = vrot.lane.b32.xlu0 %v3469_v15, %s7106_s5  ;;  %v3472_v39 = vmul.f32 %v6738_v50, %v6071_v34  ;;  %v6527_v15 = vld [vmem:[%s8343_s8 + $0x1a0] ss:$16 sps:$4 sm:$0xff]   ;;  %v6530_v34 = vld [vmem:[%s8343_s8 + $0x1a8] ss:$16 sps:$4 sm:$0xff]   ;;  %v6541_v50 = vld [vmem:[%s8343_s8 + $0x164] ss:$16 sps:$4 sm:$0xff]  }
0x1509   :  { %v3453_v24 = vpop.f32.mrf.mxu0  ;;  %3916 = vmatpush1.bf16.msra.mxu1 %v6527_v15  ;;  %v6569_v15 = vld [vmem:[%s8344_s30 + $0x130] sm:$0xff]  }
0x150a   :  { %v3470_v10 = vmul.f32 %v6734_v9, %v3453_v24  ;;  %v6535_v9 = vld [vmem:[%s8343_s8 + $0x184] ss:$16 sps:$4 sm:$0xff]   ;;  %v6533_v24 = vld [vmem:[%s8343_s8 + $0x180] ss:$16 sps:$4 sm:$0xff]  }
0x150b   :  { %3917 = vmatprep.subr.bf16.mxu1 %v6535_v9  ;;  %v6571_v9 = vld [vmem:[%s8344_s30 + $0x168] sm:$0xff]  }
0x150c   :  { %3481 = vrot.lane.b32.xlu0 %v3471_v37, %s7106_s5  ;;  %3479 = vrot.lane.b32.xlu1 %v3470_v10, %s7106_s5  ;;  %v6536_v37 = vld [vmem:[%s8343_s8 + $0x188] ss:$16 sps:$4 sm:$0xff]   ;;  %v6539_v10 = vld [vmem:[%s8343_s8 + $0x160] ss:$16 sps:$4 sm:$0xff]  }
0x150d   :  { %3918 = vmatpush1.bf16.msra.mxu1 %v6533_v24 }
0x150e   :  { %3919 = vmatprep.subr.bf16.mxu1 %v6541_v50  ;;  %v6575_v50 = vld [vmem:[%s8344_s30 + $0x160] sm:$0xff]  }
0x1510   :  { %3483 = vrot.lane.b32.xlu1 %v3472_v39, %s7106_s5  ;;  %v6542_v39 = vld [vmem:[%s8343_s8 + $0x168] ss:$16 sps:$4 sm:$0xff]  }
0x1511   :  { %3920 = vmatpush1.bf16.msra.mxu1 %v6539_v10  ;;  %v6574_v10 = vld [vmem:[%s8344_s30 + $0x1a8] sm:$0xff]  }
0x157a   :  { %v3478_v8 = vpop.permute.xlu0 %3477 }
0x157b   :  { %3489 = vst.msk [vmem:[#allocation2] sm:$0xff] %vm1465_vm3, %v3478_v8  ;;  %v6544_v8 = vld [vmem:[%s8343_s8 + $0x16c] ss:$16 sps:$4 sm:$0xff]  }
0x157e   :  { %v3480_v52 = vpop.permute.xlu1 %3479  ;;  %v3482_v42 = vpop.permute.xlu0 %3481 }
0x157f   :  { %3490 = vst.msk [vmem:[#allocation2 + $0x8] sm:$0xff] %vm1465_vm3, %v3480_v52  ;;  %3491 = vst.msk [vmem:[#allocation2 + $0x10] sm:$0xff] %vm1465_vm3, %v3482_v42  ;;  %v6547_v52 = vld [vmem:[%s8343_s8 + $0x144] ss:$16 sps:$4 sm:$0xff]   ;;  %v6550_v42 = vld [vmem:[%s8343_s8 + $0x14c] ss:$16 sps:$4 sm:$0xff]  }
0x1580   :  { %3921 = vmatprep.subr.bf16.mxu1 %v6547_v52  ;;  %v6578_v52 = vld [vmem:[%s8344_s30 + $0x1a0] sm:$0xff]  }
0x1582   :  { %v3484_v14 = vpop.permute.xlu1 %3483  ;;  %v3493_v49 = vld [vmem:[#allocation2] sm:$0xff] }
0x1583   :  { %3492 = vst.msk [vmem:[#allocation2 + $0x18] sm:$0xff] %vm1465_vm3, %v3484_v14  ;;  %v6545_v14 = vld [vmem:[%s8343_s8 + $0x140] ss:$16 sps:$4 sm:$0xff]  }
0x1584   :  { %3922 = vmatpush1.bf16.msra.mxu1 %v6545_v14  ;;  %v6580_v14 = vld [vmem:[%s8344_s30 + $0x1d8] sm:$0xff]  }
0x1586   :  { %v3494_v59 = vld [vmem:[#allocation2 + $0x8] sm:$0xff]  ;;  %v3495_v36 = vld [vmem:[#allocation2 + $0x10] sm:$0xff] }
0x1587   :  { %v3497_v32 = vpack.c.bf16 %v3494_v59, %v3493_v49  ;;  %v6548_v49 = vld [vmem:[%s8343_s8 + $0x148] ss:$16 sps:$4 sm:$0xff]   ;;  %v6553_v59 = vld [vmem:[%s8343_s8 + $0x124] ss:$16 sps:$4 sm:$0xff]  }
0x1588   :  { %3923 = vmatprep.subr.bf16.mxu1 %v6553_v59  ;;  %v6582_v59 = vld [vmem:[%s8344_s30 + $0x198] sm:$0xff]  }
0x1589   :  { %6088 = vmatprep.mubr.bf16.mxu0 %v3497_v32  ;;  %v6556_v32 = vld [vmem:[%s8343_s8 + $0x12c] ss:$16 sps:$4 sm:$0xff]  }
0x158a   :  { %v3496_v26 = vld [vmem:[#allocation2 + $0x18] sm:$0xff] }
0x158b   :  { %v3498_v11 = vpack.c.bf16 %v3496_v26, %v3495_v36  ;;  %v6551_v36 = vld [vmem:[%s8343_s8 + $0x120] ss:$16 sps:$4 sm:$0xff]   ;;  %v6554_v26 = vld [vmem:[%s8343_s8 + $0x128] ss:$16 sps:$4 sm:$0xff]  }
0x158c   :  { %3924 = vmatpush1.bf16.msra.mxu1 %v6551_v36  ;;  %v6584_v36 = vld [vmem:[%s8344_s30 + $0x1d0] sm:$0xff]  }
0x158d   :  { %6089 = vmatmul.mubr.bf16.vlgmr.msra.gmra.mxu0 %v3498_v11  ;;  %v6559_v11 = vld [vmem:[%s8343_s8 + $0x104] ss:$16 sps:$4 sm:$0xff]  }
0x158e   :  { %3996 = vmatprep.mubr.bf16.mxu0 %v7105_v38  ;;  %3965 = vmatpush1.bf16.msra.mxu0 %v6518_v27 }
0x158f   :  { %3966 = vmatprep.subr.bf16.mxu0 %v6526_v47  ;;  %3925 = vmatprep.subr.bf16.mxu1 %v6559_v11  ;;  %v6586_v11 = vld [vmem:[%s8344_s30 + $0x190] sm:$0xff]  }
0x1592   :  { %3967 = vmatpush1.bf16.msra.mxu0 %v6524_v12  ;;  %v6566_v12 = vld [vmem:[%s8344_s30 + $0x1b8] sm:$0xff]  }
0x1593   :  { %3968 = vmatprep.subr.bf16.mxu0 %v6532_v16  ;;  %v6568_v16 = vld [vmem:[%s8344_s30 + $0x1f0] sm:$0xff]  }
0x1596   :  { %3969 = vmatpush1.bf16.msra.mxu0 %v6530_v34  ;;  %v6570_v34 = vld [vmem:[%s8344_s30 + $0x1b0] sm:$0xff]  }
0x1597   :  { %3970 = vmatprep.subr.bf16.mxu0 %v6538_v5  ;;  %v6572_v5 = vld [vmem:[%s8344_s30 + $0x1e8] sm:$0xff]  }
0x159a   :  { %3971 = vmatpush1.bf16.msra.mxu0 %v6536_v37 }
0x159b   :  { %3972 = vmatprep.subr.bf16.mxu0 %v6544_v8  ;;  %v6577_v8 = vld [vmem:[%s8344_s30 + $0x120] sm:$0xff]  }
0x159e   :  { %3973 = vmatpush1.bf16.msra.mxu0 %v6542_v39  ;;  %v6576_v39 = vld [vmem:[%s8344_s30 + $0x1e0] sm:$0xff]  }
0x159f   :  { %3974 = vmatprep.subr.bf16.mxu0 %v6550_v42  ;;  %v6579_v42 = vld [vmem:[%s8344_s30 + $0x158] sm:$0xff]  }
0x15a2   :  { %3975 = vmatpush1.bf16.msra.mxu0 %v6548_v49  ;;  %v6581_v49 = vld [vmem:[%s8344_s30 + $0x118] sm:$0xff]  }
0x15a3   :  { %3976 = vmatprep.subr.bf16.mxu0 %v6556_v32  ;;  %v6583_v32 = vld [vmem:[%s8344_s30 + $0x150] sm:$0xff]  }
0x15a6   :  { %3977 = vmatpush1.bf16.msra.mxu0 %v6554_v26  ;;  %v6585_v26 = vld [vmem:[%s8344_s30 + $0x110] sm:$0xff]  }
0x164d   :  { %v6090_v1 = vpop.f32.mrf.mxu0 }
0x164e   :  { %v3615_v51 = vadd.f32 %v6090_v1, %v5366_v53  ;;  %v6562_v1 = vld [vmem:[%s8343_s8 + $0x10c] ss:$16 sps:$4 sm:$0xff]  }
0x164f   :  { %v3606_v58 = vpop.f32.mrf.mxu0  ;;  %3978 = vmatprep.subr.bf16.mxu0 %v6562_v1  ;;  %v6587_v1 = vld [vmem:[%s8344_s30 + $0x148] sm:$0xff]  }
0x1650   :  { %v3607_v18 = vadd.f32 %v5366_v53, %v3606_v58  ;;  %v3623_v61 = vadd.f32 %v3615_v51, %v7788_v25  ;;  %v6560_v58 = vld [vmem:[%s8343_s8 + $0x108] ss:$16 sps:$4 sm:$0xff]  }
0x1651   :  { %v6091_v0 = vpop.f32.mrf.mxu0  ;;  %3979 = vmatpush1.bf16.msra.mxu0 %v6560_v58  ;;  %v6589_v58 = vld [vmem:[%s8344_s30 + $0x108] sm:$0xff]  }
0x1652   :  { %v3621_v3 = vadd.f32 %v3607_v18, %v7779_v44  ;;  %v3618_v56 = vadd.f32 %v6091_v0, %v5366_v53  ;;  %v6563_v18 = vld [vmem:[%s8344_s30 + $0x178] sm:$0xff]  }
0x1653   :  { %v3609_v60 = vpop.f32.mrf.mxu0  ;;  %v6564_v0 = vld [vmem:[%s8344_s30 + $0x1f8] sm:$0xff]  }
0x1654   :  { %v3610_v41 = vadd.f32 %v5366_v53, %v3609_v60  ;;  %3629 = vadd.xlane.f32.xlu0 %v3621_v3  ;;  %v3624_v17 = vadd.f32 %v3618_v56, %v7790_v23  ;;  %v6557_v53 = vld [vmem:[%s8343_s8 + $0x100] ss:$16 sps:$4 sm:$0xff]   ;;  %5748 = vmatprep.subr.bf16.mxu0 %v6564_v0 }
0x1655   :  { %3926 = vmatpush1.bf16.msra.mxu1 %v6557_v53  ;;  %v6588_v53 = vld [vmem:[%s8344_s30 + $0x1c8] sm:$0xff]   ;;  %v6591_v0 = vld [vmem:[%s8344_s30 + $0x140] sm:$0xff]  }
0x1656   :  { %v3622_v30 = vadd.f32 %v3610_v41, %v7781_v31  ;;  %5720 = vmatprep.subr.bf16.mxu1 %v6563_v18  ;;  %v6590_v18 = vld [vmem:[%s8344_s30 + $0x188] sm:$0xff]  }
0x1658   :  { %3631 = vadd.xlane.f32.xlu1 %v3622_v30  ;;  %3633 = vadd.xlane.f32.xlu0 %v3623_v61 }
0x165c   :  { %3635 = vadd.xlane.f32.xlu0 %v3624_v17 }
0x16dd   :  { %v3630_v44 = vpop.xlane.xlu0 %3629 }
0x16de   :  { %v3637_v7 = vmul.f32 0.0078125, %v3630_v44 }
0x16e0   :  { %v8062_v35 = vsub.f32 %v3621_v3, %v3637_v7 }
0x16e1   :  { %v3632_v25 = vpop.xlane.xlu1 %3631  ;;  %v3634_v6 = vpop.xlane.xlu0 %3633 }
0x16e2   :  { %v3638_v31 = vmul.f32 0.0078125, %v3632_v25  ;;  %v3639_v20 = vmul.f32 0.0078125, %v3634_v6  ;;  %v3645_v23 = vmul.f32 %v8062_v35, %v8062_v35  ;;  %v5375_v25 = vld [vmem:[#allocation9 + $0x1] ss:$0 sm:$0xff] }
0x16e4   :  { %v8066_v28 = vsub.f32 %v3622_v30, %v3638_v31  ;;  %v8068_v29 = vsub.f32 %v3623_v61, %v3639_v20  ;;  %3649 = vadd.xlane.f32.xlu1 %v3645_v23 }
0x16e5   :  { %v3636_v21 = vpop.xlane.xlu0 %3635 }
0x16e6   :  { %v3640_v43 = vmul.f32 0.0078125, %v3636_v21  ;;  %v3646_v40 = vmul.f32 %v8066_v28, %v8066_v28  ;;  %v3647_v48 = vmul.f32 %v8068_v29, %v8068_v29  ;;  %v5376_v21 = vld [vmem:[#allocation11 + $0x1] ss:$0 sm:$0xff] }
0x16e8   :  { %v8074_v33 = vsub.f32 %v3624_v17, %v3640_v43  ;;  %3651 = vadd.xlane.f32.xlu0 %v3646_v40  ;;  %3653 = vadd.xlane.f32.xlu1 %v3647_v48 }
0x16ea   :  { %v3648_v22 = vmul.f32 %v8074_v33, %v8074_v33 }
0x16ec   :  { %3655 = vadd.xlane.f32.xlu0 %v3648_v22 }
0x176d   :  { %v3650_v51 = vpop.xlane.xlu1 %3649 }
0x176e   :  { %v3657_v3 = vmul.f32 0.0078125, %v3650_v51  ;;  %v6592_v51 = vld [vmem:[%s8344_s30 + $0x1c0] sm:$0xff]  }
0x1770   :  { %v3661_v60 = vadd.f32 1e-05, %v3657_v3  ;;  %v6593_v3 = vld [vmem:[%s8344_s30 + $0x100] sm:$0xff]  }
0x1771   :  { %v3654_v41 = vpop.xlane.xlu1 %3653  ;;  %v3652_v61 = vpop.xlane.xlu0 %3651 }
0x1772   :  { %6739 = vrsqrt.f32 %v3661_v60  ;;  %v3659_v56 = vmul.f32 0.0078125, %v3654_v41  ;;  %v3658_v30 = vmul.f32 0.0078125, %v3652_v61  ;;  %v6594_v60 = vld [vmem:[%s8344_s30 + $0x180] sm:$0xff]  }
0x1773   :  { %v5409_v41 = vld [vmem:[%s8345_s3 + $0x4] sm:$0xf] }
0x1774   :  { %v3662_v17 = vadd.f32 1e-05, %v3658_v30  ;;  %v3663_v2 = vadd.f32 1e-05, %v3659_v56  ;;  %v3738_v30 = vrot.slane %v5409_v41, %v7363_v13 }
0x1775   :  { %v3656_v19 = vpop.xlane.xlu0 %3655 }
0x1776   :  { %v3660_v27 = vmul.f32 0.0078125, %v3656_v19  ;;  %6741 = vrsqrt.f32 %v3662_v17  ;;  %v3746_v17 = vrot.slane %v5409_v41, %v1717_v4  ;;  %v3742_v19 = vrot.slane %v5409_v41, %v7354_v57 }
0x1777   :  { %6743 = vrsqrt.f32 %v3663_v2  ;;  %v3734_v2 = vrot.slane %v5409_v41, %v7351_v55 }
0x1778   :  { %v3664_v45 = vadd.f32 1e-05, %v3660_v27 }
0x177a   :  { %6745 = vrsqrt.f32 %v3664_v45 }
0x177f   :  { %v6740_v44 = vpop.eup %6739 }
0x1780   :  { %v3669_v7 = vmul.f32 %v6740_v44, %v8062_v35 }
0x1782   :  { %v3679_v20 = vmul.f32 %v5375_v25, %v3669_v7 }
0x1783   :  { %v6742_v6 = vpop.eup %6741 }
0x1784   :  { %v3670_v31 = vmul.f32 %v6742_v6, %v8066_v28  ;;  %v6744_v23 = vpop.eup %6743  ;;  %v8111_v22 = vadd.f32 %v5376_v21, %v3679_v20  ;;  %v6565_v28 = vld [vmem:[%s8344_s30 + $0x138] sm:$0xff]  }
0x1785   :  { %v3671_v35 = vmul.f32 %v6744_v23, %v8068_v29 }
0x1786   :  { %v3680_v40 = vmul.f32 %v5375_v25, %v3670_v31 }
0x1787   :  { %v6746_v43 = vpop.eup %6745 }
0x1788   :  { %v3672_v48 = vmul.f32 %v6746_v43, %v8074_v33  ;;  %v8113_v63 = vadd.f32 %v5376_v21, %v3680_v40  ;;  %v3681_v33 = vmul.f32 %v5375_v25, %v3671_v35 }
0x178a   :  { %v3693_v47 = vpack.c.bf16 %v8113_v63, %v8111_v22  ;;  %v3682_v62 = vmul.f32 %v5375_v25, %v3672_v48  ;;  %v8130_v24 = vadd.f32 %v5376_v21, %v3681_v33 }
0x178c   :  { %3944 = vmatmul.mubr.bf16.vlgmr.msra.gmra.mxu1 %v3693_v47  ;;  %3997 = vmatmul.mubr.bf16.vlgmr.msra.gmra.mxu0 %v3693_v47  ;;  %v8124_v29 = vadd.f32 %v5376_v21, %v3682_v62 }
0x178d   :  { %3953 = vmatprep.mubr.bf16.mxu1 %v7105_v38  ;;  %4006 = vmatprep.mubr.bf16.mxu0 %v7105_v38  ;;  %v6573_v38 = vld [vmem:[%s8344_s30 + $0x128] sm:$0xff]  }
0x178e   :  { %5721 = vmatpush3.bf16.msra.mxu1 %v6565_v28  ;;  %5749 = vmatpush3.bf16.msra.mxu0 %v6566_v12  ;;  %v3694_v37 = vpack.c.bf16 %v8124_v29, %v8130_v24 }
0x178f   :  { %5722 = vmatprep.subr.bf16.mxu1 %v6567_v46  ;;  %5750 = vmatprep.subr.bf16.mxu0 %v6568_v16 }
0x1792   :  { %5723 = vmatpush3.bf16.msra.mxu1 %v6569_v15  ;;  %5751 = vmatpush3.bf16.msra.mxu0 %v6570_v34 }
0x1793   :  { %5724 = vmatprep.subr.bf16.mxu1 %v6571_v9  ;;  %5752 = vmatprep.subr.bf16.mxu0 %v6572_v5 }
0x1794   :  { %3954 = vmatmul.mubr.bf16.gmra.mxu1 %v3694_v37  ;;  %4007 = vmatmul.mubr.bf16.gmra.mxu0 %v3694_v37 }
0x1796   :  { %5725 = vmatpush3.bf16.msra.mxu1 %v6573_v38  ;;  %5753 = vmatpush3.bf16.msra.mxu0 %v6574_v10 }
0x1797   :  { %5726 = vmatprep.subr.bf16.mxu1 %v6575_v50  ;;  %5754 = vmatprep.subr.bf16.mxu0 %v6576_v39 }
0x179a   :  { %5727 = vmatpush3.bf16.msra.mxu1 %v6577_v8  ;;  %5755 = vmatpush3.bf16.msra.mxu0 %v6578_v52 }
0x179b   :  { %5728 = vmatprep.subr.bf16.mxu1 %v6579_v42  ;;  %5756 = vmatprep.subr.bf16.mxu0 %v6580_v14 }
0x179e   :  { %5729 = vmatpush3.bf16.msra.mxu1 %v6581_v49  ;;  %5757 = vmatpush3.bf16.msra.mxu0 %v6582_v59 }
0x179f   :  { %5730 = vmatprep.subr.bf16.mxu1 %v6583_v32  ;;  %5758 = vmatprep.subr.bf16.mxu0 %v6584_v36 }
0x17a2   :  { %5731 = vmatpush3.bf16.msra.mxu1 %v6585_v26  ;;  %5759 = vmatpush3.bf16.msra.mxu0 %v6586_v11 }
0x17a3   :  { %5732 = vmatprep.subr.bf16.mxu1 %v6587_v1  ;;  %5760 = vmatprep.subr.bf16.mxu0 %v6588_v53 }
0x17a6   :  { %5733 = vmatpush3.bf16.msra.mxu1 %v6589_v58  ;;  %5761 = vmatpush3.bf16.msra.mxu0 %v6590_v18 }
0x17a7   :  { %5734 = vmatprep.subr.bf16.mxu1 %v6591_v0  ;;  %5762 = vmatprep.subr.bf16.mxu0 %v6592_v51 }
0x17aa   :  { %5735 = vmatpush3.bf16.msra.mxu1 %v6593_v3  ;;  %5763 = vmatpush3.bf16.msra.mxu0 %v6594_v60 }
0x184c   :  { %v3945_v61 = vpop.f32.mrf.mxu1  ;;  %v3998_v56 = vpop.f32.mrf.mxu0 }
0x184d   :  { %v3946_v23 = vadd.f32 %v3945_v61, %v3734_v2  ;;  %v3999_v21 = vadd.f32 %v3998_v56, %v3742_v19 }
0x184e   :  { %v3947_v27 = vpop.f32.mrf.mxu1  ;;  %v4000_v45 = vpop.f32.mrf.mxu0 }
0x184f   :  { %v3948_v25 = vadd.f32 %v3947_v27, %v3738_v30  ;;  %v4001_v6 = vadd.f32 %v4000_v45, %v3746_v17  ;;  %v4017_v12 = vmax.f32 %v3946_v23, 0.0  ;;  %v4019_v46 = vmax.f32 %v3999_v21, 0.0 }
0x1850   :  { %v3949_v44 = vpop.f32.mrf.mxu1  ;;  %v4002_v7 = vpop.f32.mrf.mxu0 }
0x1851   :  { %v3950_v31 = vadd.f32 %v3949_v44, %v3734_v2  ;;  %v4003_v20 = vadd.f32 %v4002_v7, %v3742_v19  ;;  %v4018_v47 = vmax.f32 %v3948_v25, 0.0  ;;  %v4020_v57 = vmax.f32 %v4001_v6, 0.0  ;;  %v5506_v6 = vld [vmem:[#allocation8 + $0x1] ss:$0 sm:$0xff] }
0x1852   :  { %v3951_v43 = vpop.f32.mrf.mxu1  ;;  %v4004_v40 = vpop.f32.mrf.mxu0 }
0x1853   :  { %v3952_v13 = vadd.f32 %v3951_v43, %v3738_v30  ;;  %v4005_v48 = vadd.f32 %v4004_v40, %v3746_v17  ;;  %v4021_v54 = vmax.f32 %v3950_v31, 0.0  ;;  %v4023_v4 = vmax.f32 %v4003_v20, 0.0 }
0x1854   :  { %v3955_v35 = vpop.f32.mrf.mxu1  ;;  %v4008_v55 = vpop.f32.mrf.mxu0 }
0x1855   :  { %v4022_v62 = vmax.f32 %v3952_v13, 0.0  ;;  %v4024_v28 = vmax.f32 %v4005_v48, 0.0  ;;  %v4033_v9 = vpack.c.bf16 %v4021_v54, %v4017_v12  ;;  %v4035_v5 = vpack.c.bf16 %v4023_v4, %v4019_v46 }
0x1856   :  { %v3957_v16 = vpop.f32.mrf.mxu1  ;;  %v4010_v33 = vpop.f32.mrf.mxu0  ;;  %v3956_v52 = vadd.f32 %v3955_v35, %v3734_v2  ;;  %v4009_v42 = vadd.f32 %v4008_v55, %v3742_v19 }
0x1857   :  { %v4034_v15 = vpack.c.bf16 %v4022_v62, %v4018_v47  ;;  %v4036_v34 = vpack.c.bf16 %v4024_v28, %v4020_v57  ;;  %v3958_v37 = vadd.f32 %v3957_v16, %v3738_v30  ;;  %v4011_v50 = vadd.f32 %v4010_v33, %v3746_v17 }
0x1858   :  { %v3959_v38 = vpop.f32.mrf.mxu1  ;;  %v4012_v10 = vpop.f32.mrf.mxu0  ;;  %v4025_v18 = vmax.f32 %v3956_v52, 0.0  ;;  %v4027_v0 = vmax.f32 %v4009_v42, 0.0 }
0x1859   :  { %v3960_v39 = vadd.f32 %v3959_v38, %v3734_v2  ;;  %v4013_v8 = vadd.f32 %v4012_v10, %v3742_v19  ;;  %4338 = vmatprep.mubr.bf16.mxu1 %v4034_v15  ;;  %4387 = vmatprep.mubr.bf16.mxu0 %v4036_v34  ;;  %v4026_v11 = vmax.f32 %v3958_v37, 0.0  ;;  %v4028_v1 = vmax.f32 %v4011_v50, 0.0 }
0x185a   :  { %v3961_v14 = vpop.f32.mrf.mxu1  ;;  %v4014_v49 = vpop.f32.mrf.mxu0  ;;  %4339 = vmatmul.mubr.bf16.vlgmr.msra.gmra.mxu1 %v4033_v9  ;;  %4388 = vmatmul.mubr.bf16.vlgmr.msra.gmra.mxu0 %v4035_v5 }
0x185b   :  { %v3962_v59 = vadd.f32 %v3961_v14, %v3738_v30  ;;  %v4015_v32 = vadd.f32 %v4014_v49, %v3746_v17  ;;  %v4029_v36 = vmax.f32 %v3960_v39, 0.0  ;;  %v4031_v26 = vmax.f32 %v4013_v8, 0.0 }
0x185d   :  { %v4030_v53 = vmax.f32 %v3962_v59, 0.0  ;;  %v4032_v58 = vmax.f32 %v4015_v32, 0.0  ;;  %v4037_v60 = vpack.c.bf16 %v4029_v36, %v4025_v18  ;;  %v4039_v41 = vpack.c.bf16 %v4031_v26, %v4027_v0 }
0x185e   :  { %v7108_v26 = vmov 0.0  }
0x185f   :  { %v4038_v51 = vpack.c.bf16 %v4030_v53, %v4026_v11  ;;  %v4040_v3 = vpack.c.bf16 %v4032_v58, %v4028_v1  ;;  %6092 = vmatprep.subr.mxu1 %v7108_v26  ;;  %6151 = vmatprep.subr.mxu0 %v7108_v26 }
0x1861   :  { %4346 = vmatprep.mubr.bf16.mxu1 %v4038_v51  ;;  %4395 = vmatprep.mubr.bf16.mxu0 %v4040_v3 }
0x1862   :  { %4347 = vmatmul.mubr.bf16.gmra.mxu1 %v4037_v60  ;;  %4396 = vmatmul.mubr.bf16.gmra.mxu0 %v4039_v41 }
0x1863   :  { %6100 = vmatprep.mubr.msk.f32.mxu1 %vm7109_vm4, %v7108_v26  ;;  %6183 = vmatprep.mubr.msk.f32.mxu0 %vm7109_vm4, %v7108_v26 }
0x191a   :  { %v5736_v61 = vpop.f32.mrf.mxu1  ;;  %v5764_v56 = vpop.f32.mrf.mxu0 }
0x191c   :  { %v5737_v30 = vpop.f32.mrf.mxu1  ;;  %v5765_v17 = vpop.f32.mrf.mxu0 }
0x191d   :  { %v5738_v44 = vadd.f32 %v5737_v30, %v5736_v61  ;;  %v5766_v4 = vadd.f32 %v5765_v17, %v5764_v56 }
0x191e   :  { %v5739_v2 = vpop.f32.mrf.mxu1  ;;  %v5767_v19 = vpop.f32.mrf.mxu0 }
0x191f   :  { %v4341_v21 = vadd.f32 %v5738_v44, %v5506_v6 }
0x1920   :  { %v5740_v27 = vpop.f32.mrf.mxu1  ;;  %v5768_v45 = vpop.f32.mrf.mxu0 }
0x1921   :  { %v5741_v13 = vadd.f32 %v5740_v27, %v5739_v2  ;;  %v4390_v62 = vadd.f32 %v5766_v4, %v4341_v21  ;;  %v5769_v33 = vadd.f32 %v5768_v45, %v5767_v19  ;;  %v5539_v19 = vld [vmem:[#allocation12 + $0x1] ss:$0 sm:$0xff]  ;;  %v4555_v4 = vld [vmem:[%s8347_s29 + $0x20] sm:$0x1] }
0x1922   :  { %v5742_v7 = vpop.f32.mrf.mxu1  ;;  %v5770_v25 = vpop.f32.mrf.mxu0 }
0x1923   :  { %v4344_v28 = vadd.f32 %v5741_v13, %v5506_v6  ;;  %v4404_v5 = vadd.f32 %v4390_v62, %v8111_v22  ;;  %v4550_v62 = vld [vmem:[%s8348_s2] sm:$0x3] }
0x1924   :  { %v5743_v31 = vpop.f32.mrf.mxu1  ;;  %v5771_v20 = vpop.f32.mrf.mxu0 }
0x1925   :  { %v5744_v23 = vadd.f32 %v5743_v31, %v5742_v7  ;;  %v5772_v54 = vadd.f32 %v5771_v20, %v5770_v25  ;;  %v4393_v34 = vadd.f32 %v5769_v33, %v4344_v28  ;;  %v5540_v31 = vld [vmem:[#allocation14 + $0x1] ss:$0 sm:$0xff]  ;;  %v4657_v28 = vld [vmem:[%s8349_s10 + $0x78] sm:$0xff] }
0x1926   :  { %v5745_v43 = vpop.f32.mrf.mxu1  ;;  %v5773_v40 = vpop.f32.mrf.mxu0  ;;  %v4653_v33 = vld [vmem:[%s8349_s10 + $0x58] sm:$0xff] }
0x1927   :  { %v4349_v48 = vadd.f32 %v5744_v23, %v5506_v6  ;;  %v4405_v37 = vadd.f32 %v4393_v34, %v8113_v63  ;;  %v4651_v34 = vld [vmem:[%s8349_s10 + $0x48] sm:$0xff] }
0x1928   :  { %v5746_v35 = vpop.f32.mrf.mxu1  ;;  %v5774_v55 = vpop.f32.mrf.mxu0 }
0x1929   :  { %v4398_v47 = vadd.f32 %v5772_v54, %v4349_v48  ;;  %v5747_v57 = vadd.f32 %v5746_v35, %v5745_v43  ;;  %v5775_v46 = vadd.f32 %v5774_v55, %v5773_v40  ;;  %v4476_v54 = vld [vmem:[%s8346_s9] sm:$0x3]  ;;  %v4554_v35 = vld [vmem:[%s8347_s29 + $0x18] sm:$0xff]  ;;  %v4553_v55 = vld [vmem:[%s8347_s29 + $0x10] sm:$0xff] }
0x192b   :  { %v4352_v12 = vadd.f32 %v5747_v57, %v5506_v6  ;;  %v4406_v16 = vadd.f32 %v4398_v47, %v8130_v24  ;;  %v4552_v47 = vld [vmem:[%s8347_s29 + $0x8] sm:$0xff]  ;;  %v4551_v57 = vld [vmem:[%s8347_s29] sm:$0xff] }
0x192d   :  { %v4401_v15 = vadd.f32 %v5775_v46, %v4352_v12  ;;  %4416 = vadd.xlane.f32.xlu0 %v4406_v16  ;;  %v4656_v12 = vld [vmem:[%s8349_s10 + $0x70] sm:$0xff]  ;;  %v4655_v46 = vld [vmem:[%s8349_s10 + $0x68] sm:$0xff] }
0x192f   :  { %v4407_v9 = vadd.f32 %v4401_v15, %v8124_v29  ;;  %v4652_v15 = vld [vmem:[%s8349_s10 + $0x50] sm:$0xff] }
0x1931   :  { %4418 = vadd.xlane.f32.xlu1 %v4407_v9  ;;  %4412 = vadd.xlane.f32.xlu0 %v4404_v5 }
0x1935   :  { %4414 = vadd.xlane.f32.xlu1 %v4405_v37 }
0x19b6   :  { %v4417_v38 = vpop.xlane.xlu0 %4416 }
0x19b7   :  { %v4422_v10 = vmul.f32 0.0078125, %v4417_v38  ;;  %v4647_v38 = vld [vmem:[%s8349_s10 + $0x28] sm:$0xff] }
0x19b9   :  { %v4426_v50 = vsub.f32 %v4406_v16, %v4422_v10  ;;  %v4654_v16 = vld [vmem:[%s8349_s10 + $0x60] sm:$0xff] }
0x19ba   :  { %v4419_v39 = vpop.xlane.xlu1 %4418  ;;  %v4413_v8 = vpop.xlane.xlu0 %4412  ;;  %v4646_v10 = vld [vmem:[%s8349_s10 + $0x20] sm:$0xff] }
0x19bb   :  { %v4423_v52 = vmul.f32 0.0078125, %v4419_v39  ;;  %v4420_v24 = vmul.f32 0.0078125, %v4413_v8  ;;  %v4430_v42 = vmul.f32 %v4426_v50, %v4426_v50  ;;  %v4644_v39 = vld [vmem:[%s8349_s10 + $0x10] sm:$0xff]  ;;  %v4643_v8 = vld [vmem:[%s8349_s10 + $0x8] sm:$0xff] }
0x19bd   :  { %v4427_v14 = vsub.f32 %v4407_v9, %v4423_v52  ;;  %v4424_v49 = vsub.f32 %v4404_v5, %v4420_v24  ;;  %4436 = vadd.xlane.f32.xlu0 %v4430_v42  ;;  %v4650_v9 = vld [vmem:[%s8349_s10 + $0x40] sm:$0xff]  ;;  %v4649_v5 = vld [vmem:[%s8349_s10 + $0x38] sm:$0xff]  ;;  %v4767_v24 = vld [vmem:[#allocation17 + $0x78] sm:$0xff] }
0x19be   :  { %v4415_v59 = vpop.xlane.xlu1 %4414  ;;  %v4642_v52 = vld [vmem:[%s8349_s10] sm:$0xff]  ;;  %6152 = vmatpush3.msra.mxu0 %v4767_v24 }
0x19bf   :  { %v4421_v29 = vmul.f32 0.0078125, %v4415_v59  ;;  %v4431_v32 = vmul.f32 %v4427_v14, %v4427_v14  ;;  %v4428_v22 = vmul.f32 %v4424_v49, %v4424_v49  ;;  %v4766_v42 = vld [vmem:[#allocation17 + $0x70] sm:$0xff]  ;;  %6153 = vmatprep.subr.mxu0 %v7108_v26  ;;  %v4763_v59 = vld [vmem:[#allocation17 + $0x58] sm:$0xff] }
0x19c0   :  { %6154 = vmatpush3.msra.mxu0 %v4766_v42  ;;  %v5017_v24 = vld [vmem:[#allocation21 + $0x30] sm:$0xff]  ;;  %v5016_v42 = vld [vmem:[#allocation21 + $0x28] sm:$0xff] }
0x19c1   :  { %v4425_v36 = vsub.f32 %v4405_v37, %v4421_v29  ;;  %4438 = vadd.xlane.f32.xlu1 %v4431_v32  ;;  %4432 = vadd.xlane.f32.xlu0 %v4428_v22  ;;  %v4648_v37 = vld [vmem:[%s8349_s10 + $0x30] sm:$0xff]  ;;  %v4762_v29 = vld [vmem:[#allocation17 + $0x50] sm:$0xff]  ;;  %v4761_v32 = vld [vmem:[#allocation17 + $0x48] sm:$0xff] }
0x19c2   :  { %6155 = vmatprep.subr.mxu0 %v7108_v26  ;;  %v4760_v22 = vld [vmem:[#allocation17 + $0x40] sm:$0xff] }
0x19c3   :  { %v4429_v63 = vmul.f32 %v4425_v36, %v4425_v36 }
0x19c5   :  { %4434 = vadd.xlane.f32.xlu1 %v4429_v63  ;;  %v4758_v63 = vld [vmem:[#allocation17 + $0x30] sm:$0xff] }
0x1a46   :  { %v4437_v11 = vpop.xlane.xlu0 %4436 }
0x1a47   :  { %v4442_v1 = vmul.f32 0.0078125, %v4437_v11  ;;  %v4757_v11 = vld [vmem:[#allocation17 + $0x28] sm:$0xff] }
0x1a49   :  { %v4446_v53 = vadd.f32 1e-05, %v4442_v1  ;;  %v4756_v1 = vld [vmem:[#allocation17 + $0x20] sm:$0xff] }
0x1a4a   :  { %v4439_v58 = vpop.xlane.xlu1 %4438  ;;  %v4433_v18 = vpop.xlane.xlu0 %4432 }
0x1a4b   :  { %6747 = vrsqrt.f32 %v4446_v53  ;;  %v4443_v0 = vmul.f32 0.0078125, %v4439_v58  ;;  %v4440_v51 = vmul.f32 0.0078125, %v4433_v18  ;;  %v4755_v53 = vld [vmem:[#allocation17 + $0x18] sm:$0xff] }
0x1a4d   :  { %v4447_v3 = vadd.f32 1e-05, %v4443_v0  ;;  %v4444_v60 = vadd.f32 1e-05, %v4440_v51  ;;  %v5542_v0 = vld [vmem:[%s8350_s11] ss:$0 sm:$0xff] }
0x1a4e   :  { %v4435_v41 = vpop.xlane.xlu1 %4434 }
0x1a4f   :  { %6749 = vrsqrt.f32 %v4447_v3  ;;  %v4441_v61 = vmul.f32 0.0078125, %v4435_v41 }
0x1a50   :  { %6751 = vrsqrt.f32 %v4444_v60 }
0x1a51   :  { %v4445_v56 = vadd.f32 1e-05, %v4441_v61  ;;  %v4751_v61 = vld [vmem:[%s8351_s0 + $0x78] sm:$0xff] }
0x1a53   :  { %6753 = vrsqrt.f32 %v4445_v56  ;;  %v4750_v56 = vld [vmem:[%s8351_s0 + $0x70] sm:$0xff] }
0x1a58   :  { %v6748_v30 = vpop.eup %6747 }
0x1a59   :  { %v4454_v17 = vmul.f32 %v6748_v30, %v4426_v50  ;;  %v4645_v50 = vld [vmem:[%s8349_s10 + $0x18] sm:$0xff]  ;;  %v4749_v30 = vld [vmem:[%s8351_s0 + $0x68] sm:$0xff] }
0x1a5b   :  { %v4464_v7 = vmul.f32 %v5539_v19, %v4454_v17  ;;  %v4748_v17 = vld [vmem:[%s8351_s0 + $0x60] sm:$0xff] }
0x1a5c   :  { %v6750_v2 = vpop.eup %6749 }
0x1a5d   :  { %v6752_v27 = vpop.eup %6751  ;;  %v4455_v45 = vmul.f32 %v6750_v2, %v4427_v14  ;;  %v4474_v21 = vadd.f32 %v5540_v31, %v4464_v7  ;;  %v4765_v14 = vld [vmem:[#allocation17 + $0x68] sm:$0xff]  ;;  %v4742_v7 = vld [vmem:[%s8351_s0 + $0x30] sm:$0xff] }
0x1a5e   :  { %v4452_v25 = vmul.f32 %v6752_v27, %v4424_v49  ;;  %v4764_v49 = vld [vmem:[#allocation17 + $0x60] sm:$0xff]  ;;  %6156 = vmatpush3.msra.mxu0 %v4765_v14  ;;  %v4745_v27 = vld [vmem:[%s8351_s0 + $0x48] sm:$0xff] }
0x1a5f   :  { %v4465_v44 = vmul.f32 %v5539_v19, %v4455_v45  ;;  %6157 = vmatprep.subr.mxu0 %v7108_v26  ;;  %v4747_v2 = vld [vmem:[%s8351_s0 + $0x58] sm:$0xff]  ;;  %v4744_v45 = vld [vmem:[%s8351_s0 + $0x40] sm:$0xff] }
0x1a60   :  { %v6754_v6 = vpop.eup %6753  ;;  %v4462_v40 = vmul.f32 %v5539_v19, %v4452_v25  ;;  %6158 = vmatpush3.msra.mxu0 %v4764_v49  ;;  %v4741_v25 = vld [vmem:[%s8351_s0 + $0x28] sm:$0xff]  ;;  %v5015_v14 = vld [vmem:[#allocation21 + $0x20] sm:$0xff] }
0x1a61   :  { %v4475_v20 = vadd.f32 %v5540_v31, %v4465_v44  ;;  %v4453_v23 = vmul.f32 %v6754_v6, %v4425_v36  ;;  %6159 = vmatprep.subr.mxu0 %v7108_v26  ;;  %v4759_v36 = vld [vmem:[#allocation17 + $0x38] sm:$0xff]  ;;  %v4743_v44 = vld [vmem:[%s8351_s0 + $0x38] sm:$0xff]  ;;  %v4740_v6 = vld [vmem:[%s8351_s0 + $0x20] sm:$0xff] }
0x1a62   :  { %v4472_v48 = vadd.f32 %v5540_v31, %v4462_v40  ;;  %6160 = vmatpush3.msra.mxu0 %v4763_v59  ;;  %v4753_v40 = vld [vmem:[#allocation17 + $0x8] sm:$0xff]  ;;  %v5014_v49 = vld [vmem:[#allocation21 + $0x18] sm:$0xff] }
0x1a63   :  { %6093 = vmatpush3.msra.mxu1 %v4475_v20  ;;  %v4463_v43 = vmul.f32 %v5539_v19, %v4453_v23  ;;  %6161 = vmatprep.subr.mxu0 %v7108_v26  ;;  %v4746_v19 = vld [vmem:[%s8351_s0 + $0x50] sm:$0xff]  ;;  %v4737_v23 = vld [vmem:[%s8351_s0 + $0x8] sm:$0xff] }
0x1a64   :  { %6094 = vmatprep.subr.mxu1 %v7108_v26  ;;  %6162 = vmatpush3.msra.mxu0 %v4762_v29  ;;  %v4738_v20 = vld [vmem:[%s8351_s0 + $0x10] sm:$0xff] }
0x1a65   :  { %6095 = vmatpush3.msra.mxu1 %v4474_v21  ;;  %v4473_v13 = vadd.f32 %v5540_v31, %v4463_v43  ;;  %6163 = vmatprep.subr.mxu0 %v7108_v26  ;;  %v4739_v31 = vld [vmem:[%s8351_s0 + $0x18] sm:$0xff]  ;;  %v4736_v21 = vld [vmem:[%s8351_s0] sm:$0xff]  ;;  %v5546_v29 = vld [vmem:[#allocation18] ss:$0 sm:$0xff] }
0x1a66   :  { %6096 = vmatprep.subr.mxu1 %v7108_v26  ;;  %6164 = vmatpush3.msra.mxu0 %v4761_v32  ;;  %v4754_v43 = vld [vmem:[#allocation17 + $0x10] sm:$0xff] }
0x1a67   :  { %6097 = vmatpush3.msra.mxu1 %v4473_v13  ;;  %6165 = vmatprep.subr.mxu0 %v7108_v26  ;;  %v4752_v13 = vld [vmem:[#allocation17] sm:$0xff] }
0x1a68   :  { %6098 = vmatprep.subr.mxu1 %v7108_v26  ;;  %6166 = vmatpush3.msra.mxu0 %v4760_v22 }
0x1a69   :  { %6099 = vmatpush3.msra.mxu1 %v4472_v48  ;;  %6167 = vmatprep.subr.mxu0 %v7108_v26  ;;  %v5545_v48 = vld [vmem:[#allocation15] ss:$0 sm:$0xff] }
0x1a6a   :  { %6103 = vmatprep.subr.mxu1 %v7108_v26  ;;  %6101 = vmatmul.mubr.msk.f32.vlgmr.msra.gmra.mxu1 %vm706_vm0, %v4476_v54 }
0x1a6b   :  { %6104 = vmatpush3.msk.msra.mxu1 %vm4567_vm5, %v4555_v4  ;;  %6113 = vmatprep.mubr.msk.f32.mxu1 %vm7109_vm4, %v7108_v26 }
0x1a6c   :  { %6105 = vmatprep.subr.mxu1 %v7108_v26  ;;  %6168 = vmatpush3.msra.mxu0 %v4759_v36 }
0x1a6d   :  { %6106 = vmatpush3.msra.mxu1 %v4554_v35  ;;  %6169 = vmatprep.subr.mxu0 %v7108_v26 }
0x1a6e   :  { %6107 = vmatprep.subr.mxu1 %v7108_v26  ;;  %6170 = vmatpush3.msra.mxu0 %v4758_v63 }
0x1a6f   :  { %6108 = vmatpush3.msra.mxu1 %v4553_v55  ;;  %6171 = vmatprep.subr.mxu0 %v7108_v26 }
0x1a70   :  { %6109 = vmatprep.subr.mxu1 %v7108_v26  ;;  %6172 = vmatpush3.msra.mxu0 %v4757_v11  ;;  %v5013_v11 = vld [vmem:[#allocation21 + $0x10] sm:$0xff] }
0x1a71   :  { %6110 = vmatpush3.msra.mxu1 %v4552_v47  ;;  %6173 = vmatprep.subr.mxu0 %v7108_v26  ;;  %v4932_v47 = vld [vmem:[%s8352_s12 + $0x78] sm:$0xff] }
0x1a72   :  { %6111 = vmatprep.subr.mxu1 %v7108_v26  ;;  %6174 = vmatpush3.msra.mxu0 %v4756_v1  ;;  %v5012_v1 = vld [vmem:[#allocation21 + $0x8] sm:$0xff] }
0x1a73   :  { %6112 = vmatpush3.msra.mxu1 %v4551_v57  ;;  %6175 = vmatprep.subr.mxu0 %v7108_v26  ;;  %v4931_v57 = vld [vmem:[%s8352_s12 + $0x70] sm:$0xff] }
0x1a74   :  { %6114 = vmatmul.mubr.msk.f32.vlgmr.msra.gmra.mxu1 %vm4563_vm6, %v4550_v62  ;;  %6116 = vmatprep.subr.mxu1 %v7108_v26  ;;  %v4930_v62 = vld [vmem:[%s8352_s12 + $0x68] sm:$0xff] }
0x1a75   :  { %6117 = vmatpush3.msra.mxu1 %v4657_v28  ;;  %6148 = vmatprep.mubr.msk.f32.mxu1 %vm7109_vm4, %v7108_v26  ;;  %v4929_v28 = vld [vmem:[%s8352_s12 + $0x60] sm:$0xff] }
0x1a76   :  { %6118 = vmatprep.subr.mxu1 %v7108_v26  ;;  %6176 = vmatpush3.msra.mxu0 %v4755_v53  ;;  %v5011_v53 = vld [vmem:[#allocation21] sm:$0xff] }
0x1a77   :  { %6119 = vmatpush3.msra.mxu1 %v4656_v12  ;;  %6177 = vmatprep.subr.mxu0 %v7108_v26  ;;  %v4928_v12 = vld [vmem:[%s8352_s12 + $0x58] sm:$0xff] }
0x1a78   :  { %6120 = vmatprep.subr.mxu1 %v7108_v26  ;;  %6178 = vmatpush3.msra.mxu0 %v4754_v43 }
0x1a79   :  { %6121 = vmatpush3.msra.mxu1 %v4655_v46  ;;  %6179 = vmatprep.subr.mxu0 %v7108_v26  ;;  %v4927_v46 = vld [vmem:[%s8352_s12 + $0x50] sm:$0xff] }
0x1a7a   :  { %6122 = vmatprep.subr.mxu1 %v7108_v26  ;;  %6180 = vmatpush3.msra.mxu0 %v4753_v40 }
0x1a7b   :  { %6123 = vmatpush3.msra.mxu1 %v4654_v16  ;;  %6181 = vmatprep.subr.mxu0 %v7108_v26  ;;  %v4926_v16 = vld [vmem:[%s8352_s12 + $0x48] sm:$0xff] }
0x1a7c   :  { %6124 = vmatprep.subr.mxu1 %v7108_v26  ;;  %6182 = vmatpush3.msra.mxu0 %v4752_v13 }
0x1a7d   :  { %6125 = vmatpush3.msra.mxu1 %v4653_v33  ;;  %6221 = vmatprep.subr.mxu0 %v7108_v26  ;;  %v4925_v33 = vld [vmem:[%s8352_s12 + $0x40] sm:$0xff] }
0x1a7e   :  { %6126 = vmatprep.subr.mxu1 %v7108_v26 }
0x1a7f   :  { %6127 = vmatpush3.msra.mxu1 %v4652_v15  ;;  %v4924_v15 = vld [vmem:[%s8352_s12 + $0x38] sm:$0xff] }
0x1a80   :  { %6128 = vmatprep.subr.mxu1 %v7108_v26 }
0x1a81   :  { %6129 = vmatpush3.msra.mxu1 %v4651_v34  ;;  %v4923_v34 = vld [vmem:[%s8352_s12 + $0x30] sm:$0xff] }
0x1a82   :  { %6130 = vmatprep.subr.mxu1 %v7108_v26 }
0x1a83   :  { %6131 = vmatpush3.msra.mxu1 %v4650_v9  ;;  %v4922_v9 = vld [vmem:[%s8352_s12 + $0x28] sm:$0xff] }
0x1a84   :  { %6132 = vmatprep.subr.mxu1 %v7108_v26 }
0x1a85   :  { %6133 = vmatpush3.msra.mxu1 %v4649_v5  ;;  %v4921_v5 = vld [vmem:[%s8352_s12 + $0x20] sm:$0xff] }
0x1a86   :  { %6134 = vmatprep.subr.mxu1 %v7108_v26 }
0x1a87   :  { %6135 = vmatpush3.msra.mxu1 %v4648_v37 }
0x1a88   :  { %6136 = vmatprep.subr.mxu1 %v7108_v26 }
0x1a89   :  { %6137 = vmatpush3.msra.mxu1 %v4647_v38 }
0x1a8a   :  { %6138 = vmatprep.subr.mxu1 %v7108_v26 }
0x1a8b   :  { %6139 = vmatpush3.msra.mxu1 %v4646_v10  ;;  %v4920_v10 = vld [vmem:[%s8352_s12 + $0x18] sm:$0xff] }
0x1a8c   :  { %6140 = vmatprep.subr.mxu1 %v7108_v26 }
0x1a8d   :  { %6141 = vmatpush3.msra.mxu1 %v4645_v50  ;;  %v4919_v50 = vld [vmem:[%s8352_s12 + $0x10] sm:$0xff] }
0x1a8e   :  { %6142 = vmatprep.subr.mxu1 %v7108_v26 }
0x1a8f   :  { %6143 = vmatpush3.msra.mxu1 %v4644_v39  ;;  %v4918_v39 = vld [vmem:[%s8352_s12 + $0x8] sm:$0xff] }
0x1a90   :  { %6144 = vmatprep.subr.mxu1 %v7108_v26 }
0x1a91   :  { %6145 = vmatpush3.msra.mxu1 %v4643_v8  ;;  %v4917_v8 = vld [vmem:[%s8352_s12] sm:$0xff] }
0x1a92   :  { %6146 = vmatprep.subr.mxu1 %v7108_v26 }
0x1a93   :  { %6147 = vmatpush3.msra.mxu1 %v4642_v52  ;;  %v5018_v52 = vld [vmem:[#allocation21 + $0x38] sm:$0xff] }
0x1a94   :  { %6186 = vmatprep.subr.mxu1 %v7108_v26 }
0x1b2a   :  { %v4546_v58 = vpop.f32.mrf.mxu1 }
0x1b2c   :  { %v6102_v18 = vpop.f32.mrf.mxu1 }
0x1b34   :  { %v4637_v51 = vpop.f32.mrf.mxu1 }
0x1b35   :  { %v4638_v3 = vadd.f32 %v5542_v0, %v4637_v51 }
0x1b36   :  { %v6115_v60 = vpop.f32.mrf.mxu1 }
0x1b37   :  { %v4641_v41 = vmax.f32 %v4638_v3, 0.0  ;;  %v5548_v60 = vld [vmem:[#allocation23] ss:$0 sm:$0xff] }
0x1b39   :  { %6149 = vmatmul.mubr.f32.vlgmr.msra.gmra.mxu1 %v4641_v41 }
0x1b3a   :  { %6187 = vmatpush3.msra.mxu1 %v4751_v61  ;;  %6218 = vmatprep.mubr.msk.f32.mxu1 %vm7109_vm4, %v7108_v26 }
0x1b3b   :  { %6188 = vmatprep.subr.mxu1 %v7108_v26 }
0x1b3c   :  { %6189 = vmatpush3.msra.mxu1 %v4750_v56 }
0x1b3d   :  { %6190 = vmatprep.subr.mxu1 %v7108_v26 }
0x1b3e   :  { %6191 = vmatpush3.msra.mxu1 %v4749_v30 }
0x1b3f   :  { %6192 = vmatprep.subr.mxu1 %v7108_v26 }
0x1b40   :  { %6193 = vmatpush3.msra.mxu1 %v4748_v17 }
0x1b41   :  { %6194 = vmatprep.subr.mxu1 %v7108_v26 }
0x1b42   :  { %6195 = vmatpush3.msra.mxu1 %v4747_v2 }
0x1b43   :  { %6196 = vmatprep.subr.mxu1 %v7108_v26 }
0x1b44   :  { %6197 = vmatpush3.msra.mxu1 %v4746_v19 }
0x1b45   :  { %6198 = vmatprep.subr.mxu1 %v7108_v26 }
0x1b46   :  { %6199 = vmatpush3.msra.mxu1 %v4745_v27 }
0x1b47   :  { %6200 = vmatprep.subr.mxu1 %v7108_v26 }
0x1b48   :  { %6201 = vmatpush3.msra.mxu1 %v4744_v45 }
0x1b49   :  { %6202 = vmatprep.subr.mxu1 %v7108_v26 }
0x1b4a   :  { %6203 = vmatpush3.msra.mxu1 %v4743_v44 }
0x1b4b   :  { %6204 = vmatprep.subr.mxu1 %v7108_v26 }
0x1b4c   :  { %6205 = vmatpush3.msra.mxu1 %v4742_v7 }
0x1b4d   :  { %6206 = vmatprep.subr.mxu1 %v7108_v26 }
0x1b4e   :  { %6207 = vmatpush3.msra.mxu1 %v4741_v25 }
0x1b4f   :  { %6208 = vmatprep.subr.mxu1 %v7108_v26 }
0x1b50   :  { %6209 = vmatpush3.msra.mxu1 %v4740_v6 }
0x1b51   :  { %6210 = vmatprep.subr.mxu1 %v7108_v26 }
0x1b52   :  { %6211 = vmatpush3.msra.mxu1 %v4739_v31 }
0x1b53   :  { %6212 = vmatprep.subr.mxu1 %v7108_v26 }
0x1b54   :  { %6213 = vmatpush3.msra.mxu1 %v4738_v20 }
0x1b55   :  { %6214 = vmatprep.subr.mxu1 %v7108_v26 }
0x1b56   :  { %6215 = vmatpush3.msra.mxu1 %v4737_v23 }
0x1b57   :  { %6216 = vmatprep.subr.mxu1 %v7108_v26 }
0x1b58   :  { %6217 = vmatpush3.msra.mxu1 %v4736_v21 }
0x1b59   :  { %6219 = vmatmul.mubr.f32.vlgmr.msra.gmra.mxu1 %v4546_v58  ;;  %6256 = vmatprep.subr.mxu1 %v7108_v26  ;;  %v5547_v58 = vld [vmem:[#allocation20] ss:$0 sm:$0xff] }
0x1b5a   :  { %6272 = vmatprep.mubr.msk.f32.mxu1 %vm7109_vm4, %v7108_v26  ;;  %6257 = vmatpush3.msra.mxu1 %v5018_v52 }
0x1b5b   :  { %6258 = vmatprep.subr.mxu1 %v7108_v26 }
0x1b5c   :  { %6259 = vmatpush3.msra.mxu1 %v5017_v24 }
0x1b5d   :  { %6260 = vmatprep.subr.mxu1 %v7108_v26 }
0x1b5e   :  { %6261 = vmatpush3.msra.mxu1 %v5016_v42 }
0x1b5f   :  { %6262 = vmatprep.subr.mxu1 %v7108_v26 }
0x1b60   :  { %6263 = vmatpush3.msra.mxu1 %v5015_v14 }
0x1b61   :  { %6264 = vmatprep.subr.mxu1 %v7108_v26 }
0x1b62   :  { %6265 = vmatpush3.msra.mxu1 %v5014_v49 }
0x1b63   :  { %6266 = vmatprep.subr.mxu1 %v7108_v26 }
0x1b64   :  { %6267 = vmatpush3.msra.mxu1 %v5013_v11 }
0x1b65   :  { %6268 = vmatprep.subr.mxu1 %v7108_v26 }
0x1b66   :  { %6269 = vmatpush3.msra.mxu1 %v5012_v1 }
0x1b67   :  { %6270 = vmatprep.subr.mxu1 %v7108_v26 }
0x1b68   :  { %6271 = vmatpush3.msra.mxu1 %v5011_v53 }
0x1bf9   :  { %v4731_v54 = vpop.f32.mrf.mxu1 }
0x1bfa   :  { %v4732_v4 = vadd.f32 %v5545_v48, %v4731_v54 }
0x1bfb   :  { %v6150_v35 = vpop.f32.mrf.mxu1 }
0x1bfc   :  { %v4735_v55 = vmax.f32 %v4732_v4, 0.0 }
0x1bfe   :  { %6184 = vmatmul.mubr.f32.vlgmr.msra.gmra.mxu0 %v4735_v55 }
0x1bff   :  { %6222 = vmatpush3.msra.mxu0 %v4932_v47  ;;  %6253 = vmatprep.mubr.msk.f32.mxu0 %vm7109_vm4, %v7108_v26 }
0x1c00   :  { %6223 = vmatprep.subr.mxu0 %v7108_v26 }
0x1c01   :  { %6224 = vmatpush3.msra.mxu0 %v4931_v57 }
0x1c02   :  { %6225 = vmatprep.subr.mxu0 %v7108_v26 }
0x1c03   :  { %6226 = vmatpush3.msra.mxu0 %v4930_v62 }
0x1c04   :  { %6227 = vmatprep.subr.mxu0 %v7108_v26 }
0x1c05   :  { %6228 = vmatpush3.msra.mxu0 %v4929_v28 }
0x1c06   :  { %6229 = vmatprep.subr.mxu0 %v7108_v26 }
0x1c07   :  { %6230 = vmatpush3.msra.mxu0 %v4928_v12 }
0x1c08   :  { %6231 = vmatprep.subr.mxu0 %v7108_v26 }
0x1c09   :  { %6232 = vmatpush3.msra.mxu0 %v4927_v46 }
0x1c0a   :  { %6233 = vmatprep.subr.mxu0 %v7108_v26 }
0x1c0b   :  { %6234 = vmatpush3.msra.mxu0 %v4926_v16 }
0x1c0c   :  { %6235 = vmatprep.subr.mxu0 %v7108_v26 }
0x1c0d   :  { %6236 = vmatpush3.msra.mxu0 %v4925_v33 }
0x1c0e   :  { %6237 = vmatprep.subr.mxu0 %v7108_v26 }
0x1c0f   :  { %6238 = vmatpush3.msra.mxu0 %v4924_v15 }
0x1c10   :  { %6239 = vmatprep.subr.mxu0 %v7108_v26 }
0x1c11   :  { %6240 = vmatpush3.msra.mxu0 %v4923_v34 }
0x1c12   :  { %6241 = vmatprep.subr.mxu0 %v7108_v26 }
0x1c13   :  { %6242 = vmatpush3.msra.mxu0 %v4922_v9 }
0x1c14   :  { %6243 = vmatprep.subr.mxu0 %v7108_v26 }
0x1c15   :  { %6244 = vmatpush3.msra.mxu0 %v4921_v5 }
0x1c16   :  { %6245 = vmatprep.subr.mxu0 %v7108_v26 }
0x1c17   :  { %6246 = vmatpush3.msra.mxu0 %v4920_v10 }
0x1c18   :  { %6247 = vmatprep.subr.mxu0 %v7108_v26 }
0x1c19   :  { %v4904_v37 = vpop.f32.mrf.mxu1  ;;  %6248 = vmatpush3.msra.mxu0 %v4919_v50 }
0x1c1a   :  { %6249 = vmatprep.subr.mxu0 %v7108_v26 }
0x1c1b   :  { %v6220_v38 = vpop.f32.mrf.mxu1  ;;  %6250 = vmatpush3.msra.mxu0 %v4918_v39 }
0x1c1c   :  { %6251 = vmatprep.subr.mxu0 %v7108_v26 }
0x1c1d   :  { %6252 = vmatpush3.msra.mxu0 %v4917_v8 }
0x1cbe   :  { %v4834_v59 = vpop.f32.mrf.mxu0 }
0x1cbf   :  { %v4905_v32 = vadd.f32 %v4904_v37, %v4834_v59 }
0x1cc0   :  { %v6185_v22 = vpop.f32.mrf.mxu0 }
0x1cc1   :  { %v4915_v36 = vadd.f32 %v5546_v29, %v4905_v32 }
0x1cc3   :  { %v4916_v63 = vmax.f32 %v4915_v36, 0.0 }
0x1cc5   :  { %6254 = vmatmul.mubr.f32.vlgmr.msra.gmra.mxu0 %v4916_v63 }
0x1d85   :  { %v5006_v18 = vpop.f32.mrf.mxu0 }
0x1d86   :  { %v5007_v0 = vadd.f32 %v5547_v58, %v5006_v18 }
0x1d87   :  { %v6255_v51 = vpop.f32.mrf.mxu0 }
0x1d88   :  { %v5010_v3 = vmax.f32 %v5007_v0, 0.0 }
0x1d8a   :  { %6273 = vmatmul.mubr.msk.f32.vlgmr.msra.gmra.mxu1 %vm5026_vm7, %v5010_v3 }
0x1e4a   :  { %v5096_v41 = vpop.f32.mrf.mxu1 }
0x1e4b   :  { %v5097_v61 = vadd.f32 %v5548_v60, %v5096_v41 }
0x1e4c   :  { %v6274_v56 = vpop.f32.mrf.mxu1 }
0x1e4d   :  { %5100 = vst [vmem:[#allocation24] sm:$0x3] %v5097_v61 }
0x1e4e   :  { %7030 = shalt.err (!%p7027_p13)
}
0x1e4f   :  { %5110 = dma.vmem_to_hbm [thread:$0]  %s5108_s15, 32, %s7264_s19, [#allocation5]  }
0x1e50   :  { %7053 = dma.done.wait [#allocation5], 32  }
0x1e51   :  { %7054 = vsyncadd [#allocation5], 4294967264 }
0x1e52   :  { %5114 = vsyncpa [#allocation4], 1 }
0x1e53   :  { %5115 = vsyncpa [#allocation7], 1 }
0x1e54   :  { %5116 = vsyncpa [#allocation10], 1 }
0x1e55   :  { %5117 = vsyncpa [#allocation13], 1 }
0x1e56   :  { %5118 = vsyncpa [#allocation16], 1 }
0x1e57   :  { %5119 = vsyncpa [#allocation19], 1 }
0x1e58   :  { %5120 = vsyncpa [#allocation22], 1 }
0x1e59   :  { %5121 = vsyncpa [#allocation5], 1 }

</bundles_post_ra>
